<compile_context>
chip_gen: v7x
topology: tpu7x:2x2x1
jax: 0.10.0
libtpu: 0.0.40
codegen_flags: <defaults>
</compile_context>

<pallas_src>
import functools

import jax
import jax.numpy as jnp
from jax import lax
from jax.experimental import pallas as pl
from jax.experimental.pallas import tpu as pltpu


# ----------------------------------------------------------------------------
# Fused kernel: BiLSTM -> batch-axis MHA -> mean -> fc1/relu -> fused fc2 heads
# ----------------------------------------------------------------------------
def fused_forward_kernel(x_ref, wih_ref, whh_ref, bg_ref,
                         win_ref, bin_ref, wo_ref, bo_ref,
                         w1_ref, b1_ref, wh_ref, bh_ref,
                         mask_ref, sel_ref, perm_ref,
                         out_ref, steps_ref,
                         *, S, B, num_heads, Hp, hd_pad, scale):
    f32, bf16 = jnp.float32, jnp.bfloat16
    E2p = 2 * Hp
    SB = S * B
    # tanh-based logistic: identical math, guaranteed EUP lowering
    sigmoid = lambda v: 0.5 * jnp.tanh(0.5 * v) + 0.5

    # ---- BiLSTM (f32) --------------------------------------------------------
    # Hoisted input projection: all timesteps, both directions, one MXU pass.
    # Gate columns are [i_f i_b | f_f f_b | g_f g_b | o_f o_b], each half Hp=64 wide
    # (zero padded), so every gate block is a full 128-lane tile.
    xg = jnp.dot(x_ref[...], wih_ref[...], preferred_element_type=f32) + bg_ref[...]
    whh = whh_ref[...]                                   # block-diagonal (E2p, 4*E2p)

    h_cat = jnp.zeros((B, E2p), f32)                     # [h_fwd | h_bwd], padded lanes 0
    c_cat = jnp.zeros((B, E2p), f32)
    # TODO(synk): switch to lax.fori_loop(+pl.ds) for large S to bound vreg live ranges.
    for t in range(S):                                   # short fixed trip count: unrolled
        gates = xg[t * B:(t + 1) * B, :] + jnp.dot(
            h_cat, whh, preferred_element_type=f32)      # (B, 4*E2p)
        i_g = sigmoid(gates[:, 0 * E2p:1 * E2p])
        f_g = sigmoid(gates[:, 1 * E2p:2 * E2p])
        g_g = jnp.tanh(gates[:, 2 * E2p:3 * E2p])
        o_g = sigmoid(gates[:, 3 * E2p:4 * E2p])
        c_cat = f_g * c_cat + i_g * g_g
        h_cat = o_g * jnp.tanh(c_cat)
        # ONE lane-dense (B, 128) store per step (was two half-lane masked stores)
        steps_ref[t * B:(t + 1) * B, :] = h_cat

    # Re-pair directions per position:
    #   row block t of `steps` = [fwd_h(pos t) | bwd_h(pos S-1-t)]
    #   position s needs      [fwd_h(pos s) | bwd_h(pos s)]  -> take bwd half from
    #   the position-reversed rows (tiny precomputed permutation matmul), lane-select.
    steps = steps_ref[...]                               # (SB, E2p)
    steps_rev = jnp.dot(perm_ref[...], steps, preferred_element_type=f32)
    lane = lax.broadcasted_iota(jnp.int32, (SB, E2p), 1)
    x_att = jnp.where(lane < Hp, steps, steps_rev)       # row s*B+b = lstm_out[b, s, :]

    # ---- Multi-head attention over the batch axis (L=B), per position (N=S) --
    # NOTE: PyTorch feeds the batch-first (B,S,2H) tensor into a seq-first MHA, so
    # attention mixes over the BATCH axis independently per position. Reproduced here.
    NHd = num_heads * hd_pad
    qkv = jnp.dot(x_att.astype(bf16), win_ref[...],
                  preferred_element_type=f32) + bin_ref[...]      # (SB, 3*NHd)
    mask = mask_ref[...]                                          # (SB, SB) block-diag
    ctx = []
    for h in range(num_heads):                                    # 128-lane aligned slices
        q_h = (qkv[:, h * hd_pad:(h + 1) * hd_pad] * scale).astype(bf16)
        k_h = qkv[:, NHd + h * hd_pad:NHd + (h + 1) * hd_pad].astype(bf16)
        v_h = qkv[:, 2 * NHd + h * hd_pad:2 * NHd + (h + 1) * hd_pad].astype(bf16)
        sc = lax.dot_general(q_h, k_h, (((1,), (1,)), ((), ())),
                             preferred_element_type=f32) + mask   # f32 scores
        sc = sc - jnp.max(sc, axis=-1, keepdims=True)
        e = jnp.exp(sc)
        p_attn = e * pl.reciprocal(jnp.sum(e, axis=-1, keepdims=True), approx=True)
        ctx.append(jnp.dot(p_attn.astype(bf16), v_h, preferred_element_type=f32))
    ctx = jnp.concatenate(ctx, axis=1)                            # (SB, NHd)
    # mean over positions (linear) folded before the linear out-projection
    ctx_mean = jnp.dot(sel_ref[...], ctx, preferred_element_type=f32)        # (B, NHd)
    y = jnp.dot(ctx_mean.astype(bf16), wo_ref[...],
                preferred_element_type=f32) + bo_ref[...]                    # (B, E2p)

    # ---- dropout (inference identity) + fc1/relu + fused, lane-padded fc2 heads
    # TODO(synk): dropout is modeled as inference-mode identity (no RNG masking).
    h1 = jnp.maximum(jnp.dot(y.astype(bf16), w1_ref[...],
                             preferred_element_type=f32) + b1_ref[...], 0.0)
    out_ref[...] = (jnp.dot(h1.astype(bf16), wh_ref[...],
                            preferred_element_type=f32) + bh_ref[...])       # (B, 128)


# ----------------------------------------------------------------------------
# Wrapper: embedding gathers (glue) + one fused pallas_call
# ----------------------------------------------------------------------------
def forward(text, features, params, *, num_heads, num_classes, feature_classes,
            lstm_hidden_dim):
    # time-major embedding gathers (no activation transpose afterwards)
    emb_text_tm = params["emb_w"][text.T]                 # (T, B, E)
    emb_feat = params["feat_emb_w"][features][None]       # (1, B, E)
    x_tm = jnp.concatenate([emb_text_tm, emb_feat], axis=0)     # (S, B, E)
    S, B, E = x_tm.shape
    SB = S * B

    # fused fwd/bwd LSTM input: row block t pairs x[t] (fwd) with x[S-1-t] (bwd)
    x_cat = jnp.concatenate([x_tm, x_tm[::-1]], axis=-1).reshape(SB, 2 * E)
    x_cat = x_cat.astype(jnp.float32)

    E2p = params["whh_blk"].shape[0]
    Hp = E2p // 2
    hd_pad = params["win_T"].shape[1] // (3 * num_heads)
    lane_pad = params["heads_w"].shape[1]
    scale = 1.0 / float((2 * lstm_hidden_dim) // num_heads) ** 0.5

    # precomputed (constant-folded) small matrices: attention mask, mean selector,
    # position-block reversal permutation — no iota/divide/compare inside the kernel
    r = jnp.arange(SB)
    mask = jnp.where((r[:, None] // B) == (r[None, :] // B),
                     0.0, -1e30).astype(jnp.float32)                 # (SB, SB)
    sel = jnp.where(jnp.arange(B)[:, None] == (r[None, :] % B),
                    1.0 / S, 0.0).astype(jnp.float32)                # (B, SB)
    perm = jax.nn.one_hot((S - 1 - r // B) * B + (r % B), SB,
                          dtype=jnp.float32)                         # (SB, SB)

    kern = functools.partial(fused_forward_kernel, S=S, B=B, num_heads=num_heads,
                             Hp=Hp, hd_pad=hd_pad, scale=scale)
    vmem_spec = pl.BlockSpec(memory_space=pltpu.MemorySpace.VMEM)
    out = pl.pallas_call(
        kern,
        out_shape=jax.ShapeDtypeStruct((B, lane_pad), jnp.float32),
        in_specs=[vmem_spec] * 15,
        out_specs=vmem_spec,
        scratch_shapes=[pltpu.VMEM((SB, E2p), jnp.float32)],
        compiler_params=pltpu.CompilerParams(vmem_limit_bytes=32 * 1024 * 1024),
    )(x_cat, params["wih_blk"], params["whh_blk"], params["b_cat"],
      params["win_T"], params["bin_"], params["wo_T"], params["bo"],
      params["w1_T"], params["b1"], params["heads_w"], params["heads_b"],
      mask, sel, perm)

    return out[:, :num_classes], out[:, num_classes:num_classes + feature_classes]


# ----------------------------------------------------------------------------
# Parameter init (PyTorch layouts) and packing into kernel-friendly layouts
# ----------------------------------------------------------------------------
def init_params(key, vocab_size, feature_size, embed_dim, lstm_hidden_dim,
                num_classes, feature_classes):
    H = lstm_hidden_dim
    E2 = 2 * H
    ks = iter(jax.random.split(key, 24))
    rnd = lambda shape, s=0.1: jax.random.normal(next(ks), shape, jnp.float32) * s
    return {
        "emb_w": rnd((vocab_size, embed_dim), 1.0),
        "feat_emb_w": rnd((feature_size, embed_dim), 1.0),
        # LSTM (PyTorch gate order i, f, g, o)
        "w_ih_f": rnd((4 * H, embed_dim)), "w_hh_f": rnd((4 * H, H)),
        "b_ih_f": rnd((4 * H,)), "b_hh_f": rnd((4 * H,)),
        "w_ih_b": rnd((4 * H, embed_dim)), "w_hh_b": rnd((4 * H, H)),
        "b_ih_b": rnd((4 * H,)), "b_hh_b": rnd((4 * H,)),
        # MultiheadAttention in_proj / out_proj
        "in_proj_w": rnd((3 * E2, E2)), "in_proj_b": rnd((3 * E2,)),
        "out_proj_w": rnd((E2, E2)), "out_proj_b": rnd((E2,)),
        # fc1 / fc2_emotion / fc2_feature
        "fc1_w": rnd((H, E2)), "fc1_b": rnd((H,)),
        "fc2e_w": rnd((num_classes, H)), "fc2e_b": rnd((num_classes,)),
        "fc2f_w": rnd((feature_classes, H)), "fc2f_b": rnd((feature_classes,)),
    }


def pack_params(p, num_heads, lane_pad=128, hd_pad=128):
    """Pack PyTorch-layout params into 128-lane-aligned, zero-padded kernel layouts."""
    f32, bf16 = jnp.float32, jnp.bfloat16
    H = p["w_hh_f"].shape[1]
    E = p["w_ih_f"].shape[1]
    E2 = 2 * H
    Hp = max(64, ((H + 63) // 64) * 64)          # pad so 2*Hp is a multiple of 128
    E2p = 2 * Hp
    hd = E2 // num_heads

    # ---- BiLSTM: fused fwd/bwd block-diagonal weights, 128-lane gate blocks ----
    wih = jnp.zeros((2 * E, 4 * E2p), f32)
    whh = jnp.zeros((E2p, 4 * E2p), f32)
    bg = jnp.zeros((1, 4 * E2p), f32)
    wf_ih, wb_ih = p["w_ih_f"].T, p["w_ih_b"].T          # (E, 4H)
    wf_hh, wb_hh = p["w_hh_f"].T, p["w_hh_b"].T          # (H, 4H)
    bf_ = p["b_ih_f"] + p["b_hh_f"]
    bb_ = p["b_ih_b"] + p["b_hh_b"]
    for g in range(4):                                   # gate order i, f, g, o
        cf = g * E2p                                     # forward half of gate g
        cb = g * E2p + Hp                                # backward half of gate g
        wih = wih.at[0:E, cf:cf + H].set(wf_ih[:, g * H:(g + 1) * H])
        wih = wih.at[E:2 * E, cb:cb + H].set(wb_ih[:, g * H:(g + 1) * H])
        whh = whh.at[0:H, cf:cf + H].set(wf_hh[:, g * H:(g + 1) * H])
        whh = whh.at[Hp:Hp + H, cb:cb + H].set(wb_hh[:, g * H:(g + 1) * H])
        bg = bg.at[0, cf:cf + H].set(bf_[g * H:(g + 1) * H])
        bg = bg.at[0, cb:cb + H].set(bb_[g * H:(g + 1) * H])
    # padded gate weights / biases are exactly 0 -> padded c/h lanes stay 0.

    # ---- MHA: head-major, per-head 128-lane padded QKV and out-projection ----
    def pad_in_rows(w):          # (E2, C) -> (E2p, C): remap [fwd|bwd] rows to padded slots
        out = jnp.zeros((E2p, w.shape[1]), f32)
        out = out.at[0:H, :].set(w[0:H, :])
        out = out.at[Hp:Hp + H, :].set(w[H:2 * H, :])
        return out

    def pad_head_cols(w):        # (R, E2) -> (R, num_heads*hd_pad)
        out = jnp.zeros((w.shape[0], num_heads * hd_pad), f32)
        for h in range(num_heads):
            out = out.at[:, h * hd_pad:h * hd_pad + hd].set(w[:, h * hd:(h + 1) * hd])
        return out

    def pad_head_bias(b):        # (E2,) -> (num_heads*hd_pad,)
        out = jnp.zeros((num_heads * hd_pad,), f32)
        for h in range(num_heads):
            out = out.at[h * hd_pad:h * hd_pad + hd].set(b[h * hd:(h + 1) * hd])
        return out

    wq, wk, wv = jnp.split(p["in_proj_w"], 3, axis=0)    # each (E2, E2)
    bq, bk, bv = jnp.split(p["in_proj_b"], 3)
    win = jnp.concatenate([pad_head_cols(pad_in_rows(w.T)) for w in (wq, wk, wv)],
                          axis=1)                        # (E2p, 3*num_heads*hd_pad)
    bin_ = jnp.concatenate([pad_head_bias(b) for b in (bq, bk, bv)]).reshape(1, -1)

    wo_T = p["out_proj_w"].T                             # (concat-head in, E2 out)
    wo = jnp.zeros((num_heads * hd_pad, E2p), f32)
    for h in range(num_heads):
        wo = wo.at[h * hd_pad:h * hd_pad + hd, 0:E2].set(wo_T[h * hd:(h + 1) * hd, :])
    bo = jnp.zeros((1, E2p), f32).at[0, 0:E2].set(p["out_proj_b"])

    # ---- fc1 + fused lane-padded fc2 heads ----
    w1 = jnp.zeros((E2p, lane_pad), f32).at[0:E2, 0:H].set(p["fc1_w"].T)
    b1 = jnp.zeros((1, lane_pad), f32).at[0, 0:H].set(p["fc1_b"])
    C1, C2 = p["fc2e_w"].shape[0], p["fc2f_w"].shape[0]
    heads_w = jnp.zeros((lane_pad, lane_pad), f32)
    heads_w = heads_w.at[0:H, 0:C1].set(p["fc2e_w"].T)
    heads_w = heads_w.at[0:H, C1:C1 + C2].set(p["fc2f_w"].T)
    heads_b = jnp.zeros((1, lane_pad), f32)
    heads_b = heads_b.at[0, 0:C1].set(p["fc2e_b"])
    heads_b = heads_b.at[0, C1:C1 + C2].set(p["fc2f_b"])

    return {
        "emb_w": p["emb_w"], "feat_emb_w": p["feat_emb_w"],
        # LSTM stays f32 (recurrence accuracy)
        "wih_blk": wih, "whh_blk": whh, "b_cat": bg,
        # attention / FFN weights stored bf16 (native MXU operand format)
        "win_T": win.astype(bf16), "bin_": bin_,
        "wo_T": wo.astype(bf16), "bo": bo,
        "w1_T": w1.astype(bf16), "b1": b1,
        "heads_w": heads_w.astype(bf16), "heads_b": heads_b,
    }


# ----------------------------------------------------------------------------
# Pure-JAX reference (for a numerical sanity check of the fused kernel)
# ----------------------------------------------------------------------------
def reference_forward(text, features, p, num_heads):
    emb_text = p["emb_w"][text]                         # (B, T, E)
    emb_feat = p["feat_emb_w"][features][:, None, :]    # (B, 1, E)
    embedded = jnp.concatenate([emb_text, emb_feat], axis=1)   # (B, S, E)
    B = embedded.shape[0]
    H = p["w_hh_f"].shape[1]
    E2 = 2 * H
    x_tm = jnp.transpose(embedded, (1, 0, 2))           # (S, B, E)

    def run_dir(xs, w_ih, w_hh, b):
        def step(carry, x_t):
            h, c = carry
            gates = x_t @ w_ih.T + h @ w_hh.T + b
            i = jax.nn.sigmoid(gates[:, 0:H])
            f = jax.nn.sigmoid(gates[:, H:2 * H])
            g = jnp.tanh(gates[:, 2 * H:3 * H])
            o = jax.nn.sigmoid(gates[:, 3 * H:4 * H])
            c = f * c + i * g
            h = o * jnp.tanh(c)
            return (h, c), h
        h0 = jnp.zeros((B, H), jnp.float32)
        _, hs = lax.scan(step, (h0, h0), xs)
        return hs                                       # (S, B, H)

    hs_f = run_dir(x_tm, p["w_ih_f"], p["w_hh_f"], p["b_ih_f"] + p["b_hh_f"])
    hs_b = run_dir(x_tm[::-1], p["w_ih_b"], p["w_hh_b"],
                   p["b_ih_b"] + p["b_hh_b"])[::-1]
    lstm_tm = jnp.concatenate([hs_f, hs_b], axis=-1)    # (N=S, L=B, E2)

    # seq-first MHA applied to the batch-first tensor: attention over L=B per s
    hd = E2 // num_heads
    scale = 1.0 / float(hd) ** 0.5
    wq, wk, wv = jnp.split(p["in_proj_w"], 3, axis=0)
    bq, bk, bv = jnp.split(p["in_proj_b"], 3)
    q = (lstm_tm @ wq.T + bq) * scale
    k = lstm_tm @ wk.T + bk
    v = lstm_tm @ wv.T + bv                              # (S, B, E2)
    ctx_heads = []
    for h in range(num_heads):
        sl = slice(h * hd, (h + 1) * hd)
        sc = jnp.einsum("sld,smd->slm", q[..., sl], k[..., sl])
        pattn = jax.nn.softmax(sc, axis=-1)
        ctx_heads.append(jnp.einsum("slm,smd->sld", pattn, v[..., sl]))
    attn = jnp.concatenate(ctx_heads, axis=-1) @ p["out_proj_w"].T + p["out_proj_b"]
    feature_vector = jnp.mean(attn, axis=0)              # mean over N=S, dropout=id
    h1 = jax.nn.relu(feature_vector @ p["fc1_w"].T + p["fc1_b"])
    emo = h1 @ p["fc2e_w"].T + p["fc2e_b"]
    feat = h1 @ p["fc2f_w"].T + p["fc2f_b"]
    return emo, feat


if __name__ == "__main__":
    VOCAB, FEAT_SIZE = 50, 12
    EMBED, HIDDEN, HEADS = 16, 32, 4
    NUM_CLASSES, FEAT_CLASSES = 6, 4
    B, T = 2, 8

    key = jax.random.PRNGKey(0)
    k_p, k_t, k_f = jax.random.split(key, 3)
    raw = init_params(k_p, VOCAB, FEAT_SIZE, EMBED, HIDDEN,
                      NUM_CLASSES, FEAT_CLASSES)
    packed = pack_params(raw, num_heads=HEADS)

    text = jax.random.randint(k_t, (B, T), 0, VOCAB, dtype=jnp.int32)
    features = jax.random.randint(k_f, (B,), 0, FEAT_SIZE, dtype=jnp.int32)

    fwd = jax.jit(functools.partial(forward, num_heads=HEADS,
                                    num_classes=NUM_CLASSES,
                                    feature_classes=FEAT_CLASSES,
                                    lstm_hidden_dim=HIDDEN))
    emotion_logits, feature_logits = fwd(text, features, packed)
    jax.block_until_ready(emotion_logits)
    jax.block_until_ready(feature_logits)

    assert emotion_logits.shape == (B, NUM_CLASSES)
    assert feature_logits.shape == (B, FEAT_CLASSES)

    # numerical sanity check against a straightforward pure-JAX f32 reference.
    # attention/FFN matmuls use bf16 MXU operands (f32 accumulation; LSTM, mask add
    # and softmax stay f32), so the tolerance is 1e-2 instead of 5e-3.
    emo_ref, feat_ref = reference_forward(text, features, raw, HEADS)
    assert jnp.allclose(emotion_logits, emo_ref, atol=1e-2, rtol=1e-2), \
        "emotion logits mismatch vs reference"
    assert jnp.allclose(feature_logits, feat_ref, atol=1e-2, rtol=1e-2), \
        "feature logits mismatch vs reference"

    print("KERNEL_OK")
</pallas_src>

<mosaic_0001>
module attributes {stable_mosaic.version = 11 : i64} {
  func.func @fused_forward_kernel(%arg0: memref<18x32xf32, #tpu.memory_space<vmem>>, %arg1: memref<32x512xf32, #tpu.memory_space<vmem>>, %arg2: memref<128x512xf32, #tpu.memory_space<vmem>>, %arg3: memref<1x512xf32, #tpu.memory_space<vmem>>, %arg4: memref<128x1536xbf16, #tpu.memory_space<vmem>>, %arg5: memref<1x1536xf32, #tpu.memory_space<vmem>>, %arg6: memref<512x128xbf16, #tpu.memory_space<vmem>>, %arg7: memref<1x128xf32, #tpu.memory_space<vmem>>, %arg8: memref<128x128xbf16, #tpu.memory_space<vmem>>, %arg9: memref<1x128xf32, #tpu.memory_space<vmem>>, %arg10: memref<128x128xbf16, #tpu.memory_space<vmem>>, %arg11: memref<1x128xf32, #tpu.memory_space<vmem>>, %arg12: memref<18x18xf32, #tpu.memory_space<vmem>>, %arg13: memref<2x18xf32, #tpu.memory_space<vmem>>, %arg14: memref<18x18xf32, #tpu.memory_space<vmem>>, %arg15: memref<2x128xf32, #tpu.memory_space<vmem>>, %arg16: memref<18x128xf32, #tpu.memory_space<vmem>>) attributes {dimension_semantics = [], scalar_prefetch = 0 : i64, scratch_operands = 1 : i64, tpu.core_type = #tpu.core_type<tc>} {
    %c0 = arith.constant 0 : index
    %c0_0 = arith.constant 0 : index
    %0 = vector.load %arg0[%c0, %c0_0] : memref<18x32xf32, #tpu.memory_space<vmem>>, vector<18x32xf32>
    %c0_1 = arith.constant 0 : index
    %c0_2 = arith.constant 0 : index
    %1 = vector.load %arg1[%c0_1, %c0_2] : memref<32x512xf32, #tpu.memory_space<vmem>>, vector<32x512xf32>
    %cst = arith.constant dense<0.000000e+00> : vector<18x512xf32>
    %2 = tpu.matmul %0, %1, %cst {dimension_numbers = #tpu.dot_dimension_numbers<[1], [0], [0], [1], [0, 0, 1, 1], [], []>} : vector<18x32xf32>, vector<32x512xf32>, vector<18x512xf32> -> vector<18x512xf32>
    %c0_3 = arith.constant 0 : index
    %c0_4 = arith.constant 0 : index
    %3 = vector.load %arg3[%c0_3, %c0_4] : memref<1x512xf32, #tpu.memory_space<vmem>>, vector<1x512xf32>
    %4 = vector.broadcast %3 : vector<1x512xf32> to vector<18x512xf32>
    %5 = arith.addf %2, %4 : vector<18x512xf32>
    %c0_5 = arith.constant 0 : index
    %c0_6 = arith.constant 0 : index
    %6 = vector.load %arg2[%c0_5, %c0_6] : memref<128x512xf32, #tpu.memory_space<vmem>>, vector<128x512xf32>
    %cst_7 = arith.constant 0.000000e+00 : f32
    %7 = vector.broadcast %cst_7 : f32 to vector<2x128xf32>
    %cst_8 = arith.constant 0.000000e+00 : f32
    %8 = vector.broadcast %cst_8 : f32 to vector<2x128xf32>
    %9 = vector.extract_strided_slice %5 {offsets = [0, 0], sizes = [2, 512], strides = [1, 1]} : vector<18x512xf32> to vector<2x512xf32>
    %cst_9 = arith.constant dense<0.000000e+00> : vector<2x512xf32>
    %10 = tpu.matmul %7, %6, %cst_9 {dimension_numbers = #tpu.dot_dimension_numbers<[1], [0], [0], [1], [0, 0, 1, 1], [], []>} : vector<2x128xf32>, vector<128x512xf32>, vector<2x512xf32> -> vector<2x512xf32>
    %11 = arith.addf %9, %10 : vector<2x512xf32>
    %12 = vector.extract_strided_slice %11 {offsets = [0, 0], sizes = [2, 128], strides = [1, 1]} : vector<2x512xf32> to vector<2x128xf32>
    %cst_10 = arith.constant 5.000000e-01 : f32
    %13 = vector.broadcast %cst_10 : f32 to vector<2x128xf32>
    %14 = arith.mulf %13, %12 : vector<2x128xf32>
    %15 = math.tanh %14 : vector<2x128xf32>
    %cst_11 = arith.constant 5.000000e-01 : f32
    %16 = vector.broadcast %cst_11 : f32 to vector<2x128xf32>
    %17 = arith.mulf %16, %15 : vector<2x128xf32>
    %cst_12 = arith.constant 5.000000e-01 : f32
    %18 = vector.broadcast %cst_12 : f32 to vector<2x128xf32>
    %19 = arith.addf %17, %18 : vector<2x128xf32>
    %20 = vector.extract_strided_slice %11 {offsets = [0, 128], sizes = [2, 128], strides = [1, 1]} : vector<2x512xf32> to vector<2x128xf32>
    %cst_13 = arith.constant 5.000000e-01 : f32
    %21 = vector.broadcast %cst_13 : f32 to vector<2x128xf32>
    %22 = arith.mulf %21, %20 : vector<2x128xf32>
    %23 = math.tanh %22 : vector<2x128xf32>
    %cst_14 = arith.constant 5.000000e-01 : f32
    %24 = vector.broadcast %cst_14 : f32 to vector<2x128xf32>
    %25 = arith.mulf %24, %23 : vector<2x128xf32>
    %cst_15 = arith.constant 5.000000e-01 : f32
    %26 = vector.broadcast %cst_15 : f32 to vector<2x128xf32>
    %27 = arith.addf %25, %26 : vector<2x128xf32>
    %28 = vector.extract_strided_slice %11 {offsets = [0, 256], sizes = [2, 128], strides = [1, 1]} : vector<2x512xf32> to vector<2x128xf32>
    %29 = math.tanh %28 : vector<2x128xf32>
    %30 = vector.extract_strided_slice %11 {offsets = [0, 384], sizes = [2, 128], strides = [1, 1]} : vector<2x512xf32> to vector<2x128xf32>
    %cst_16 = arith.constant 5.000000e-01 : f32
    %31 = vector.broadcast %cst_16 : f32 to vector<2x128xf32>
    %32 = arith.mulf %31, %30 : vector<2x128xf32>
    %33 = math.tanh %32 : vector<2x128xf32>
    %cst_17 = arith.constant 5.000000e-01 : f32
    %34 = vector.broadcast %cst_17 : f32 to vector<2x128xf32>
    %35 = arith.mulf %34, %33 : vector<2x128xf32>
    %cst_18 = arith.constant 5.000000e-01 : f32
    %36 = vector.broadcast %cst_18 : f32 to vector<2x128xf32>
    %37 = arith.addf %35, %36 : vector<2x128xf32>
    %38 = arith.mulf %27, %8 : vector<2x128xf32>
    %39 = arith.mulf %19, %29 : vector<2x128xf32>
    %40 = arith.addf %38, %39 : vector<2x128xf32>
    %41 = math.tanh %40 : vector<2x128xf32>
    %42 = arith.mulf %37, %41 : vector<2x128xf32>
    %c0_19 = arith.constant 0 : index
    %c0_20 = arith.constant 0 : index
    %43 = vector.load %arg16[%c0_19, %c0_20] : memref<18x128xf32, #tpu.memory_space<vmem>>, vector<2x128xf32>
    tpu.vector_store %arg16[%c0_19, %c0_20], %42 {strides = array<i32>} : memref<18x128xf32, #tpu.memory_space<vmem>>, vector<2x128xf32>,
    %44 = vector.extract_strided_slice %5 {offsets = [2, 0], sizes = [2, 512], strides = [1, 1]} : vector<18x512xf32> to vector<2x512xf32>
    %cst_21 = arith.constant dense<0.000000e+00> : vector<2x512xf32>
    %45 = tpu.matmul %42, %6, %cst_21 {dimension_numbers = #tpu.dot_dimension_numbers<[1], [0], [0], [1], [0, 0, 1, 1], [], []>} : vector<2x128xf32>, vector<128x512xf32>, vector<2x512xf32> -> vector<2x512xf32>
    %46 = arith.addf %44, %45 : vector<2x512xf32>
    %47 = vector.extract_strided_slice %46 {offsets = [0, 0], sizes = [2, 128], strides = [1, 1]} : vector<2x512xf32> to vector<2x128xf32>
    %cst_22 = arith.constant 5.000000e-01 : f32
    %48 = vector.broadcast %cst_22 : f32 to vector<2x128xf32>
    %49 = arith.mulf %48, %47 : vector<2x128xf32>
    %50 = math.tanh %49 : vector<2x128xf32>
    %cst_23 = arith.constant 5.000000e-01 : f32
    %51 = vector.broadcast %cst_23 : f32 to vector<2x128xf32>
    %52 = arith.mulf %51, %50 : vector<2x128xf32>
    %cst_24 = arith.constant 5.000000e-01 : f32
    %53 = vector.broadcast %cst_24 : f32 to vector<2x128xf32>
    %54 = arith.addf %52, %53 : vector<2x128xf32>
    %55 = vector.extract_strided_slice %46 {offsets = [0, 128], sizes = [2, 128], strides = [1, 1]} : vector<2x512xf32> to vector<2x128xf32>
    %cst_25 = arith.constant 5.000000e-01 : f32
    %56 = vector.broadcast %cst_25 : f32 to vector<2x128xf32>
    %57 = arith.mulf %56, %55 : vector<2x128xf32>
    %58 = math.tanh %57 : vector<2x128xf32>
    %cst_26 = arith.constant 5.000000e-01 : f32
    %59 = vector.broadcast %cst_26 : f32 to vector<2x128xf32>
    %60 = arith.mulf %59, %58 : vector<2x128xf32>
    %cst_27 = arith.constant 5.000000e-01 : f32
    %61 = vector.broadcast %cst_27 : f32 to vector<2x128xf32>
    %62 = arith.addf %60, %61 : vector<2x128xf32>
    %63 = vector.extract_strided_slice %46 {offsets = [0, 256], sizes = [2, 128], strides = [1, 1]} : vector<2x512xf32> to vector<2x128xf32>
    %64 = math.tanh %63 : vector<2x128xf32>
    %65 = vector.extract_strided_slice %46 {offsets = [0, 384], sizes = [2, 128], strides = [1, 1]} : vector<2x512xf32> to vector<2x128xf32>
    %cst_28 = arith.constant 5.000000e-01 : f32
    %66 = vector.broadcast %cst_28 : f32 to vector<2x128xf32>
    %67 = arith.mulf %66, %65 : vector<2x128xf32>
    %68 = math.tanh %67 : vector<2x128xf32>
    %cst_29 = arith.constant 5.000000e-01 : f32
    %69 = vector.broadcast %cst_29 : f32 to vector<2x128xf32>
    %70 = arith.mulf %69, %68 : vector<2x128xf32>
    %cst_30 = arith.constant 5.000000e-01 : f32
    %71 = vector.broadcast %cst_30 : f32 to vector<2x128xf32>
    %72 = arith.addf %70, %71 : vector<2x128xf32>
    %73 = arith.mulf %62, %40 : vector<2x128xf32>
    %74 = arith.mulf %54, %64 : vector<2x128xf32>
    %75 = arith.addf %73, %74 : vector<2x128xf32>
    %76 = math.tanh %75 : vector<2x128xf32>
    %77 = arith.mulf %72, %76 : vector<2x128xf32>
    %c2 = arith.constant 2 : index
    %c0_31 = arith.constant 0 : index
    %78 = vector.load %arg16[%c2, %c0_31] : memref<18x128xf32, #tpu.memory_space<vmem>>, vector<2x128xf32>
    tpu.vector_store %arg16[%c2, %c0_31], %77 {strides = array<i32>} : memref<18x128xf32, #tpu.memory_space<vmem>>, vector<2x128xf32>,
    %79 = vector.extract_strided_slice %5 {offsets = [4, 0], sizes = [2, 512], strides = [1, 1]} : vector<18x512xf32> to vector<2x512xf32>
    %cst_32 = arith.constant dense<0.000000e+00> : vector<2x512xf32>
    %80 = tpu.matmul %77, %6, %cst_32 {dimension_numbers = #tpu.dot_dimension_numbers<[1], [0], [0], [1], [0, 0, 1, 1], [], []>} : vector<2x128xf32>, vector<128x512xf32>, vector<2x512xf32> -> vector<2x512xf32>
    %81 = arith.addf %79, %80 : vector<2x512xf32>
    %82 = vector.extract_strided_slice %81 {offsets = [0, 0], sizes = [2, 128], strides = [1, 1]} : vector<2x512xf32> to vector<2x128xf32>
    %cst_33 = arith.constant 5.000000e-01 : f32
    %83 = vector.broadcast %cst_33 : f32 to vector<2x128xf32>
    %84 = arith.mulf %83, %82 : vector<2x128xf32>
    %85 = math.tanh %84 : vector<2x128xf32>
    %cst_34 = arith.constant 5.000000e-01 : f32
    %86 = vector.broadcast %cst_34 : f32 to vector<2x128xf32>
    %87 = arith.mulf %86, %85 : vector<2x128xf32>
    %cst_35 = arith.constant 5.000000e-01 : f32
    %88 = vector.broadcast %cst_35 : f32 to vector<2x128xf32>
    %89 = arith.addf %87, %88 : vector<2x128xf32>
    %90 = vector.extract_strided_slice %81 {offsets = [0, 128], sizes = [2, 128], strides = [1, 1]} : vector<2x512xf32> to vector<2x128xf32>
    %cst_36 = arith.constant 5.000000e-01 : f32
    %91 = vector.broadcast %cst_36 : f32 to vector<2x128xf32>
    %92 = arith.mulf %91, %90 : vector<2x128xf32>
    %93 = math.tanh %92 : vector<2x128xf32>
    %cst_37 = arith.constant 5.000000e-01 : f32
    %94 = vector.broadcast %cst_37 : f32 to vector<2x128xf32>
    %95 = arith.mulf %94, %93 : vector<2x128xf32>
    %cst_38 = arith.constant 5.000000e-01 : f32
    %96 = vector.broadcast %cst_38 : f32 to vector<2x128xf32>
    %97 = arith.addf %95, %96 : vector<2x128xf32>
    %98 = vector.extract_strided_slice %81 {offsets = [0, 256], sizes = [2, 128], strides = [1, 1]} : vector<2x512xf32> to vector<2x128xf32>
    %99 = math.tanh %98 : vector<2x128xf32>
    %100 = vector.extract_strided_slice %81 {offsets = [0, 384], sizes = [2, 128], strides = [1, 1]} : vector<2x512xf32> to vector<2x128xf32>
    %cst_39 = arith.constant 5.000000e-01 : f32
    %101 = vector.broadcast %cst_39 : f32 to vector<2x128xf32>
    %102 = arith.mulf %101, %100 : vector<2x128xf32>
    %103 = math.tanh %102 : vector<2x128xf32>
    %cst_40 = arith.constant 5.000000e-01 : f32
    %104 = vector.broadcast %cst_40 : f32 to vector<2x128xf32>
    %105 = arith.mulf %104, %103 : vector<2x128xf32>
    %cst_41 = arith.constant 5.000000e-01 : f32
    %106 = vector.broadcast %cst_41 : f32 to vector<2x128xf32>
    %107 = arith.addf %105, %106 : vector<2x128xf32>
    %108 = arith.mulf %97, %75 : vector<2x128xf32>
    %109 = arith.mulf %89, %99 : vector<2x128xf32>
    %110 = arith.addf %108, %109 : vector<2x128xf32>
    %111 = math.tanh %110 : vector<2x128xf32>
    %112 = arith.mulf %107, %111 : vector<2x128xf32>
    %c4 = arith.constant 4 : index
    %c0_42 = arith.constant 0 : index
    %113 = vector.load %arg16[%c4, %c0_42] : memref<18x128xf32, #tpu.memory_space<vmem>>, vector<2x128xf32>
    tpu.vector_store %arg16[%c4, %c0_42], %112 {strides = array<i32>} : memref<18x128xf32, #tpu.memory_space<vmem>>, vector<2x128xf32>,
    %114 = vector.extract_strided_slice %5 {offsets = [6, 0], sizes = [2, 512], strides = [1, 1]} : vector<18x512xf32> to vector<2x512xf32>
    %cst_43 = arith.constant dense<0.000000e+00> : vector<2x512xf32>
    %115 = tpu.matmul %112, %6, %cst_43 {dimension_numbers = #tpu.dot_dimension_numbers<[1], [0], [0], [1], [0, 0, 1, 1], [], []>} : vector<2x128xf32>, vector<128x512xf32>, vector<2x512xf32> -> vector<2x512xf32>
    %116 = arith.addf %114, %115 : vector<2x512xf32>
    %117 = vector.extract_strided_slice %116 {offsets = [0, 0], sizes = [2, 128], strides = [1, 1]} : vector<2x512xf32> to vector<2x128xf32>
    %cst_44 = arith.constant 5.000000e-01 : f32
    %118 = vector.broadcast %cst_44 : f32 to vector<2x128xf32>
    %119 = arith.mulf %118, %117 : vector<2x128xf32>
    %120 = math.tanh %119 : vector<2x128xf32>
    %cst_45 = arith.constant 5.000000e-01 : f32
    %121 = vector.broadcast %cst_45 : f32 to vector<2x128xf32>
    %122 = arith.mulf %121, %120 : vector<2x128xf32>
    %cst_46 = arith.constant 5.000000e-01 : f32
    %123 = vector.broadcast %cst_46 : f32 to vector<2x128xf32>
    %124 = arith.addf %122, %123 : vector<2x128xf32>
    %125 = vector.extract_strided_slice %116 {offsets = [0, 128], sizes = [2, 128], strides = [1, 1]} : vector<2x512xf32> to vector<2x128xf32>
    %cst_47 = arith.constant 5.000000e-01 : f32
    %126 = vector.broadcast %cst_47 : f32 to vector<2x128xf32>
    %127 = arith.mulf %126, %125 : vector<2x128xf32>
    %128 = math.tanh %127 : vector<2x128xf32>
    %cst_48 = arith.constant 5.000000e-01 : f32
    %129 = vector.broadcast %cst_48 : f32 to vector<2x128xf32>
    %130 = arith.mulf %129, %128 : vector<2x128xf32>
    %cst_49 = arith.constant 5.000000e-01 : f32
    %131 = vector.broadcast %cst_49 : f32 to vector<2x128xf32>
    %132 = arith.addf %130, %131 : vector<2x128xf32>
    %133 = vector.extract_strided_slice %116 {offsets = [0, 256], sizes = [2, 128], strides = [1, 1]} : vector<2x512xf32> to vector<2x128xf32>
    %134 = math.tanh %133 : vector<2x128xf32>
    %135 = vector.extract_strided_slice %116 {offsets = [0, 384], sizes = [2, 128], strides = [1, 1]} : vector<2x512xf32> to vector<2x128xf32>
    %cst_50 = arith.constant 5.000000e-01 : f32
    %136 = vector.broadcast %cst_50 : f32 to vector<2x128xf32>
    %137 = arith.mulf %136, %135 : vector<2x128xf32>
    %138 = math.tanh %137 : vector<2x128xf32>
    %cst_51 = arith.constant 5.000000e-01 : f32
    %139 = vector.broadcast %cst_51 : f32 to vector<2x128xf32>
    %140 = arith.mulf %139, %138 : vector<2x128xf32>
    %cst_52 = arith.constant 5.000000e-01 : f32
    %141 = vector.broadcast %cst_52 : f32 to vector<2x128xf32>
    %142 = arith.addf %140, %141 : vector<2x128xf32>
    %143 = arith.mulf %132, %110 : vector<2x128xf32>
    %144 = arith.mulf %124, %134 : vector<2x128xf32>
    %145 = arith.addf %143, %144 : vector<2x128xf32>
    %146 = math.tanh %145 : vector<2x128xf32>
    %147 = arith.mulf %142, %146 : vector<2x128xf32>
    %c6 = arith.constant 6 : index
    %c0_53 = arith.constant 0 : index
    %148 = vector.load %arg16[%c6, %c0_53] : memref<18x128xf32, #tpu.memory_space<vmem>>, vector<2x128xf32>
    tpu.vector_store %arg16[%c6, %c0_53], %147 {strides = array<i32>} : memref<18x128xf32, #tpu.memory_space<vmem>>, vector<2x128xf32>,
    %149 = vector.extract_strided_slice %5 {offsets = [8, 0], sizes = [2, 512], strides = [1, 1]} : vector<18x512xf32> to vector<2x512xf32>
    %cst_54 = arith.constant dense<0.000000e+00> : vector<2x512xf32>
    %150 = tpu.matmul %147, %6, %cst_54 {dimension_numbers = #tpu.dot_dimension_numbers<[1], [0], [0], [1], [0, 0, 1, 1], [], []>} : vector<2x128xf32>, vector<128x512xf32>, vector<2x512xf32> -> vector<2x512xf32>
    %151 = arith.addf %149, %150 : vector<2x512xf32>
    %152 = vector.extract_strided_slice %151 {offsets = [0, 0], sizes = [2, 128], strides = [1, 1]} : vector<2x512xf32> to vector<2x128xf32>
    %cst_55 = arith.constant 5.000000e-01 : f32
    %153 = vector.broadcast %cst_55 : f32 to vector<2x128xf32>
    %154 = arith.mulf %153, %152 : vector<2x128xf32>
    %155 = math.tanh %154 : vector<2x128xf32>
    %cst_56 = arith.constant 5.000000e-01 : f32
    %156 = vector.broadcast %cst_56 : f32 to vector<2x128xf32>
    %157 = arith.mulf %156, %155 : vector<2x128xf32>
    %cst_57 = arith.constant 5.000000e-01 : f32
    %158 = vector.broadcast %cst_57 : f32 to vector<2x128xf32>
    %159 = arith.addf %157, %158 : vector<2x128xf32>
    %160 = vector.extract_strided_slice %151 {offsets = [0, 128], sizes = [2, 128], strides = [1, 1]} : vector<2x512xf32> to vector<2x128xf32>
    %cst_58 = arith.constant 5.000000e-01 : f32
    %161 = vector.broadcast %cst_58 : f32 to vector<2x128xf32>
    %162 = arith.mulf %161, %160 : vector<2x128xf32>
    %163 = math.tanh %162 : vector<2x128xf32>
    %cst_59 = arith.constant 5.000000e-01 : f32
    %164 = vector.broadcast %cst_59 : f32 to vector<2x128xf32>
    %165 = arith.mulf %164, %163 : vector<2x128xf32>
    %cst_60 = arith.constant 5.000000e-01 : f32
    %166 = vector.broadcast %cst_60 : f32 to vector<2x128xf32>
    %167 = arith.addf %165, %166 : vector<2x128xf32>
    %168 = vector.extract_strided_slice %151 {offsets = [0, 256], sizes = [2, 128], strides = [1, 1]} : vector<2x512xf32> to vector<2x128xf32>
    %169 = math.tanh %168 : vector<2x128xf32>
    %170 = vector.extract_strided_slice %151 {offsets = [0, 384], sizes = [2, 128], strides = [1, 1]} : vector<2x512xf32> to vector<2x128xf32>
    %cst_61 = arith.constant 5.000000e-01 : f32
    %171 = vector.broadcast %cst_61 : f32 to vector<2x128xf32>
    %172 = arith.mulf %171, %170 : vector<2x128xf32>
    %173 = math.tanh %172 : vector<2x128xf32>
    %cst_62 = arith.constant 5.000000e-01 : f32
    %174 = vector.broadcast %cst_62 : f32 to vector<2x128xf32>
    %175 = arith.mulf %174, %173 : vector<2x128xf32>
    %cst_63 = arith.constant 5.000000e-01 : f32
    %176 = vector.broadcast %cst_63 : f32 to vector<2x128xf32>
    %177 = arith.addf %175, %176 : vector<2x128xf32>
    %178 = arith.mulf %167, %145 : vector<2x128xf32>
    %179 = arith.mulf %159, %169 : vector<2x128xf32>
    %180 = arith.addf %178, %179 : vector<2x128xf32>
    %181 = math.tanh %180 : vector<2x128xf32>
    %182 = arith.mulf %177, %181 : vector<2x128xf32>
    %c8 = arith.constant 8 : index
    %c0_64 = arith.constant 0 : index
    %183 = vector.load %arg16[%c8, %c0_64] : memref<18x128xf32, #tpu.memory_space<vmem>>, vector<2x128xf32>
    tpu.vector_store %arg16[%c8, %c0_64], %182 {strides = array<i32>} : memref<18x128xf32, #tpu.memory_space<vmem>>, vector<2x128xf32>,
    %184 = vector.extract_strided_slice %5 {offsets = [10, 0], sizes = [2, 512], strides = [1, 1]} : vector<18x512xf32> to vector<2x512xf32>
    %cst_65 = arith.constant dense<0.000000e+00> : vector<2x512xf32>
    %185 = tpu.matmul %182, %6, %cst_65 {dimension_numbers = #tpu.dot_dimension_numbers<[1], [0], [0], [1], [0, 0, 1, 1], [], []>} : vector<2x128xf32>, vector<128x512xf32>, vector<2x512xf32> -> vector<2x512xf32>
    %186 = arith.addf %184, %185 : vector<2x512xf32>
    %187 = vector.extract_strided_slice %186 {offsets = [0, 0], sizes = [2, 128], strides = [1, 1]} : vector<2x512xf32> to vector<2x128xf32>
    %cst_66 = arith.constant 5.000000e-01 : f32
    %188 = vector.broadcast %cst_66 : f32 to vector<2x128xf32>
    %189 = arith.mulf %188, %187 : vector<2x128xf32>
    %190 = math.tanh %189 : vector<2x128xf32>
    %cst_67 = arith.constant 5.000000e-01 : f32
    %191 = vector.broadcast %cst_67 : f32 to vector<2x128xf32>
    %192 = arith.mulf %191, %190 : vector<2x128xf32>
    %cst_68 = arith.constant 5.000000e-01 : f32
    %193 = vector.broadcast %cst_68 : f32 to vector<2x128xf32>
    %194 = arith.addf %192, %193 : vector<2x128xf32>
    %195 = vector.extract_strided_slice %186 {offsets = [0, 128], sizes = [2, 128], strides = [1, 1]} : vector<2x512xf32> to vector<2x128xf32>
    %cst_69 = arith.constant 5.000000e-01 : f32
    %196 = vector.broadcast %cst_69 : f32 to vector<2x128xf32>
    %197 = arith.mulf %196, %195 : vector<2x128xf32>
    %198 = math.tanh %197 : vector<2x128xf32>
    %cst_70 = arith.constant 5.000000e-01 : f32
    %199 = vector.broadcast %cst_70 : f32 to vector<2x128xf32>
    %200 = arith.mulf %199, %198 : vector<2x128xf32>
    %cst_71 = arith.constant 5.000000e-01 : f32
    %201 = vector.broadcast %cst_71 : f32 to vector<2x128xf32>
    %202 = arith.addf %200, %201 : vector<2x128xf32>
    %203 = vector.extract_strided_slice %186 {offsets = [0, 256], sizes = [2, 128], strides = [1, 1]} : vector<2x512xf32> to vector<2x128xf32>
    %204 = math.tanh %203 : vector<2x128xf32>
    %205 = vector.extract_strided_slice %186 {offsets = [0, 384], sizes = [2, 128], strides = [1, 1]} : vector<2x512xf32> to vector<2x128xf32>
    %cst_72 = arith.constant 5.000000e-01 : f32
    %206 = vector.broadcast %cst_72 : f32 to vector<2x128xf32>
    %207 = arith.mulf %206, %205 : vector<2x128xf32>
    %208 = math.tanh %207 : vector<2x128xf32>
    %cst_73 = arith.constant 5.000000e-01 : f32
    %209 = vector.broadcast %cst_73 : f32 to vector<2x128xf32>
    %210 = arith.mulf %209, %208 : vector<2x128xf32>
    %cst_74 = arith.constant 5.000000e-01 : f32
    %211 = vector.broadcast %cst_74 : f32 to vector<2x128xf32>
    %212 = arith.addf %210, %211 : vector<2x128xf32>
    %213 = arith.mulf %202, %180 : vector<2x128xf32>
    %214 = arith.mulf %194, %204 : vector<2x128xf32>
    %215 = arith.addf %213, %214 : vector<2x128xf32>
    %216 = math.tanh %215 : vector<2x128xf32>
    %217 = arith.mulf %212, %216 : vector<2x128xf32>
    %c10 = arith.constant 10 : index
    %c0_75 = arith.constant 0 : index
    %218 = vector.load %arg16[%c10, %c0_75] : memref<18x128xf32, #tpu.memory_space<vmem>>, vector<2x128xf32>
    tpu.vector_store %arg16[%c10, %c0_75], %217 {strides = array<i32>} : memref<18x128xf32, #tpu.memory_space<vmem>>, vector<2x128xf32>,
    %219 = vector.extract_strided_slice %5 {offsets = [12, 0], sizes = [2, 512], strides = [1, 1]} : vector<18x512xf32> to vector<2x512xf32>
    %cst_76 = arith.constant dense<0.000000e+00> : vector<2x512xf32>
    %220 = tpu.matmul %217, %6, %cst_76 {dimension_numbers = #tpu.dot_dimension_numbers<[1], [0], [0], [1], [0, 0, 1, 1], [], []>} : vector<2x128xf32>, vector<128x512xf32>, vector<2x512xf32> -> vector<2x512xf32>
    %221 = arith.addf %219, %220 : vector<2x512xf32>
    %222 = vector.extract_strided_slice %221 {offsets = [0, 0], sizes = [2, 128], strides = [1, 1]} : vector<2x512xf32> to vector<2x128xf32>
    %cst_77 = arith.constant 5.000000e-01 : f32
    %223 = vector.broadcast %cst_77 : f32 to vector<2x128xf32>
    %224 = arith.mulf %223, %222 : vector<2x128xf32>
    %225 = math.tanh %224 : vector<2x128xf32>
    %cst_78 = arith.constant 5.000000e-01 : f32
    %226 = vector.broadcast %cst_78 : f32 to vector<2x128xf32>
    %227 = arith.mulf %226, %225 : vector<2x128xf32>
    %cst_79 = arith.constant 5.000000e-01 : f32
    %228 = vector.broadcast %cst_79 : f32 to vector<2x128xf32>
    %229 = arith.addf %227, %228 : vector<2x128xf32>
    %230 = vector.extract_strided_slice %221 {offsets = [0, 128], sizes = [2, 128], strides = [1, 1]} : vector<2x512xf32> to vector<2x128xf32>
    %cst_80 = arith.constant 5.000000e-01 : f32
    %231 = vector.broadcast %cst_80 : f32 to vector<2x128xf32>
    %232 = arith.mulf %231, %230 : vector<2x128xf32>
    %233 = math.tanh %232 : vector<2x128xf32>
    %cst_81 = arith.constant 5.000000e-01 : f32
    %234 = vector.broadcast %cst_81 : f32 to vector<2x128xf32>
    %235 = arith.mulf %234, %233 : vector<2x128xf32>
    %cst_82 = arith.constant 5.000000e-01 : f32
    %236 = vector.broadcast %cst_82 : f32 to vector<2x128xf32>
    %237 = arith.addf %235, %236 : vector<2x128xf32>
    %238 = vector.extract_strided_slice %221 {offsets = [0, 256], sizes = [2, 128], strides = [1, 1]} : vector<2x512xf32> to vector<2x128xf32>
    %239 = math.tanh %238 : vector<2x128xf32>
    %240 = vector.extract_strided_slice %221 {offsets = [0, 384], sizes = [2, 128], strides = [1, 1]} : vector<2x512xf32> to vector<2x128xf32>
    %cst_83 = arith.constant 5.000000e-01 : f32
    %241 = vector.broadcast %cst_83 : f32 to vector<2x128xf32>
    %242 = arith.mulf %241, %240 : vector<2x128xf32>
    %243 = math.tanh %242 : vector<2x128xf32>
    %cst_84 = arith.constant 5.000000e-01 : f32
    %244 = vector.broadcast %cst_84 : f32 to vector<2x128xf32>
    %245 = arith.mulf %244, %243 : vector<2x128xf32>
    %cst_85 = arith.constant 5.000000e-01 : f32
    %246 = vector.broadcast %cst_85 : f32 to vector<2x128xf32>
    %247 = arith.addf %245, %246 : vector<2x128xf32>
    %248 = arith.mulf %237, %215 : vector<2x128xf32>
    %249 = arith.mulf %229, %239 : vector<2x128xf32>
    %250 = arith.addf %248, %249 : vector<2x128xf32>
    %251 = math.tanh %250 : vector<2x128xf32>
    %252 = arith.mulf %247, %251 : vector<2x128xf32>
    %c12 = arith.constant 12 : index
    %c0_86 = arith.constant 0 : index
    %253 = vector.load %arg16[%c12, %c0_86] : memref<18x128xf32, #tpu.memory_space<vmem>>, vector<2x128xf32>
    tpu.vector_store %arg16[%c12, %c0_86], %252 {strides = array<i32>} : memref<18x128xf32, #tpu.memory_space<vmem>>, vector<2x128xf32>,
    %254 = vector.extract_strided_slice %5 {offsets = [14, 0], sizes = [2, 512], strides = [1, 1]} : vector<18x512xf32> to vector<2x512xf32>
    %cst_87 = arith.constant dense<0.000000e+00> : vector<2x512xf32>
    %255 = tpu.matmul %252, %6, %cst_87 {dimension_numbers = #tpu.dot_dimension_numbers<[1], [0], [0], [1], [0, 0, 1, 1], [], []>} : vector<2x128xf32>, vector<128x512xf32>, vector<2x512xf32> -> vector<2x512xf32>
    %256 = arith.addf %254, %255 : vector<2x512xf32>
    %257 = vector.extract_strided_slice %256 {offsets = [0, 0], sizes = [2, 128], strides = [1, 1]} : vector<2x512xf32> to vector<2x128xf32>
    %cst_88 = arith.constant 5.000000e-01 : f32
    %258 = vector.broadcast %cst_88 : f32 to vector<2x128xf32>
    %259 = arith.mulf %258, %257 : vector<2x128xf32>
    %260 = math.tanh %259 : vector<2x128xf32>
    %cst_89 = arith.constant 5.000000e-01 : f32
    %261 = vector.broadcast %cst_89 : f32 to vector<2x128xf32>
    %262 = arith.mulf %261, %260 : vector<2x128xf32>
    %cst_90 = arith.constant 5.000000e-01 : f32
    %263 = vector.broadcast %cst_90 : f32 to vector<2x128xf32>
    %264 = arith.addf %262, %263 : vector<2x128xf32>
    %265 = vector.extract_strided_slice %256 {offsets = [0, 128], sizes = [2, 128], strides = [1, 1]} : vector<2x512xf32> to vector<2x128xf32>
    %cst_91 = arith.constant 5.000000e-01 : f32
    %266 = vector.broadcast %cst_91 : f32 to vector<2x128xf32>
    %267 = arith.mulf %266, %265 : vector<2x128xf32>
    %268 = math.tanh %267 : vector<2x128xf32>
    %cst_92 = arith.constant 5.000000e-01 : f32
    %269 = vector.broadcast %cst_92 : f32 to vector<2x128xf32>
    %270 = arith.mulf %269, %268 : vector<2x128xf32>
    %cst_93 = arith.constant 5.000000e-01 : f32
    %271 = vector.broadcast %cst_93 : f32 to vector<2x128xf32>
    %272 = arith.addf %270, %271 : vector<2x128xf32>
    %273 = vector.extract_strided_slice %256 {offsets = [0, 256], sizes = [2, 128], strides = [1, 1]} : vector<2x512xf32> to vector<2x128xf32>
    %274 = math.tanh %273 : vector<2x128xf32>
    %275 = vector.extract_strided_slice %256 {offsets = [0, 384], sizes = [2, 128], strides = [1, 1]} : vector<2x512xf32> to vector<2x128xf32>
    %cst_94 = arith.constant 5.000000e-01 : f32
    %276 = vector.broadcast %cst_94 : f32 to vector<2x128xf32>
    %277 = arith.mulf %276, %275 : vector<2x128xf32>
    %278 = math.tanh %277 : vector<2x128xf32>
    %cst_95 = arith.constant 5.000000e-01 : f32
    %279 = vector.broadcast %cst_95 : f32 to vector<2x128xf32>
    %280 = arith.mulf %279, %278 : vector<2x128xf32>
    %cst_96 = arith.constant 5.000000e-01 : f32
    %281 = vector.broadcast %cst_96 : f32 to vector<2x128xf32>
    %282 = arith.addf %280, %281 : vector<2x128xf32>
    %283 = arith.mulf %272, %250 : vector<2x128xf32>
    %284 = arith.mulf %264, %274 : vector<2x128xf32>
    %285 = arith.addf %283, %284 : vector<2x128xf32>
    %286 = math.tanh %285 : vector<2x128xf32>
    %287 = arith.mulf %282, %286 : vector<2x128xf32>
    %c14 = arith.constant 14 : index
    %c0_97 = arith.constant 0 : index
    %288 = vector.load %arg16[%c14, %c0_97] : memref<18x128xf32, #tpu.memory_space<vmem>>, vector<2x128xf32>
    tpu.vector_store %arg16[%c14, %c0_97], %287 {strides = array<i32>} : memref<18x128xf32, #tpu.memory_space<vmem>>, vector<2x128xf32>,
    %289 = vector.extract_strided_slice %5 {offsets = [16, 0], sizes = [2, 512], strides = [1, 1]} : vector<18x512xf32> to vector<2x512xf32>
    %cst_98 = arith.constant dense<0.000000e+00> : vector<2x512xf32>
    %290 = tpu.matmul %287, %6, %cst_98 {dimension_numbers = #tpu.dot_dimension_numbers<[1], [0], [0], [1], [0, 0, 1, 1], [], []>} : vector<2x128xf32>, vector<128x512xf32>, vector<2x512xf32> -> vector<2x512xf32>
    %291 = arith.addf %289, %290 : vector<2x512xf32>
    %292 = vector.extract_strided_slice %291 {offsets = [0, 0], sizes = [2, 128], strides = [1, 1]} : vector<2x512xf32> to vector<2x128xf32>
    %cst_99 = arith.constant 5.000000e-01 : f32
    %293 = vector.broadcast %cst_99 : f32 to vector<2x128xf32>
    %294 = arith.mulf %293, %292 : vector<2x128xf32>
    %295 = math.tanh %294 : vector<2x128xf32>
    %cst_100 = arith.constant 5.000000e-01 : f32
    %296 = vector.broadcast %cst_100 : f32 to vector<2x128xf32>
    %297 = arith.mulf %296, %295 : vector<2x128xf32>
    %cst_101 = arith.constant 5.000000e-01 : f32
    %298 = vector.broadcast %cst_101 : f32 to vector<2x128xf32>
    %299 = arith.addf %297, %298 : vector<2x128xf32>
    %300 = vector.extract_strided_slice %291 {offsets = [0, 128], sizes = [2, 128], strides = [1, 1]} : vector<2x512xf32> to vector<2x128xf32>
    %cst_102 = arith.constant 5.000000e-01 : f32
    %301 = vector.broadcast %cst_102 : f32 to vector<2x128xf32>
    %302 = arith.mulf %301, %300 : vector<2x128xf32>
    %303 = math.tanh %302 : vector<2x128xf32>
    %cst_103 = arith.constant 5.000000e-01 : f32
    %304 = vector.broadcast %cst_103 : f32 to vector<2x128xf32>
    %305 = arith.mulf %304, %303 : vector<2x128xf32>
    %cst_104 = arith.constant 5.000000e-01 : f32
    %306 = vector.broadcast %cst_104 : f32 to vector<2x128xf32>
    %307 = arith.addf %305, %306 : vector<2x128xf32>
    %308 = vector.extract_strided_slice %291 {offsets = [0, 256], sizes = [2, 128], strides = [1, 1]} : vector<2x512xf32> to vector<2x128xf32>
    %309 = math.tanh %308 : vector<2x128xf32>
    %310 = vector.extract_strided_slice %291 {offsets = [0, 384], sizes = [2, 128], strides = [1, 1]} : vector<2x512xf32> to vector<2x128xf32>
    %cst_105 = arith.constant 5.000000e-01 : f32
    %311 = vector.broadcast %cst_105 : f32 to vector<2x128xf32>
    %312 = arith.mulf %311, %310 : vector<2x128xf32>
    %313 = math.tanh %312 : vector<2x128xf32>
    %cst_106 = arith.constant 5.000000e-01 : f32
    %314 = vector.broadcast %cst_106 : f32 to vector<2x128xf32>
    %315 = arith.mulf %314, %313 : vector<2x128xf32>
    %cst_107 = arith.constant 5.000000e-01 : f32
    %316 = vector.broadcast %cst_107 : f32 to vector<2x128xf32>
    %317 = arith.addf %315, %316 : vector<2x128xf32>
    %318 = arith.mulf %307, %285 : vector<2x128xf32>
    %319 = arith.mulf %299, %309 : vector<2x128xf32>
    %320 = arith.addf %318, %319 : vector<2x128xf32>
    %321 = math.tanh %320 : vector<2x128xf32>
    %322 = arith.mulf %317, %321 : vector<2x128xf32>
    %c16 = arith.constant 16 : index
    %c0_108 = arith.constant 0 : index
    %323 = vector.load %arg16[%c16, %c0_108] : memref<18x128xf32, #tpu.memory_space<vmem>>, vector<2x128xf32>
    tpu.vector_store %arg16[%c16, %c0_108], %322 {strides = array<i32>} : memref<18x128xf32, #tpu.memory_space<vmem>>, vector<2x128xf32>,
    %c0_109 = arith.constant 0 : index
    %c0_110 = arith.constant 0 : index
    %324 = vector.load %arg16[%c0_109, %c0_110] : memref<18x128xf32, #tpu.memory_space<vmem>>, vector<18x128xf32>
    %c0_111 = arith.constant 0 : index
    %c0_112 = arith.constant 0 : index
    %325 = vector.load %arg14[%c0_111, %c0_112] : memref<18x18xf32, #tpu.memory_space<vmem>>, vector<18x18xf32>
    %cst_113 = arith.constant dense<0.000000e+00> : vector<18x128xf32>
    %326 = tpu.matmul %325, %324, %cst_113 {dimension_numbers = #tpu.dot_dimension_numbers<[1], [0], [0], [1], [0, 0, 1, 1], [], []>} : vector<18x18xf32>, vector<18x128xf32>, vector<18x128xf32> -> vector<18x128xf32>
    %327 = tpu.iota {dimensions = array<i32: 1>} : vector<18x128xi32>
    %c64_i32 = arith.constant 64 : i32
    %328 = vector.broadcast %c64_i32 : i32 to vector<18x128xi32>
    %329 = arith.cmpi slt, %327, %328 : vector<18x128xi32>
    %330 = arith.select %329, %324, %326 : vector<18x128xi1>, vector<18x128xf32>
    %331 = arith.truncf %330 : vector<18x128xf32> to vector<18x128xbf16>
    %c0_114 = arith.constant 0 : index
    %c0_115 = arith.constant 0 : index
    %332 = vector.load %arg4[%c0_114, %c0_115] : memref<128x1536xbf16, #tpu.memory_space<vmem>>, vector<128x1536xbf16>
    %cst_116 = arith.constant dense<0.000000e+00> : vector<18x1536xf32>
    %333 = tpu.matmul %331, %332, %cst_116 {dimension_numbers = #tpu.dot_dimension_numbers<[1], [0], [0], [1], [0, 0, 1, 1], [], []>} : vector<18x128xbf16>, vector<128x1536xbf16>, vector<18x1536xf32> -> vector<18x1536xf32>
    %c0_117 = arith.constant 0 : index
    %c0_118 = arith.constant 0 : index
    %334 = vector.load %arg5[%c0_117, %c0_118] : memref<1x1536xf32, #tpu.memory_space<vmem>>, vector<1x1536xf32>
    %335 = vector.broadcast %334 : vector<1x1536xf32> to vector<18x1536xf32>
    %336 = arith.addf %333, %335 : vector<18x1536xf32>
    %c0_119 = arith.constant 0 : index
    %c0_120 = arith.constant 0 : index
    %337 = vector.load %arg12[%c0_119, %c0_120] : memref<18x18xf32, #tpu.memory_space<vmem>>, vector<18x18xf32>
    %338 = vector.extract_strided_slice %336 {offsets = [0, 0], sizes = [18, 128], strides = [1, 1]} : vector<18x1536xf32> to vector<18x128xf32>
    %cst_121 = arith.constant 2.500000e-01 : f32
    %339 = vector.broadcast %cst_121 : f32 to vector<18x128xf32>
    %340 = arith.mulf %338, %339 : vector<18x128xf32>
    %341 = arith.truncf %340 : vector<18x128xf32> to vector<18x128xbf16>
    %342 = vector.extract_strided_slice %336 {offsets = [0, 512], sizes = [18, 128], strides = [1, 1]} : vector<18x1536xf32> to vector<18x128xf32>
    %343 = arith.truncf %342 : vector<18x128xf32> to vector<18x128xbf16>
    %344 = vector.extract_strided_slice %336 {offsets = [0, 1024], sizes = [18, 128], strides = [1, 1]} : vector<18x1536xf32> to vector<18x128xf32>
    %345 = arith.truncf %344 : vector<18x128xf32> to vector<18x128xbf16>
    %cst_122 = arith.constant dense<0.000000e+00> : vector<18x18xf32>
    %346 = tpu.matmul %341, %343, %cst_122 {dimension_numbers = #tpu.dot_dimension_numbers<[1], [1], [0], [0], [0, 0, 1, 0], [], []>} : vector<18x128xbf16>, vector<18x128xbf16>, vector<18x18xf32> -> vector<18x18xf32>
    %347 = arith.addf %346, %337 : vector<18x18xf32>
    %cst_123 = arith.constant dense<0xFF800000> : vector<18xf32>
    %348 = vector.multi_reduction <maximumf>, %347, %cst_123 [1] : vector<18x18xf32> to vector<18xf32>
    %349 = vector.shape_cast %348 : vector<18xf32> to vector<18x1xf32>
    %350 = vector.broadcast %349 : vector<18x1xf32> to vector<18x18xf32>
    %351 = arith.subf %347, %350 : vector<18x18xf32>
    %352 = math.exp %351 : vector<18x18xf32>
    %cst_124 = arith.constant dense<0.000000e+00> : vector<18xf32>
    %353 = vector.multi_reduction <add>, %352, %cst_124 [1] : vector<18x18xf32> to vector<18xf32>
    %354 = vector.shape_cast %353 : vector<18xf32> to vector<18x1xf32>
    %355 = tpu.reciprocal %354 {approx = true} : vector<18x1xf32> -> vector<18x1xf32>
    %356 = vector.broadcast %355 : vector<18x1xf32> to vector<18x18xf32>
    %357 = arith.mulf %352, %356 : vector<18x18xf32>
    %358 = arith.truncf %357 : vector<18x18xf32> to vector<18x18xbf16>
    %cst_125 = arith.constant dense<0.000000e+00> : vector<18x128xf32>
    %359 = tpu.matmul %358, %345, %cst_125 {dimension_numbers = #tpu.dot_dimension_numbers<[1], [0], [0], [1], [0, 0, 1, 1], [], []>} : vector<18x18xbf16>, vector<18x128xbf16>, vector<18x128xf32> -> vector<18x128xf32>
    %360 = vector.extract_strided_slice %336 {offsets = [0, 128], sizes = [18, 128], strides = [1, 1]} : vector<18x1536xf32> to vector<18x128xf32>
    %cst_126 = arith.constant 2.500000e-01 : f32
    %361 = vector.broadcast %cst_126 : f32 to vector<18x128xf32>
    %362 = arith.mulf %360, %361 : vector<18x128xf32>
    %363 = arith.truncf %362 : vector<18x128xf32> to vector<18x128xbf16>
    %364 = vector.extract_strided_slice %336 {offsets = [0, 640], sizes = [18, 128], strides = [1, 1]} : vector<18x1536xf32> to vector<18x128xf32>
    %365 = arith.truncf %364 : vector<18x128xf32> to vector<18x128xbf16>
    %366 = vector.extract_strided_slice %336 {offsets = [0, 1152], sizes = [18, 128], strides = [1, 1]} : vector<18x1536xf32> to vector<18x128xf32>
    %367 = arith.truncf %366 : vector<18x128xf32> to vector<18x128xbf16>
    %cst_127 = arith.constant dense<0.000000e+00> : vector<18x18xf32>
    %368 = tpu.matmul %363, %365, %cst_127 {dimension_numbers = #tpu.dot_dimension_numbers<[1], [1], [0], [0], [0, 0, 1, 0], [], []>} : vector<18x128xbf16>, vector<18x128xbf16>, vector<18x18xf32> -> vector<18x18xf32>
    %369 = arith.addf %368, %337 : vector<18x18xf32>
    %cst_128 = arith.constant dense<0xFF800000> : vector<18xf32>
    %370 = vector.multi_reduction <maximumf>, %369, %cst_128 [1] : vector<18x18xf32> to vector<18xf32>
    %371 = vector.shape_cast %370 : vector<18xf32> to vector<18x1xf32>
    %372 = vector.broadcast %371 : vector<18x1xf32> to vector<18x18xf32>
    %373 = arith.subf %369, %372 : vector<18x18xf32>
    %374 = math.exp %373 : vector<18x18xf32>
    %cst_129 = arith.constant dense<0.000000e+00> : vector<18xf32>
    %375 = vector.multi_reduction <add>, %374, %cst_129 [1] : vector<18x18xf32> to vector<18xf32>
    %376 = vector.shape_cast %375 : vector<18xf32> to vector<18x1xf32>
    %377 = tpu.reciprocal %376 {approx = true} : vector<18x1xf32> -> vector<18x1xf32>
    %378 = vector.broadcast %377 : vector<18x1xf32> to vector<18x18xf32>
    %379 = arith.mulf %374, %378 : vector<18x18xf32>
    %380 = arith.truncf %379 : vector<18x18xf32> to vector<18x18xbf16>
    %cst_130 = arith.constant dense<0.000000e+00> : vector<18x128xf32>
    %381 = tpu.matmul %380, %367, %cst_130 {dimension_numbers = #tpu.dot_dimension_numbers<[1], [0], [0], [1], [0, 0, 1, 1], [], []>} : vector<18x18xbf16>, vector<18x128xbf16>, vector<18x128xf32> -> vector<18x128xf32>
    %382 = vector.extract_strided_slice %336 {offsets = [0, 256], sizes = [18, 128], strides = [1, 1]} : vector<18x1536xf32> to vector<18x128xf32>
    %cst_131 = arith.constant 2.500000e-01 : f32
    %383 = vector.broadcast %cst_131 : f32 to vector<18x128xf32>
    %384 = arith.mulf %382, %383 : vector<18x128xf32>
    %385 = arith.truncf %384 : vector<18x128xf32> to vector<18x128xbf16>
    %386 = vector.extract_strided_slice %336 {offsets = [0, 768], sizes = [18, 128], strides = [1, 1]} : vector<18x1536xf32> to vector<18x128xf32>
    %387 = arith.truncf %386 : vector<18x128xf32> to vector<18x128xbf16>
    %388 = vector.extract_strided_slice %336 {offsets = [0, 1280], sizes = [18, 128], strides = [1, 1]} : vector<18x1536xf32> to vector<18x128xf32>
    %389 = arith.truncf %388 : vector<18x128xf32> to vector<18x128xbf16>
    %cst_132 = arith.constant dense<0.000000e+00> : vector<18x18xf32>
    %390 = tpu.matmul %385, %387, %cst_132 {dimension_numbers = #tpu.dot_dimension_numbers<[1], [1], [0], [0], [0, 0, 1, 0], [], []>} : vector<18x128xbf16>, vector<18x128xbf16>, vector<18x18xf32> -> vector<18x18xf32>
    %391 = arith.addf %390, %337 : vector<18x18xf32>
    %cst_133 = arith.constant dense<0xFF800000> : vector<18xf32>
    %392 = vector.multi_reduction <maximumf>, %391, %cst_133 [1] : vector<18x18xf32> to vector<18xf32>
    %393 = vector.shape_cast %392 : vector<18xf32> to vector<18x1xf32>
    %394 = vector.broadcast %393 : vector<18x1xf32> to vector<18x18xf32>
    %395 = arith.subf %391, %394 : vector<18x18xf32>
    %396 = math.exp %395 : vector<18x18xf32>
    %cst_134 = arith.constant dense<0.000000e+00> : vector<18xf32>
    %397 = vector.multi_reduction <add>, %396, %cst_134 [1] : vector<18x18xf32> to vector<18xf32>
    %398 = vector.shape_cast %397 : vector<18xf32> to vector<18x1xf32>
    %399 = tpu.reciprocal %398 {approx = true} : vector<18x1xf32> -> vector<18x1xf32>
    %400 = vector.broadcast %399 : vector<18x1xf32> to vector<18x18xf32>
    %401 = arith.mulf %396, %400 : vector<18x18xf32>
    %402 = arith.truncf %401 : vector<18x18xf32> to vector<18x18xbf16>
    %cst_135 = arith.constant dense<0.000000e+00> : vector<18x128xf32>
    %403 = tpu.matmul %402, %389, %cst_135 {dimension_numbers = #tpu.dot_dimension_numbers<[1], [0], [0], [1], [0, 0, 1, 1], [], []>} : vector<18x18xbf16>, vector<18x128xbf16>, vector<18x128xf32> -> vector<18x128xf32>
    %404 = vector.extract_strided_slice %336 {offsets = [0, 384], sizes = [18, 128], strides = [1, 1]} : vector<18x1536xf32> to vector<18x128xf32>
    %cst_136 = arith.constant 2.500000e-01 : f32
    %405 = vector.broadcast %cst_136 : f32 to vector<18x128xf32>
    %406 = arith.mulf %404, %405 : vector<18x128xf32>
    %407 = arith.truncf %406 : vector<18x128xf32> to vector<18x128xbf16>
    %408 = vector.extract_strided_slice %336 {offsets = [0, 896], sizes = [18, 128], strides = [1, 1]} : vector<18x1536xf32> to vector<18x128xf32>
    %409 = arith.truncf %408 : vector<18x128xf32> to vector<18x128xbf16>
    %410 = vector.extract_strided_slice %336 {offsets = [0, 1408], sizes = [18, 128], strides = [1, 1]} : vector<18x1536xf32> to vector<18x128xf32>
    %411 = arith.truncf %410 : vector<18x128xf32> to vector<18x128xbf16>
    %cst_137 = arith.constant dense<0.000000e+00> : vector<18x18xf32>
    %412 = tpu.matmul %407, %409, %cst_137 {dimension_numbers = #tpu.dot_dimension_numbers<[1], [1], [0], [0], [0, 0, 1, 0], [], []>} : vector<18x128xbf16>, vector<18x128xbf16>, vector<18x18xf32> -> vector<18x18xf32>
    %413 = arith.addf %412, %337 : vector<18x18xf32>
    %cst_138 = arith.constant dense<0xFF800000> : vector<18xf32>
    %414 = vector.multi_reduction <maximumf>, %413, %cst_138 [1] : vector<18x18xf32> to vector<18xf32>
    %415 = vector.shape_cast %414 : vector<18xf32> to vector<18x1xf32>
    %416 = vector.broadcast %415 : vector<18x1xf32> to vector<18x18xf32>
    %417 = arith.subf %413, %416 : vector<18x18xf32>
    %418 = math.exp %417 : vector<18x18xf32>
    %cst_139 = arith.constant dense<0.000000e+00> : vector<18xf32>
    %419 = vector.multi_reduction <add>, %418, %cst_139 [1] : vector<18x18xf32> to vector<18xf32>
    %420 = vector.shape_cast %419 : vector<18xf32> to vector<18x1xf32>
    %421 = tpu.reciprocal %420 {approx = true} : vector<18x1xf32> -> vector<18x1xf32>
    %422 = vector.broadcast %421 : vector<18x1xf32> to vector<18x18xf32>
    %423 = arith.mulf %418, %422 : vector<18x18xf32>
    %424 = arith.truncf %423 : vector<18x18xf32> to vector<18x18xbf16>
    %cst_140 = arith.constant dense<0.000000e+00> : vector<18x128xf32>
    %425 = tpu.matmul %424, %411, %cst_140 {dimension_numbers = #tpu.dot_dimension_numbers<[1], [0], [0], [1], [0, 0, 1, 1], [], []>} : vector<18x18xbf16>, vector<18x128xbf16>, vector<18x128xf32> -> vector<18x128xf32>
    %426 = tpu.concatenate %359, %381, %403, %425 in 1 : vector<18x128xf32>, vector<18x128xf32>, vector<18x128xf32>, vector<18x128xf32> -> vector<18x512xf32>
    %c0_141 = arith.constant 0 : index
    %c0_142 = arith.constant 0 : index
    %427 = vector.load %arg13[%c0_141, %c0_142] : memref<2x18xf32, #tpu.memory_space<vmem>>, vector<2x18xf32>
    %cst_143 = arith.constant dense<0.000000e+00> : vector<2x512xf32>
    %428 = tpu.matmul %427, %426, %cst_143 {dimension_numbers = #tpu.dot_dimension_numbers<[1], [0], [0], [1], [0, 0, 1, 1], [], []>} : vector<2x18xf32>, vector<18x512xf32>, vector<2x512xf32> -> vector<2x512xf32>
    %429 = arith.truncf %428 : vector<2x512xf32> to vector<2x512xbf16>
    %c0_144 = arith.constant 0 : index
    %c0_145 = arith.constant 0 : index
    %430 = vector.load %arg6[%c0_144, %c0_145] : memref<512x128xbf16, #tpu.memory_space<vmem>>, vector<512x128xbf16>
    %cst_146 = arith.constant dense<0.000000e+00> : vector<2x128xf32>
    %431 = tpu.matmul %429, %430, %cst_146 {dimension_numbers = #tpu.dot_dimension_numbers<[1], [0], [0], [1], [0, 0, 1, 1], [], []>} : vector<2x512xbf16>, vector<512x128xbf16>, vector<2x128xf32> -> vector<2x128xf32>
    %c0_147 = arith.constant 0 : index
    %c0_148 = arith.constant 0 : index
    %432 = vector.load %arg7[%c0_147, %c0_148] : memref<1x128xf32, #tpu.memory_space<vmem>>, vector<1x128xf32>
    %433 = vector.broadcast %432 : vector<1x128xf32> to vector<2x128xf32>
    %434 = arith.addf %431, %433 : vector<2x128xf32>
    %435 = arith.truncf %434 : vector<2x128xf32> to vector<2x128xbf16>
    %c0_149 = arith.constant 0 : index
    %c0_150 = arith.constant 0 : index
    %436 = vector.load %arg8[%c0_149, %c0_150] : memref<128x128xbf16, #tpu.memory_space<vmem>>, vector<128x128xbf16>
    %cst_151 = arith.constant dense<0.000000e+00> : vector<2x128xf32>
    %437 = tpu.matmul %435, %436, %cst_151 {dimension_numbers = #tpu.dot_dimension_numbers<[1], [0], [0], [1], [0, 0, 1, 1], [], []>} : vector<2x128xbf16>, vector<128x128xbf16>, vector<2x128xf32> -> vector<2x128xf32>
    %c0_152 = arith.constant 0 : index
    %c0_153 = arith.constant 0 : index
    %438 = vector.load %arg9[%c0_152, %c0_153] : memref<1x128xf32, #tpu.memory_space<vmem>>, vector<1x128xf32>
    %439 = vector.broadcast %438 : vector<1x128xf32> to vector<2x128xf32>
    %440 = arith.addf %437, %439 : vector<2x128xf32>
    %cst_154 = arith.constant 0.000000e+00 : f32
    %441 = vector.broadcast %cst_154 : f32 to vector<2x128xf32>
    %442 = arith.maximumf %440, %441 : vector<2x128xf32>
    %443 = arith.truncf %442 : vector<2x128xf32> to vector<2x128xbf16>
    %c0_155 = arith.constant 0 : index
    %c0_156 = arith.constant 0 : index
    %444 = vector.load %arg10[%c0_155, %c0_156] : memref<128x128xbf16, #tpu.memory_space<vmem>>, vector<128x128xbf16>
    %cst_157 = arith.constant dense<0.000000e+00> : vector<2x128xf32>
    %445 = tpu.matmul %443, %444, %cst_157 {dimension_numbers = #tpu.dot_dimension_numbers<[1], [0], [0], [1], [0, 0, 1, 1], [], []>} : vector<2x128xbf16>, vector<128x128xbf16>, vector<2x128xf32> -> vector<2x128xf32>
    %c0_158 = arith.constant 0 : index
    %c0_159 = arith.constant 0 : index
    %446 = vector.load %arg11[%c0_158, %c0_159] : memref<1x128xf32, #tpu.memory_space<vmem>>, vector<1x128xf32>
    %447 = vector.broadcast %446 : vector<1x128xf32> to vector<2x128xf32>
    %448 = arith.addf %445, %447 : vector<2x128xf32>
    %c0_160 = arith.constant 0 : index
    %c0_161 = arith.constant 0 : index
    %449 = vector.load %arg15[%c0_160, %c0_161] : memref<2x128xf32, #tpu.memory_space<vmem>>, vector<2x128xf32>
    tpu.vector_store %arg15[%c0_160, %c0_161], %448 {strides = array<i32>} : memref<2x128xf32, #tpu.memory_space<vmem>>, vector<2x128xf32>,
    return
  }
}

</mosaic_0001>

<bundles_post_ra>
// kernel: forward.1
= control target key start
LH: loop header
LB: loop body
LE: loop exit
PB: predicated region body
PF: predicated region fallthrough
CT: control target
= control target key end

     0   :  { %s7046_s0 = inlined_call_operand.vmem [shape: f32[18,32], index: 0, kind: input, shape index: {}]   ;;  %s7047_s1 = inlined_call_operand.hbm [shape: f32[32,512], index: 1, kind: input, shape index: {}]   ;;  %s7048_s2 = inlined_call_operand.vmem [shape: f32[128,512], index: 2, kind: input, shape index: {}]   ;;  %s7049_s3 = inlined_call_operand.vmem [shape: f32[1,512], index: 3, kind: input, shape index: {}]   ;;  %s7050_s4 = inlined_call_operand.hbm [shape: bf16[128,1536], index: 4, kind: input, shape index: {}]   ;;  %s7051_s5 = inlined_call_operand.vmem [shape: f32[1,1536], index: 5, kind: input, shape index: {}]   ;;  %s7052_s6 = inlined_call_operand.hbm [shape: bf16[512,128], index: 6, kind: input, shape index: {}]   ;;  %s7053_s7 = inlined_call_operand.vmem [shape: f32[1,128], index: 7, kind: input, shape index: {}]   ;;  %s7054_s8 = inlined_call_operand.hbm [shape: bf16[128,128], index: 8, kind: input, shape index: {}]   ;;  %s7055_s9 = inlined_call_operand.vmem [shape: f32[1,128], index: 9, kind: input, shape index: {}]   ;;  %s7056_s10 = inlined_call_operand.hbm [shape: bf16[128,128], index: 10, kind: input, shape index: {}]   ;;  %s7057_s11 = inlined_call_operand.vmem [shape: f32[1,128], index: 11, kind: input, shape index: {}]   ;;  %s7058_s12 = inlined_call_operand.vmem [shape: f32[18,18], index: 12, kind: input, shape index: {}]   ;;  %s7059_s13 = inlined_call_operand.vmem [shape: f32[2,18], index: 13, kind: input, shape index: {}]   ;;  %s7060_s14 = inlined_call_operand.vmem [shape: f32[18,18], index: 14, kind: input, shape index: {}]   ;;  %s7061_s15 = inlined_call_operand.vmem [shape: f32[2,128], index: 15, kind: output, shape index: {}]  }
   0x1   :  { %7075 = sst [smem:[#allocation19_spill]] %s7061_s15 }
   0x2   :  { %20 = vsyncpa [#allocation4], 0 }
   0x3   :  { %21 = vsyncpa [#allocation6], 0 }
   0x4   :  { %22 = vsyncpa [#allocation9], 0  ;;  %s5858_s18 = smov [#allocation5]   ;;  %s5742_s22 = scalar_lea.hbm %s7050_s4, 12288 }
   0x5   :  { %s46_s19 = sshll.u32 %s5858_s18, 4  ;;  %p5743_p0 = scmp.ne.s32.totalorder %s7050_s4, %s5742_s22  ;;  %s47_s19 = int_to_ptr.vmem [resolvable:$true] %s46_s19 }
   0x6   :  { %p5746_p1 = scmp.lt.u32.totalorder %s5742_s22, %s7050_s4 }
   0x8   :  { %p5748_p2 = pnand %p5746_p1, %p5743_p0 }
   0xa   :  { %5751 = shalt.err (!%p5748_p2)
}
   0xb   :  { %s5752_s27 = scalar_lea.vmem %s47_s19, 12288  ;;  %p5757_p4 = scmp.lt.s32.totalorder %s47_s19, %s47_s19 }
   0xc   :  { %p5753_p3 = scmp.ne.s32.totalorder %s47_s19, %s5752_s27  ;;  %p5758_p5 = scmp.lt.s32.totalorder %s5752_s27, %s5752_s27 }
   0xe   :  { %p5759_p6 = por %p5758_p5, %p5757_p4 }
  0x10   :  { %p5760_p7 = pnand %p5759_p6, %p5753_p3 }
  0x12   :  { %5763 = shalt.err (!%p5760_p7)
}
  0x13   :  { %s5859_s28 = smov 768   ;;  %s5860_s29 = smov 48  }
  0x14   :  { %52 = dma.hbm_to_vmem [thread:$0]  %s7050_s4, 12288, %s47_s19, [#allocation6], %s5859_s28, %s5859_s28, %s5860_s29  }
  0x15   :  { %s5861_s17 = smov [#allocation8]   ;;  %s5862_s20 = smov [#allocation3]  }
  0x16   :  { %s74_s18 = sshll.u32 %s5861_s17, 4  ;;  %s30_s21 = sshll.u32 %s5862_s20, 4  ;;  %s75_s18 = int_to_ptr.vmem [resolvable:$true] %s74_s18  ;;  %s31_s21 = int_to_ptr.vmem [resolvable:$true] %s30_s21 }
  0x17   :  { %s5764_s24 = scalar_lea.hbm %s7054_s8, 1024 }
  0x18   :  { %p5765_p8 = scmp.ne.s32.totalorder %s7054_s8, %s5764_s24  ;;  %p5768_p9 = scmp.lt.u32.totalorder %s5764_s24, %s7054_s8 }
  0x1a   :  { %p5770_p10 = pnand %p5768_p9, %p5765_p8 }
  0x1c   :  { %5773 = shalt.err (!%p5770_p10)
}
  0x1d   :  { %s5774_s4 = scalar_lea.vmem %s75_s18, 1024  ;;  %p5779_p12 = scmp.lt.s32.totalorder %s75_s18, %s75_s18 }
  0x1e   :  { %p5775_p11 = scmp.ne.s32.totalorder %s75_s18, %s5774_s4  ;;  %p5780_p13 = scmp.lt.s32.totalorder %s5774_s4, %s5774_s4 }
  0x20   :  { %p5781_p0 = por %p5780_p13, %p5779_p12 }
  0x22   :  { %p5782_p1 = pnand %p5781_p0, %p5775_p11 }
  0x24   :  { %5785 = shalt.err (!%p5782_p1)
}
  0x25   :  { %s5863_s19 = smov 64   ;;  %s5864_s28 = smov 4  }
  0x26   :  { %80 = dma.hbm_to_vmem [thread:$0]  %s7054_s8, 1024, %s75_s18, [#allocation9], %s5863_s19, %s5863_s19, %s5864_s28  }
  0x27   :  { %s5786_s17 = scalar_lea.hbm %s7047_s1, 2048 }
  0x28   :  { %p5787_p2 = scmp.ne.s32.totalorder %s7047_s1, %s5786_s17  ;;  %p5790_p3 = scmp.lt.u32.totalorder %s5786_s17, %s7047_s1 }
  0x2a   :  { %p5792_p4 = pnand %p5790_p3, %p5787_p2 }
  0x2c   :  { %5795 = shalt.err (!%p5792_p4)
}
  0x2d   :  { %s5796_s25 = scalar_lea.vmem %s31_s21, 2048  ;;  %p5801_p6 = scmp.lt.s32.totalorder %s31_s21, %s31_s21 }
  0x2e   :  { %p5797_p5 = scmp.ne.s32.totalorder %s31_s21, %s5796_s25  ;;  %p5802_p7 = scmp.lt.s32.totalorder %s5796_s25, %s5796_s25 }
  0x30   :  { %p5803_p8 = por %p5802_p7, %p5801_p6 }
  0x32   :  { %p5804_p9 = pnand %p5803_p8, %p5797_p5 }
  0x34   :  { %5807 = shalt.err (!%p5804_p9)
}
  0x35   :  { %s5865_s8 = smov 512   ;;  %s5866_s18 = smov 32  }
  0x36   :  { %36 = dma.hbm_to_vmem [thread:$0]  %s7047_s1, 2048, %s31_s21, [#allocation4], %s5865_s8, %s5865_s8, %s5866_s18  }
  0x37   :  { %s5867_s4 = smov [#allocation7]   ;;  %s5868_s30 = smov [#allocation10]  }
  0x38   :  { %s60_s29 = sshll.u32 %s5867_s4, 4  ;;  %s88_s15 = sshll.u32 %s5868_s30, 4  ;;  %s61_s29 = int_to_ptr.vmem [resolvable:$true] %s60_s29  ;;  %s89_s15 = int_to_ptr.vmem [resolvable:$true] %s88_s15 }
  0x39   :  { %s5808_s20 = scalar_lea.hbm %s7052_s6, 4096 }
  0x3a   :  { %p5809_p10 = scmp.ne.s32.totalorder %s7052_s6, %s5808_s20  ;;  %p5812_p11 = scmp.lt.u32.totalorder %s5808_s20, %s7052_s6 }
  0x3c   :  { %p5814_p12 = pnand %p5812_p11, %p5809_p10 }
  0x3e   :  { %5817 = shalt.err (!%p5814_p12)
}
  0x3f   :  { %s5818_s1 = scalar_lea.vmem %s61_s29, 4096  ;;  %p5823_p0 = scmp.lt.s32.totalorder %s61_s29, %s61_s29 }
  0x40   :  { %p5819_p13 = scmp.ne.s32.totalorder %s61_s29, %s5818_s1  ;;  %p5824_p1 = scmp.lt.s32.totalorder %s5818_s1, %s5818_s1 }
  0x42   :  { %p5825_p2 = por %p5824_p1, %p5823_p0 }
  0x44   :  { %p5826_p3 = pnand %p5825_p2, %p5819_p13 }
  0x46   :  { %5829 = shalt.err (!%p5826_p3)
}
  0x47   :  { %66 = dma.hbm_to_vmem [thread:$0]  %s7052_s6, 4096, %s61_s29, [#allocation6], %s5863_s19, %s5863_s19, %s5864_s28  }
  0x48   :  { %s5830_s27 = scalar_lea.hbm %s7056_s10, 1024 }
  0x49   :  { %p5831_p4 = scmp.ne.s32.totalorder %s7056_s10, %s5830_s27  ;;  %p5834_p5 = scmp.lt.u32.totalorder %s5830_s27, %s7056_s10 }
  0x4b   :  { %p5836_p6 = pnand %p5834_p5, %p5831_p4 }
  0x4d   :  { %5839 = shalt.err (!%p5836_p6)
}
  0x4e   :  { %s5840_s20 = scalar_lea.vmem %s89_s15, 1024  ;;  %p5845_p8 = scmp.lt.s32.totalorder %s89_s15, %s89_s15 }
  0x4f   :  { %p5841_p7 = scmp.ne.s32.totalorder %s89_s15, %s5840_s20  ;;  %p5846_p9 = scmp.lt.s32.totalorder %s5840_s20, %s5840_s20 }
  0x51   :  { %p5847_p10 = por %p5846_p9, %p5845_p8 }
  0x53   :  { %p5848_p11 = pnand %p5847_p10, %p5841_p7 }
  0x55   :  { %5851 = shalt.err (!%p5848_p11)
}
  0x56   :  { %94 = dma.hbm_to_vmem [thread:$0]  %s7056_s10, 1024, %s89_s15, [#allocation9], %s5863_s19, %s5863_s19, %s5864_s28  }
  0x57   :  { %5852 = dma.done.wait [#allocation4], 2048  }
  0x58   :  { %5853 = vsyncadd [#allocation4], 4294965248 }
  0x59   :  { %5854 = dma.done.wait [#allocation6], 16384  }
  0x5a   :  { %5855 = vsyncadd [#allocation6], 4294950912 }
  0x5b   :  { %5856 = dma.done.wait [#allocation9], 2048  }
  0x5c   :  { %5857 = vsyncadd [#allocation9], 4294965248  ;;  %v7063_v0 = vmov 0.0   ;;  %v123_v1 = vld [vmem:[#allocation3 + $0x8] sm:$0xff]  ;;  %v125_v3 = vld [vmem:[#allocation3 + $0x18] sm:$0xff]  ;;  %vm160_vm0 = vcmask 261120  }
  0x5d   :  { %234 = vmatprep.mubr.f32.mxu0 %v7063_v0  ;;  %317 = vmatprep.mubr.f32.mxu1 %v7063_v0  ;;  %v127_v2 = vld [vmem:[#allocation3 + $0x28] sm:$0xff]  ;;  %v129_v5 = vld [vmem:[#allocation3 + $0x38] sm:$0xff]  ;;  %v122_v6 = vld [vmem:[#allocation3] sm:$0xff]  ;;  %vm5871_vm1 = vmmov 0   ;;  %vm2015_vm2 = vcmask 1041408   ;;  %vm2005_vm3 = vcmask 146432  }
  0x5e   :  { %v4782_v4 = vpack.c.bf16 %v127_v2, %v123_v1  ;;  %v126_v7 = vld [vmem:[#allocation3 + $0x20] sm:$0xff]  ;;  %v4790_v8 = vpack.c.bf16 %v129_v5, %v125_v3  ;;  %v124_v10 = vld [vmem:[#allocation3 + $0x10] sm:$0xff]  ;;  %v131_v12 = vld [vmem:[#allocation3 + $0x48] sm:$0xff]  ;;  %vm3155_vm5 = vcmask 1040384   ;;  %vm3119_vm6 = vcmask 140288   ;;  %s7088_s23 = sld [smem:[#allocation19_spill]] }
  0x5f   :  { %v4784_v9 = vpack.c.bf16 %v126_v7, %v122_v6  ;;  %v128_v11 = vld [vmem:[#allocation3 + $0x30] sm:$0xff]  ;;  %v135_v14 = vld [vmem:[#allocation3 + $0x68] sm:$0xff]  ;;  %v133_v15 = vld [vmem:[#allocation3 + $0x58] sm:$0xff] }
  0x60   :  { %4783 = vmatprep.subr.bf16.mxu0 %v4782_v4  ;;  %v4792_v13 = vpack.c.bf16 %v128_v11, %v124_v10  ;;  %v137_v16 = vld [vmem:[#allocation3 + $0x78] sm:$0xff]  ;;  %4791 = vmatprep.subr.bf16.mxu1 %v4790_v8  ;;  %v4786_v17 = vpack.c.bf16 %v135_v14, %v131_v12  ;;  %v130_v19 = vld [vmem:[#allocation3 + $0x40] sm:$0xff]  ;;  %v132_v21 = vld [vmem:[#allocation3 + $0x50] sm:$0xff] }
  0x61   :  { %4785 = vmatpush1.bf16.msra.mxu0 %v4784_v9  ;;  %v4794_v18 = vpack.c.bf16 %v137_v16, %v133_v15  ;;  %v134_v20 = vld [vmem:[#allocation3 + $0x60] sm:$0xff]  ;;  %v136_v23 = vld [vmem:[#allocation3 + $0x70] sm:$0xff]  ;;  %v119_v26 = vld [vmem:[%s7046_s0] sm:$0xff] }
  0x62   :  { %4793 = vmatpush1.bf16.msra.mxu1 %v4792_v13  ;;  %v4788_v22 = vpack.c.bf16 %v134_v20, %v130_v19  ;;  %v337_v24 = vld [vmem:[%s7048_s2 + $0x8] sm:$0xff]  ;;  %4787 = vmatprep.subr.bf16.mxu0 %v4786_v17  ;;  %v4796_v25 = vpack.c.bf16 %v136_v23, %v132_v21  ;;  %v339_v28 = vld [vmem:[%s7048_s2 + $0x18] sm:$0xff]  ;;  %v336_v32 = vld [vmem:[%s7048_s2] sm:$0xff] }
  0x63   :  { %4795 = vmatprep.subr.bf16.mxu1 %v4794_v18  ;;  %v341_v27 = vld [vmem:[%s7048_s2 + $0x28] sm:$0xff]  ;;  %v343_v29 = vld [vmem:[%s7048_s2 + $0x38] sm:$0xff]  ;;  %v340_v33 = vld [vmem:[%s7048_s2 + $0x20] sm:$0xff] }
  0x64   :  { %v6039_v30 = vpack.c.bf16 %v341_v27, %v337_v24  ;;  %v6041_v31 = vpack.c.bf16 %v343_v29, %v339_v28  ;;  %v338_v34 = vld [vmem:[%s7048_s2 + $0x10] sm:$0xff]  ;;  %v6052_v35 = vpack.c.bf16 %v340_v33, %v336_v32  ;;  %v345_v37 = vld [vmem:[%s7048_s2 + $0x48] sm:$0xff]  ;;  %v347_v41 = vld [vmem:[%s7048_s2 + $0x58] sm:$0xff] }
  0x65   :  { %4789 = vmatpush1.bf16.msra.mxu0 %v4788_v22  ;;  %v342_v36 = vld [vmem:[%s7048_s2 + $0x30] sm:$0xff]  ;;  %v349_v38 = vld [vmem:[%s7048_s2 + $0x68] sm:$0xff]  ;;  %v351_v42 = vld [vmem:[%s7048_s2 + $0x78] sm:$0xff] }
  0x66   :  { %4797 = vmatpush1.bf16.msra.mxu1 %v4796_v25  ;;  %4799 = vmatprep.subr.bf16.mxu0 %v6039_v30  ;;  %v6064_v39 = vpack.c.bf16 %v342_v36, %v338_v34  ;;  %v6066_v40 = vpack.c.bf16 %v349_v38, %v345_v37  ;;  %v344_v43 = vld [vmem:[%s7048_s2 + $0x40] sm:$0xff]  ;;  %v6078_v44 = vpack.c.bf16 %v351_v42, %v347_v41  ;;  %v346_v46 = vld [vmem:[%s7048_s2 + $0x50] sm:$0xff]  ;;  %v353_v48 = vld [vmem:[%s7048_s2 + $0x88] sm:$0xff] }
  0x67   :  { %4831 = vmatprep.subr.bf16.mxu1 %v6041_v31  ;;  %v348_v45 = vld [vmem:[%s7048_s2 + $0x60] sm:$0xff]  ;;  %v350_v47 = vld [vmem:[%s7048_s2 + $0x70] sm:$0xff]  ;;  %v357_v49 = vld [vmem:[%s7048_s2 + $0xa8] sm:$0xff] }
  0x68   :  { %4392 = vmatmul.mubr.msk.f32.vlgmr.msra.gmra.mrb[0].mxu0 %vm160_vm0, %v119_v26  ;;  %v355_v50 = vld [vmem:[%s7048_s2 + $0x98] sm:$0xff]  ;;  %v6101_v51 = vpack.c.bf16 %v348_v45, %v344_v43  ;;  %v6108_v53 = vpack.c.bf16 %v350_v47, %v346_v46  ;;  %v6110_v54 = vpack.c.bf16 %v357_v49, %v353_v48  ;;  %v352_v55 = vld [vmem:[%s7048_s2 + $0x80] sm:$0xff]  ;;  %v354_v57 = vld [vmem:[%s7048_s2 + $0x90] sm:$0xff] }
  0x69   :  { %4395 = vmatmul.mubr.msk.f32.vlgmr.msra.gmra.mrb[0].mxu1 %vm160_vm0, %v119_v26  ;;  %4801 = vmatpush1.bf16.msra.mxu0 %v6052_v35  ;;  %v359_v52 = vld [vmem:[%s7048_s2 + $0xb8] sm:$0xff]  ;;  %v356_v56 = vld [vmem:[%s7048_s2 + $0xa0] sm:$0xff]  ;;  %v358_v59 = vld [vmem:[%s7048_s2 + $0xb0] sm:$0xff] }
  0x6a   :  { %4833 = vmatpush1.bf16.msra.mxu1 %v6064_v39  ;;  %4803 = vmatprep.subr.bf16.mxu0 %v6066_v40  ;;  %v6122_v58 = vpack.c.bf16 %v359_v52, %v355_v50  ;;  %v361_v60 = vld [vmem:[%s7048_s2 + $0xc8] sm:$0xff]  ;;  %v363_v62 = vld [vmem:[%s7048_s2 + $0xd8] sm:$0xff]  ;;  %v6142_v1 = vpack.c.bf16 %v356_v56, %v352_v55  ;;  %v6146_v2 = vpack.c.bf16 %v358_v59, %v354_v57  ;;  %v360_v4 = vld [vmem:[%s7048_s2 + $0xc0] sm:$0xff] }
  0x6b   :  { %4835 = vmatprep.subr.bf16.mxu1 %v6078_v44  ;;  %v365_v61 = vld [vmem:[%s7048_s2 + $0xe8] sm:$0xff]  ;;  %240 = vmatprep.mubr.f32.mxu0 %v7063_v0  ;;  %v367_v63 = vld [vmem:[%s7048_s2 + $0xf8] sm:$0xff]  ;;  %v364_v5 = vld [vmem:[%s7048_s2 + $0xe0] sm:$0xff] }
  0x6c   :  { %323 = vmatprep.mubr.f32.mxu1 %v7063_v0  ;;  %v6148_v3 = vpack.c.bf16 %v365_v61, %v361_v60  ;;  %v362_v6 = vld [vmem:[%s7048_s2 + $0xd0] sm:$0xff]  ;;  %v6160_v7 = vpack.c.bf16 %v367_v63, %v363_v62  ;;  %v369_v9 = vld [vmem:[%s7048_s2 + $0x108] sm:$0xff]  ;;  %v371_v11 = vld [vmem:[%s7048_s2 + $0x118] sm:$0xff]  ;;  %v6178_v13 = vpack.c.bf16 %v364_v5, %v360_v4 }
  0x6d   :  { %4805 = vmatpush1.bf16.msra.mxu0 %v6101_v51  ;;  %v366_v8 = vld [vmem:[%s7048_s2 + $0xf0] sm:$0xff]  ;;  %v373_v10 = vld [vmem:[%s7048_s2 + $0x128] sm:$0xff]  ;;  %v375_v12 = vld [vmem:[%s7048_s2 + $0x138] sm:$0xff] }
  0x6e   :  { %4837 = vmatpush1.bf16.msra.mxu1 %v6108_v53  ;;  %4807 = vmatprep.subr.bf16.mxu0 %v6110_v54  ;;  %v368_v14 = vld [vmem:[%s7048_s2 + $0x100] sm:$0xff]  ;;  %v6185_v15 = vpack.c.bf16 %v366_v8, %v362_v6  ;;  %v6187_v16 = vpack.c.bf16 %v373_v10, %v369_v9  ;;  %v370_v18 = vld [vmem:[%s7048_s2 + $0x110] sm:$0xff]  ;;  %v120_v19 = vld [vmem:[%s7046_s0 + $0x8] sm:$0xff]  ;;  %v6199_v20 = vpack.c.bf16 %v375_v12, %v371_v11 }
  0x6f   :  { %4839 = vmatprep.subr.bf16.mxu1 %v6122_v58  ;;  %v372_v17 = vld [vmem:[%s7048_s2 + $0x120] sm:$0xff]  ;;  %v374_v21 = vld [vmem:[%s7048_s2 + $0x130] sm:$0xff]  ;;  %v377_v22 = vld [vmem:[%s7048_s2 + $0x148] sm:$0xff]  ;;  %4393 = vmatmul.mubr.msk.f32.gmra.mrb[2].mxu0 %vm160_vm0, %v120_v19 }
  0x70   :  { %v381_v23 = vld [vmem:[%s7048_s2 + $0x168] sm:$0xff]  ;;  %v379_v24 = vld [vmem:[%s7048_s2 + $0x158] sm:$0xff]  ;;  %4396 = vmatmul.mubr.msk.f32.gmra.mrb[2].mxu1 %vm160_vm0, %v120_v19  ;;  %246 = vmatprep.mubr.f32.mxu0 %v7063_v0  ;;  %v6220_v26 = vpack.c.bf16 %v372_v17, %v368_v14  ;;  %v376_v27 = vld [vmem:[%s7048_s2 + $0x140] sm:$0xff]  ;;  %v6231_v29 = vpack.c.bf16 %v374_v21, %v370_v18 }
  0x71   :  { %4809 = vmatpush1.bf16.msra.mxu0 %v6142_v1  ;;  %v383_v25 = vld [vmem:[%s7048_s2 + $0x178] sm:$0xff]  ;;  %329 = vmatprep.mubr.f32.mxu1 %v7063_v0  ;;  %v121_v28 = vld [vmem:[%s7046_s0 + $0x10] sm:$0x3]  ;;  %v6233_v32 = vpack.c.bf16 %v381_v23, %v377_v22  ;;  %v380_v33 = vld [vmem:[%s7048_s2 + $0x160] sm:$0xff] }
  0x72   :  { %4841 = vmatpush1.bf16.msra.mxu1 %v6146_v2  ;;  %4811 = vmatprep.subr.bf16.mxu0 %v6148_v3  ;;  %v378_v34 = vld [vmem:[%s7048_s2 + $0x150] sm:$0xff]  ;;  %v6245_v37 = vpack.c.bf16 %v383_v25, %v379_v24  ;;  %v385_v38 = vld [vmem:[%s7048_s2 + $0x188] sm:$0xff]  ;;  %v387_v42 = vld [vmem:[%s7048_s2 + $0x198] sm:$0xff]  ;;  %v6269_v47 = vpack.c.bf16 %v380_v33, %v376_v27  ;;  %v7062_v24 = vlaneseq }
  0x73   :  { %4843 = vmatprep.subr.bf16.mxu1 %v6160_v7  ;;  %v382_v36 = vld [vmem:[%s7048_s2 + $0x170] sm:$0xff]  ;;  %v389_v41 = vld [vmem:[%s7048_s2 + $0x1a8] sm:$0xff]  ;;  %4394 = vmatmul.mubr.msk.f32.gmra.mrb[4].mxu0 %vm160_vm0, %v121_v28  ;;  %v391_v43 = vld [vmem:[%s7048_s2 + $0x1b8] sm:$0xff] }
  0x74   :  { %v384_v45 = vld [vmem:[%s7048_s2 + $0x180] sm:$0xff]  ;;  %4397 = vmatmul.mubr.msk.f32.gmra.mrb[4].mxu1 %vm160_vm0, %v121_v28  ;;  %464 = vmatprep.mubr.f32.mxu0 %v7063_v0  ;;  %v386_v48 = vld [vmem:[%s7048_s2 + $0x190] sm:$0xff]  ;;  %v393_v50 = vld [vmem:[%s7048_s2 + $0x1c8] sm:$0xff]  ;;  %v6286_v55 = vpack.c.bf16 %v382_v36, %v378_v34  ;;  %v6288_v56 = vpack.c.bf16 %v389_v41, %v385_v38  ;;  %v6297_v60 = vpack.c.bf16 %v391_v43, %v387_v42  ;;  %v6380_v25 = vshrl.u32 %v7062_v24, 7 }
  0x75   :  { %4813 = vmatpush1.bf16.msra.mxu0 %v6178_v13  ;;  %v388_v46 = vld [vmem:[%s7048_s2 + $0x1a0] sm:$0xff]  ;;  %v390_v49 = vld [vmem:[%s7048_s2 + $0x1b0] sm:$0xff]  ;;  %v397_v52 = vld [vmem:[%s7048_s2 + $0x1e8] sm:$0xff]  ;;  %535 = vmatprep.mubr.f32.mxu1 %v7063_v0 }
  0x76   :  { %4845 = vmatpush1.bf16.msra.mxu1 %v6185_v15  ;;  %4815 = vmatprep.subr.bf16.mxu0 %v6187_v16  ;;  %v395_v57 = vld [vmem:[%s7048_s2 + $0x1d8] sm:$0xff]  ;;  %v392_v61 = vld [vmem:[%s7048_s2 + $0x1c0] sm:$0xff]  ;;  %v6306_v63 = vpack.c.bf16 %v388_v46, %v384_v45  ;;  %v394_v4 = vld [vmem:[%s7048_s2 + $0x1d0] sm:$0xff]  ;;  %v6316_v6 = vpack.c.bf16 %v390_v49, %v386_v48  ;;  %v6318_v8 = vpack.c.bf16 %v397_v52, %v393_v50  ;;  %v6383_v27 = vsub.s32 0, %v6380_v25 }
  0x77   :  { %4847 = vmatprep.subr.bf16.mxu1 %v6199_v20  ;;  %v399_v59 = vld [vmem:[%s7048_s2 + $0x1f8] sm:$0xff]  ;;  %v396_v62 = vld [vmem:[%s7048_s2 + $0x1e0] sm:$0xff]  ;;  %v398_v5 = vld [vmem:[%s7048_s2 + $0x1f0] sm:$0xff]  ;;  %7076 = vst [vmem:[#allocation14_spill] sm:$0xff] %v6380_v25  ;;  %v6389_v33 = vsub.s32 1, %v6380_v25  ;;  %v6395_v36 = vsub.s32 2, %v6380_v25 }
  0x78   :  { %v6321_v9 = vpack.c.bf16 %v399_v59, %v395_v57  ;;  %v6324_v10 = vpack.c.bf16 %v396_v62, %v392_v61  ;;  %v6328_v11 = vpack.c.bf16 %v398_v5, %v394_v4  ;;  %7077 = vst [vmem:[#allocation15_spill] sm:$0xff] %v6383_v27  ;;  %v138_v28 = vld [vmem:[%s7049_s3] sm:$0xf]  ;;  %v6407_v43 = vsub.s32 3, %v6380_v25 }
  0x79   :  { %4817 = vmatpush1.bf16.msra.mxu0 %v6220_v26  ;;  %7078 = vst [vmem:[#allocation16_spill] sm:$0xff] %v6389_v33  ;;  %v6392_v34 = vrot.slane %v138_v28, %v6383_v27  ;;  %7079 = vst [vmem:[#allocation17_spill] sm:$0xff] %v6395_v36  ;;  %v6398_v38 = vrot.slane %v138_v28, %v6389_v33  ;;  %v6404_v42 = vrot.slane %v138_v28, %v6395_v36 }
  0x7a   :  { %4849 = vmatpush1.bf16.msra.mxu1 %v6231_v29  ;;  %4819 = vmatprep.subr.bf16.mxu0 %v6233_v32  ;;  %7080 = vst [vmem:[#allocation18_spill] sm:$0xff] %v6407_v43  ;;  %v6418_v61 = vrot.slane %v138_v28, %v6407_v43 }
  0x7b   :  { %4851 = vmatprep.subr.bf16.mxu1 %v6245_v37 }
  0x7d   :  { %4821 = vmatpush1.bf16.msra.mxu0 %v6269_v47 }
  0x7e   :  { %4853 = vmatpush1.bf16.msra.mxu1 %v6286_v55  ;;  %4823 = vmatprep.subr.bf16.mxu0 %v6288_v56 }
  0x7f   :  { %4855 = vmatprep.subr.bf16.mxu1 %v6297_v60 }
  0x81   :  { %4825 = vmatpush1.bf16.msra.mxu0 %v6306_v63 }
  0x82   :  { %4857 = vmatpush1.bf16.msra.mxu1 %v6316_v6  ;;  %4827 = vmatprep.subr.bf16.mxu0 %v6318_v8 }
  0x83   :  { %4859 = vmatprep.subr.bf16.mxu1 %v6321_v9 }
  0x85   :  { %4829 = vmatpush1.bf16.msra.mxu0 %v6324_v10 }
  0x86   :  { %4861 = vmatpush1.bf16.msra.mxu1 %v6328_v11  ;;  %4863 = vmatprep.subr.bf16.mxu0 %v6039_v30 }
  0x87   :  { %4895 = vmatprep.subr.bf16.mxu1 %v6041_v31 }
  0x88   :  { %465 = vmatmul.mubr.f32.vlgmr.msra.gmra.mrb[6].mxu0 %v7063_v0 }
  0x89   :  { %536 = vmatmul.mubr.f32.vlgmr.msra.gmra.mrb[6].mxu1 %v7063_v0  ;;  %4865 = vmatpush1.bf16.msra.mxu0 %v6052_v35 }
  0x8a   :  { %4897 = vmatpush1.bf16.msra.mxu1 %v6064_v39  ;;  %4867 = vmatprep.subr.bf16.mxu0 %v6066_v40 }
  0x8b   :  { %4899 = vmatprep.subr.bf16.mxu1 %v6078_v44  ;;  %629 = vmatprep.mubr.f32.mxu0 %v7063_v0 }
  0x8c   :  { %700 = vmatprep.mubr.f32.mxu1 %v7063_v0 }
  0x8d   :  { %4869 = vmatpush1.bf16.msra.mxu0 %v6101_v51 }
  0x8e   :  { %4901 = vmatpush1.bf16.msra.mxu1 %v6108_v53  ;;  %4871 = vmatprep.subr.bf16.mxu0 %v6110_v54 }
  0x8f   :  { %4903 = vmatprep.subr.bf16.mxu1 %v6122_v58 }
  0x91   :  { %4873 = vmatpush1.bf16.msra.mxu0 %v6142_v1 }
  0x92   :  { %4905 = vmatpush1.bf16.msra.mxu1 %v6146_v2  ;;  %4875 = vmatprep.subr.bf16.mxu0 %v6148_v3 }
  0x93   :  { %4907 = vmatprep.subr.bf16.mxu1 %v6160_v7 }
  0x95   :  { %4877 = vmatpush1.bf16.msra.mxu0 %v6178_v13 }
  0x96   :  { %4909 = vmatpush1.bf16.msra.mxu1 %v6185_v15  ;;  %4879 = vmatprep.subr.bf16.mxu0 %v6187_v16 }
  0x97   :  { %4911 = vmatprep.subr.bf16.mxu1 %v6199_v20 }
  0x99   :  { %4881 = vmatpush1.bf16.msra.mxu0 %v6220_v26 }
  0x9a   :  { %4913 = vmatpush1.bf16.msra.mxu1 %v6231_v29  ;;  %4883 = vmatprep.subr.bf16.mxu0 %v6233_v32 }
  0x9b   :  { %4915 = vmatprep.subr.bf16.mxu1 %v6245_v37 }
  0x9d   :  { %4885 = vmatpush1.bf16.msra.mxu0 %v6269_v47 }
  0x9e   :  { %4917 = vmatpush1.bf16.msra.mxu1 %v6286_v55  ;;  %4887 = vmatprep.subr.bf16.mxu0 %v6288_v56 }
  0x9f   :  { %4919 = vmatprep.subr.bf16.mxu1 %v6297_v60 }
  0xa1   :  { %4889 = vmatpush1.bf16.msra.mxu0 %v6306_v63 }
  0xa2   :  { %4921 = vmatpush1.bf16.msra.mxu1 %v6316_v6  ;;  %4891 = vmatprep.subr.bf16.mxu0 %v6318_v8 }
  0xa3   :  { %4923 = vmatprep.subr.bf16.mxu1 %v6321_v9 }
  0xa5   :  { %4893 = vmatpush1.bf16.msra.mxu0 %v6324_v10 }
  0xa6   :  { %4925 = vmatpush1.bf16.msra.mxu1 %v6328_v11  ;;  %4927 = vmatprep.subr.bf16.mxu0 %v6039_v30 }
  0xa7   :  { %4959 = vmatprep.subr.bf16.mxu1 %v6041_v31 }
 0x13b   :  { %v236_v12 = vpop.f32.mrb[0].mxu0 }
 0x13c   :  { %v238_v14 = vpop.f32.mrb[1].mxu0  ;;  %v319_v17 = vpop.f32.mrb[0].mxu1  ;;  %v6401_v41 = vadd.f32 %v236_v12, %v6392_v34 }
 0x13d   :  { %v321_v18 = vpop.f32.mrb[1].mxu1  ;;  %v6410_v45 = vadd.f32 %v238_v14, %v6398_v38  ;;  %v6415_v59 = vadd.f32 %v319_v17, %v6404_v42 }
 0x13e   :  { %v6422_v12 = vadd.f32 %v321_v18, %v6418_v61 }
 0x142   :  { %v6371_v19 = vpop.f32.mrb[2].mxu0 }
 0x143   :  { %v6373_v21 = vpop.f32.mrb[3].mxu0  ;;  %v6375_v22 = vpop.f32.mrb[2].mxu1 }
 0x144   :  { %v6377_v23 = vpop.f32.mrb[3].mxu1 }
 0x15b   :  { %v466_v46 = vpop.f32.mrb[6].mxu0 }
 0x15c   :  { %v542_v48 = vadd.f32 %v466_v46, %v6401_v41  ;;  %v537_v49 = vpop.f32.mrb[6].mxu1  ;;  %v468_v50 = vpop.f32.mrb[7].mxu0 }
 0x15d   :  { %v543_v52 = vadd.f32 %v468_v50, %v6410_v45  ;;  %v539_v57 = vpop.f32.mrb[7].mxu1  ;;  %v544_v5 = vadd.f32 %v537_v49, %v6415_v59 }
 0x15e   :  { %v546_v62 = vmul.f32 0.5, %v542_v48  ;;  %v545_v14 = vadd.f32 %v539_v57, %v6422_v12 }
 0x15f   :  { %v550_v4 = vmul.f32 0.5, %v543_v52 }
 0x160   :  { %5604 = vtanh.f32 %v546_v62  ;;  %v555_v46 = vmul.f32 0.5, %v545_v14 }
 0x161   :  { %5606 = vtanh.f32 %v550_v4 }
 0x162   :  { %5608 = vtanh.f32 %v544_v5 }
 0x163   :  { %5610 = vtanh.f32 %v555_v46 }
 0x16a   :  { %v5605_v50 = vpop.eup %5604 }
 0x16b   :  { %v5607_v24 = vpop.eup %5606  ;;  %v548_v17 = vmul.f32 0.5, %v5605_v50 }
 0x16c   :  { %v552_v0 = vmul.f32 0.5, %v5607_v24  ;;  %v5609_v25 = vpop.eup %5608 }
 0x16d   :  { %v549_v28 = vadd.f32 0.5, %v548_v17  ;;  %v5611_v18 = vpop.eup %5610 }
 0x16e   :  { %v553_v48 = vadd.f32 0.5, %v552_v0  ;;  %v557_v49 = vmul.f32 0.5, %v5611_v18  ;;  %v7081_v0 = vmov 0.0  }
 0x16f   :  { %v560_v52 = vmul.f32 %v5609_v25, %v549_v28 }
 0x170   :  { %v559_v62 = vmul.f32 0.0, %v553_v48  ;;  %v558_v4 = vadd.f32 0.5, %v557_v49 }
 0x172   :  { %v6425_v43 = vadd.f32 %v560_v52, %v559_v62 }
 0x174   :  { %5612 = vtanh.f32 %v6425_v43 }
 0x17e   :  { %v5613_v5 = vpop.eup %5612 }
 0x17f   :  { %v563_v57 = vmul.f32 %v5613_v5, %v558_v4 }
 0x181   :  { %564 = vst [vmem:[#allocation2] sm:$0x3] %v563_v57  ;;  %630 = vmatmul.mubr.f32.vlgmr.msra.gmra.mrb[8].mxu0 %v563_v57  ;;  %701 = vmatmul.mubr.f32.vlgmr.msra.gmra.mrb[8].mxu1 %v563_v57 }
 0x182   :  { %4929 = vmatpush1.bf16.msra.mxu0 %v6052_v35  ;;  %4961 = vmatpush1.bf16.msra.mxu1 %v6064_v39 }
 0x183   :  { %4931 = vmatprep.subr.bf16.mxu0 %v6066_v40  ;;  %4963 = vmatprep.subr.bf16.mxu1 %v6078_v44 }
 0x184   :  { %812 = vmatprep.mubr.f32.mxu0 %v7081_v0  ;;  %883 = vmatprep.mubr.f32.mxu1 %v7081_v0 }
 0x186   :  { %4933 = vmatpush1.bf16.msra.mxu0 %v6101_v51  ;;  %4965 = vmatpush1.bf16.msra.mxu1 %v6108_v53 }
 0x187   :  { %4935 = vmatprep.subr.bf16.mxu0 %v6110_v54  ;;  %4967 = vmatprep.subr.bf16.mxu1 %v6122_v58 }
 0x18a   :  { %4937 = vmatpush1.bf16.msra.mxu0 %v6142_v1  ;;  %4969 = vmatpush1.bf16.msra.mxu1 %v6146_v2 }
 0x18b   :  { %4939 = vmatprep.subr.bf16.mxu0 %v6148_v3  ;;  %4971 = vmatprep.subr.bf16.mxu1 %v6160_v7 }
 0x18e   :  { %4941 = vmatpush1.bf16.msra.mxu0 %v6178_v13  ;;  %4973 = vmatpush1.bf16.msra.mxu1 %v6185_v15 }
 0x18f   :  { %4943 = vmatprep.subr.bf16.mxu0 %v6187_v16  ;;  %4975 = vmatprep.subr.bf16.mxu1 %v6199_v20 }
 0x192   :  { %4945 = vmatpush1.bf16.msra.mxu0 %v6220_v26  ;;  %4977 = vmatpush1.bf16.msra.mxu1 %v6231_v29 }
 0x193   :  { %4947 = vmatprep.subr.bf16.mxu0 %v6233_v32  ;;  %4979 = vmatprep.subr.bf16.mxu1 %v6245_v37 }
 0x196   :  { %4949 = vmatpush1.bf16.msra.mxu0 %v6269_v47  ;;  %4981 = vmatpush1.bf16.msra.mxu1 %v6286_v55 }
 0x197   :  { %4951 = vmatprep.subr.bf16.mxu0 %v6288_v56  ;;  %4983 = vmatprep.subr.bf16.mxu1 %v6297_v60 }
 0x19a   :  { %4953 = vmatpush1.bf16.msra.mxu0 %v6306_v63  ;;  %4985 = vmatpush1.bf16.msra.mxu1 %v6316_v6 }
 0x19b   :  { %4955 = vmatprep.subr.bf16.mxu0 %v6318_v8  ;;  %4987 = vmatprep.subr.bf16.mxu1 %v6321_v9 }
 0x19e   :  { %4957 = vmatpush1.bf16.msra.mxu0 %v6324_v10  ;;  %4989 = vmatpush1.bf16.msra.mxu1 %v6328_v11 }
 0x19f   :  { %4991 = vmatprep.subr.bf16.mxu0 %v6039_v30  ;;  %5023 = vmatprep.subr.bf16.mxu1 %v6041_v31 }
 0x254   :  { %v631_v24 = vpop.f32.mrb[8].mxu0  ;;  %v702_v25 = vpop.f32.mrb[8].mxu1 }
 0x255   :  { %v711_v14 = vrot.slane %v631_v24, 6  ;;  %v633_v46 = vpop.f32.mrb[9].mxu0  ;;  %v704_v50 = vpop.f32.mrb[9].mxu1  ;;  %v713_v48 = vrot.slane %v702_v25, 6 }
 0x256   :  { %v712_v17 = vrot.slane %v633_v46, 6  ;;  %v714_v4 = vrot.slane %v704_v50, 6 }
 0x257   :  { %v719_v28 = vadd.f32 %v711_v14, %v6401_v41  ;;  %v721_v49 = vadd.f32 %v713_v48, %v6415_v59 }
 0x258   :  { %v720_v52 = vadd.f32 %v712_v17, %v6410_v45  ;;  %v722_v5 = vadd.f32 %v714_v4, %v6422_v12  ;;  %v737_v17 = vrot.slane %v6425_v43, 6 }
 0x259   :  { %v723_v62 = vmul.f32 0.5, %v719_v28 }
 0x25a   :  { %v727_v18 = vmul.f32 0.5, %v720_v52  ;;  %v732_v57 = vmul.f32 0.5, %v722_v5 }
 0x25b   :  { %5614 = vtanh.f32 %v723_v62 }
 0x25c   :  { %5616 = vtanh.f32 %v727_v18 }
 0x25d   :  { %5618 = vtanh.f32 %v721_v49 }
 0x25e   :  { %5620 = vtanh.f32 %v732_v57 }
 0x265   :  { %v5615_v24 = vpop.eup %5614 }
 0x266   :  { %v5617_v33 = vpop.eup %5616  ;;  %v725_v36 = vmul.f32 0.5, %v5615_v24 }
 0x267   :  { %v729_v46 = vmul.f32 0.5, %v5617_v33  ;;  %v5619_v25 = vpop.eup %5618 }
 0x268   :  { %v726_v14 = vadd.f32 0.5, %v725_v36  ;;  %v5621_v50 = vpop.eup %5620 }
 0x269   :  { %v730_v28 = vadd.f32 0.5, %v729_v46  ;;  %v734_v48 = vmul.f32 0.5, %v5621_v50 }
 0x26a   :  { %v740_v52 = vmul.f32 %v5619_v25, %v726_v14 }
 0x26b   :  { %v739_v62 = vmul.f32 %v737_v17, %v730_v28  ;;  %v735_v18 = vadd.f32 0.5, %v734_v48 }
 0x26d   :  { %v6467_v27 = vadd.f32 %v740_v52, %v739_v62 }
 0x26f   :  { %5622 = vtanh.f32 %v6467_v27 }
 0x279   :  { %v5623_v49 = vpop.eup %5622 }
 0x27a   :  { %v743_v4 = vmul.f32 %v5623_v49, %v735_v18 }
 0x27c   :  { %744 = vst [vmem:[#allocation2] sm:$0xc] %v743_v4  ;;  %v746_v5 = vrot.slane %v743_v4, 2 }
 0x27e   :  { %813 = vmatmul.mubr.f32.vlgmr.msra.gmra.mrb[10].mxu0 %v746_v5  ;;  %884 = vmatmul.mubr.f32.vlgmr.msra.gmra.mrb[10].mxu1 %v746_v5 }
 0x27f   :  { %4993 = vmatpush1.bf16.msra.mxu0 %v6052_v35  ;;  %5025 = vmatpush1.bf16.msra.mxu1 %v6064_v39 }
 0x280   :  { %4995 = vmatprep.subr.bf16.mxu0 %v6066_v40  ;;  %5027 = vmatprep.subr.bf16.mxu1 %v6078_v44 }
 0x281   :  { %995 = vmatprep.mubr.f32.mxu0 %v7081_v0  ;;  %1066 = vmatprep.mubr.f32.mxu1 %v7081_v0 }
 0x283   :  { %4997 = vmatpush1.bf16.msra.mxu0 %v6101_v51  ;;  %5029 = vmatpush1.bf16.msra.mxu1 %v6108_v53 }
 0x284   :  { %4999 = vmatprep.subr.bf16.mxu0 %v6110_v54  ;;  %5031 = vmatprep.subr.bf16.mxu1 %v6122_v58 }
 0x287   :  { %5001 = vmatpush1.bf16.msra.mxu0 %v6142_v1  ;;  %5033 = vmatpush1.bf16.msra.mxu1 %v6146_v2 }
 0x288   :  { %5003 = vmatprep.subr.bf16.mxu0 %v6148_v3  ;;  %5035 = vmatprep.subr.bf16.mxu1 %v6160_v7 }
 0x28b   :  { %5005 = vmatpush1.bf16.msra.mxu0 %v6178_v13  ;;  %5037 = vmatpush1.bf16.msra.mxu1 %v6185_v15 }
 0x28c   :  { %5007 = vmatprep.subr.bf16.mxu0 %v6187_v16  ;;  %5039 = vmatprep.subr.bf16.mxu1 %v6199_v20 }
 0x28f   :  { %5009 = vmatpush1.bf16.msra.mxu0 %v6220_v26  ;;  %5041 = vmatpush1.bf16.msra.mxu1 %v6231_v29 }
 0x290   :  { %5011 = vmatprep.subr.bf16.mxu0 %v6233_v32  ;;  %5043 = vmatprep.subr.bf16.mxu1 %v6245_v37 }
 0x293   :  { %5013 = vmatpush1.bf16.msra.mxu0 %v6269_v47  ;;  %5045 = vmatpush1.bf16.msra.mxu1 %v6286_v55 }
 0x294   :  { %5015 = vmatprep.subr.bf16.mxu0 %v6288_v56  ;;  %5047 = vmatprep.subr.bf16.mxu1 %v6297_v60 }
 0x297   :  { %5017 = vmatpush1.bf16.msra.mxu0 %v6306_v63  ;;  %5049 = vmatpush1.bf16.msra.mxu1 %v6316_v6 }
 0x298   :  { %5019 = vmatprep.subr.bf16.mxu0 %v6318_v8  ;;  %5051 = vmatprep.subr.bf16.mxu1 %v6321_v9 }
 0x29b   :  { %5021 = vmatpush1.bf16.msra.mxu0 %v6324_v10  ;;  %5053 = vmatpush1.bf16.msra.mxu1 %v6328_v11 }
 0x29c   :  { %5055 = vmatprep.subr.bf16.mxu0 %v6039_v30  ;;  %5087 = vmatprep.subr.bf16.mxu1 %v6041_v31 }
 0x351   :  { %v814_v33 = vpop.f32.mrb[10].mxu0  ;;  %v885_v36 = vpop.f32.mrb[10].mxu1 }
 0x352   :  { %v894_v43 = vrot.slane %v814_v33, 4  ;;  %v816_v57 = vpop.f32.mrb[11].mxu0  ;;  %v887_v24 = vpop.f32.mrb[11].mxu1  ;;  %v896_v25 = vrot.slane %v885_v36, 4 }
 0x353   :  { %v895_v46 = vrot.slane %v816_v57, 4  ;;  %v897_v50 = vrot.slane %v887_v24, 4 }
 0x354   :  { %v902_v14 = vadd.f32 %v894_v43, %v6401_v41  ;;  %v904_v62 = vadd.f32 %v896_v25, %v6415_v59 }
 0x355   :  { %v903_v17 = vadd.f32 %v895_v46, %v6410_v45  ;;  %v905_v48 = vadd.f32 %v897_v50, %v6422_v12  ;;  %v920_v46 = vrot.slane %v6467_v27, 6 }
 0x356   :  { %v906_v28 = vmul.f32 0.5, %v902_v14 }
 0x357   :  { %v910_v52 = vmul.f32 0.5, %v903_v17  ;;  %v915_v18 = vmul.f32 0.5, %v905_v48 }
 0x358   :  { %5624 = vtanh.f32 %v906_v28 }
 0x359   :  { %5626 = vtanh.f32 %v910_v52 }
 0x35a   :  { %5628 = vtanh.f32 %v904_v62 }
 0x35b   :  { %5630 = vtanh.f32 %v915_v18 }
 0x362   :  { %v5625_v49 = vpop.eup %5624 }
 0x363   :  { %v5627_v4 = vpop.eup %5626  ;;  %v908_v5 = vmul.f32 0.5, %v5625_v49 }
 0x364   :  { %v912_v33 = vmul.f32 0.5, %v5627_v4  ;;  %v5629_v36 = vpop.eup %5628 }
 0x365   :  { %v909_v43 = vadd.f32 0.5, %v908_v5  ;;  %v5631_v24 = vpop.eup %5630 }
 0x366   :  { %v913_v57 = vadd.f32 0.5, %v912_v33  ;;  %v917_v25 = vmul.f32 0.5, %v5631_v24 }
 0x367   :  { %v923_v14 = vmul.f32 %v5629_v36, %v909_v43 }
 0x368   :  { %v922_v17 = vmul.f32 %v920_v46, %v913_v57  ;;  %v918_v52 = vadd.f32 0.5, %v917_v25 }
 0x36a   :  { %v6509_v28 = vadd.f32 %v923_v14, %v922_v17 }
 0x36c   :  { %5632 = vtanh.f32 %v6509_v28 }
 0x376   :  { %v5633_v62 = vpop.eup %5632 }
 0x377   :  { %v926_v50 = vmul.f32 %v5633_v62, %v918_v52 }
 0x379   :  { %927 = vst [vmem:[#allocation2] sm:$0x30] %v926_v50  ;;  %v929_v48 = vrot.slane %v926_v50, 4 }
 0x37b   :  { %996 = vmatmul.mubr.f32.vlgmr.msra.gmra.mrb[12].mxu0 %v929_v48  ;;  %1067 = vmatmul.mubr.f32.vlgmr.msra.gmra.mrb[12].mxu1 %v929_v48 }
 0x37c   :  { %5057 = vmatpush1.bf16.msra.mxu0 %v6052_v35  ;;  %5089 = vmatpush1.bf16.msra.mxu1 %v6064_v39 }
 0x37d   :  { %5059 = vmatprep.subr.bf16.mxu0 %v6066_v40  ;;  %5091 = vmatprep.subr.bf16.mxu1 %v6078_v44 }
 0x37e   :  { %1178 = vmatprep.mubr.f32.mxu0 %v7081_v0  ;;  %1249 = vmatprep.mubr.f32.mxu1 %v7081_v0 }
 0x380   :  { %5061 = vmatpush1.bf16.msra.mxu0 %v6101_v51  ;;  %5093 = vmatpush1.bf16.msra.mxu1 %v6108_v53 }
 0x381   :  { %5063 = vmatprep.subr.bf16.mxu0 %v6110_v54  ;;  %5095 = vmatprep.subr.bf16.mxu1 %v6122_v58 }
 0x384   :  { %5065 = vmatpush1.bf16.msra.mxu0 %v6142_v1  ;;  %5097 = vmatpush1.bf16.msra.mxu1 %v6146_v2 }
 0x385   :  { %5067 = vmatprep.subr.bf16.mxu0 %v6148_v3  ;;  %5099 = vmatprep.subr.bf16.mxu1 %v6160_v7 }
 0x388   :  { %5069 = vmatpush1.bf16.msra.mxu0 %v6178_v13  ;;  %5101 = vmatpush1.bf16.msra.mxu1 %v6185_v15 }
 0x389   :  { %5071 = vmatprep.subr.bf16.mxu0 %v6187_v16  ;;  %5103 = vmatprep.subr.bf16.mxu1 %v6199_v20 }
 0x38c   :  { %5073 = vmatpush1.bf16.msra.mxu0 %v6220_v26  ;;  %5105 = vmatpush1.bf16.msra.mxu1 %v6231_v29 }
 0x38d   :  { %5075 = vmatprep.subr.bf16.mxu0 %v6233_v32  ;;  %5107 = vmatprep.subr.bf16.mxu1 %v6245_v37 }
 0x390   :  { %5077 = vmatpush1.bf16.msra.mxu0 %v6269_v47  ;;  %5109 = vmatpush1.bf16.msra.mxu1 %v6286_v55 }
 0x391   :  { %5079 = vmatprep.subr.bf16.mxu0 %v6288_v56  ;;  %5111 = vmatprep.subr.bf16.mxu1 %v6297_v60 }
 0x394   :  { %5081 = vmatpush1.bf16.msra.mxu0 %v6306_v63  ;;  %5113 = vmatpush1.bf16.msra.mxu1 %v6316_v6 }
 0x395   :  { %5083 = vmatprep.subr.bf16.mxu0 %v6318_v8  ;;  %5115 = vmatprep.subr.bf16.mxu1 %v6321_v9 }
 0x398   :  { %5085 = vmatpush1.bf16.msra.mxu0 %v6324_v10  ;;  %5117 = vmatpush1.bf16.msra.mxu1 %v6328_v11 }
 0x399   :  { %5119 = vmatprep.subr.bf16.mxu0 %v6039_v30  ;;  %5151 = vmatprep.subr.bf16.mxu1 %v6041_v31 }
 0x44e   :  { %v997_v27 = vpop.f32.mrb[12].mxu0  ;;  %v1068_v18 = vpop.f32.mrb[12].mxu1 }
 0x44f   :  { %v1077_v49 = vrot.slane %v997_v27, 2  ;;  %v999_v4 = vpop.f32.mrb[13].mxu0  ;;  %v1070_v5 = vpop.f32.mrb[13].mxu1  ;;  %v1079_v36 = vrot.slane %v1068_v18, 2 }
 0x450   :  { %v1078_v33 = vrot.slane %v999_v4, 2  ;;  %v1080_v24 = vrot.slane %v1070_v5, 2 }
 0x451   :  { %v1085_v43 = vadd.f32 %v1077_v49, %v6401_v41  ;;  %v1087_v17 = vadd.f32 %v1079_v36, %v6415_v59 }
 0x452   :  { %v1086_v57 = vadd.f32 %v1078_v33, %v6410_v45  ;;  %v1088_v25 = vadd.f32 %v1080_v24, %v6422_v12  ;;  %v1103_v45 = vrot.slane %v6509_v28, 6  ;;  %v6590_v28 = vadd.f32 %v6371_v19, %v6392_v34 }
 0x453   :  { %v1089_v46 = vmul.f32 0.5, %v1085_v43 }
 0x454   :  { %v1093_v14 = vmul.f32 0.5, %v1086_v57  ;;  %v1098_v52 = vmul.f32 0.5, %v1088_v25 }
 0x455   :  { %5634 = vtanh.f32 %v1089_v46 }
 0x456   :  { %5636 = vtanh.f32 %v1093_v14  ;;  %v6594_v14 = vadd.f32 %v6373_v21, %v6398_v38  ;;  %v6605_v21 = vadd.f32 %v6377_v23, %v6418_v61 }
 0x457   :  { %5638 = vtanh.f32 %v1087_v17 }
 0x458   :  { %5640 = vtanh.f32 %v1098_v52 }
 0x45f   :  { %v5635_v62 = vpop.eup %5634 }
 0x460   :  { %v5637_v50 = vpop.eup %5636  ;;  %v1091_v48 = vmul.f32 0.5, %v5635_v62 }
 0x461   :  { %v1095_v27 = vmul.f32 0.5, %v5637_v50  ;;  %v5639_v18 = vpop.eup %5638 }
 0x462   :  { %v1092_v41 = vadd.f32 0.5, %v1091_v48  ;;  %v5641_v59 = vpop.eup %5640  ;;  %v6600_v48 = vadd.f32 %v6375_v22, %v6404_v42 }
 0x463   :  { %v1096_v49 = vadd.f32 0.5, %v1095_v27  ;;  %v1100_v5 = vmul.f32 0.5, %v5641_v59 }
 0x464   :  { %v1106_v4 = vmul.f32 %v5639_v18, %v1092_v41 }
 0x465   :  { %v1105_v33 = vmul.f32 %v1103_v45, %v1096_v49  ;;  %v1101_v12 = vadd.f32 0.5, %v1100_v5 }
 0x467   :  { %v6551_v43 = vadd.f32 %v1106_v4, %v1105_v33 }
 0x469   :  { %5642 = vtanh.f32 %v6551_v43 }
 0x473   :  { %v5643_v36 = vpop.eup %5642 }
 0x474   :  { %v1109_v57 = vmul.f32 %v5643_v36, %v1101_v12  ;;  %v1274_v36 = vrot.slane %v6551_v43, 6 }
 0x476   :  { %1110 = vst [vmem:[#allocation2] sm:$0xc0] %v1109_v57  ;;  %v1112_v46 = vrot.slane %v1109_v57, 6 }
 0x478   :  { %1179 = vmatmul.mubr.f32.vlgmr.msra.gmra.mrb[14].mxu0 %v1112_v46  ;;  %1250 = vmatmul.mubr.f32.vlgmr.msra.gmra.mrb[14].mxu1 %v1112_v46 }
 0x479   :  { %5121 = vmatpush1.bf16.msra.mxu0 %v6052_v35  ;;  %5153 = vmatpush1.bf16.msra.mxu1 %v6064_v39 }
 0x47a   :  { %5123 = vmatprep.subr.bf16.mxu0 %v6066_v40  ;;  %5155 = vmatprep.subr.bf16.mxu1 %v6078_v44 }
 0x47b   :  { %1346 = vmatprep.mubr.f32.mxu0 %v7081_v0  ;;  %1417 = vmatprep.mubr.f32.mxu1 %v7081_v0 }
 0x47d   :  { %5125 = vmatpush1.bf16.msra.mxu0 %v6101_v51  ;;  %5157 = vmatpush1.bf16.msra.mxu1 %v6108_v53 }
 0x47e   :  { %5127 = vmatprep.subr.bf16.mxu0 %v6110_v54  ;;  %5159 = vmatprep.subr.bf16.mxu1 %v6122_v58 }
 0x481   :  { %5129 = vmatpush1.bf16.msra.mxu0 %v6142_v1  ;;  %5161 = vmatpush1.bf16.msra.mxu1 %v6146_v2 }
 0x482   :  { %5131 = vmatprep.subr.bf16.mxu0 %v6148_v3  ;;  %5163 = vmatprep.subr.bf16.mxu1 %v6160_v7 }
 0x485   :  { %5133 = vmatpush1.bf16.msra.mxu0 %v6178_v13  ;;  %5165 = vmatpush1.bf16.msra.mxu1 %v6185_v15 }
 0x486   :  { %5135 = vmatprep.subr.bf16.mxu0 %v6187_v16  ;;  %5167 = vmatprep.subr.bf16.mxu1 %v6199_v20 }
 0x489   :  { %5137 = vmatpush1.bf16.msra.mxu0 %v6220_v26  ;;  %5169 = vmatpush1.bf16.msra.mxu1 %v6231_v29 }
 0x48a   :  { %5139 = vmatprep.subr.bf16.mxu0 %v6233_v32  ;;  %5171 = vmatprep.subr.bf16.mxu1 %v6245_v37 }
 0x48d   :  { %5141 = vmatpush1.bf16.msra.mxu0 %v6269_v47  ;;  %5173 = vmatpush1.bf16.msra.mxu1 %v6286_v55 }
 0x48e   :  { %5143 = vmatprep.subr.bf16.mxu0 %v6288_v56  ;;  %5175 = vmatprep.subr.bf16.mxu1 %v6297_v60 }
 0x491   :  { %5145 = vmatpush1.bf16.msra.mxu0 %v6306_v63  ;;  %5177 = vmatpush1.bf16.msra.mxu1 %v6316_v6 }
 0x492   :  { %5147 = vmatprep.subr.bf16.mxu0 %v6318_v8  ;;  %5179 = vmatprep.subr.bf16.mxu1 %v6321_v9 }
 0x495   :  { %5149 = vmatpush1.bf16.msra.mxu0 %v6324_v10  ;;  %5181 = vmatpush1.bf16.msra.mxu1 %v6328_v11 }
 0x496   :  { %5183 = vmatprep.subr.bf16.mxu0 %v6039_v30  ;;  %5215 = vmatprep.subr.bf16.mxu1 %v6041_v31 }
 0x54b   :  { %v1180_v17 = vpop.f32.mrb[14].mxu0  ;;  %v1251_v24 = vpop.f32.mrb[14].mxu1 }
 0x54c   :  { %v1256_v25 = vadd.f32 %v1180_v17, %v6590_v28  ;;  %v1182_v52 = vpop.f32.mrb[15].mxu0  ;;  %v1253_v62 = vpop.f32.mrb[15].mxu1  ;;  %v1258_v19 = vadd.f32 %v1251_v24, %v6600_v48 }
 0x54d   :  { %v1257_v50 = vadd.f32 %v1182_v52, %v6594_v14  ;;  %v1259_v18 = vadd.f32 %v1253_v62, %v6605_v21 }
 0x54e   :  { %v1260_v27 = vmul.f32 0.5, %v1256_v25 }
 0x54f   :  { %v1264_v41 = vmul.f32 0.5, %v1257_v50  ;;  %v1269_v49 = vmul.f32 0.5, %v1259_v18 }
 0x550   :  { %5644 = vtanh.f32 %v1260_v27 }
 0x551   :  { %5646 = vtanh.f32 %v1264_v41 }
 0x552   :  { %5648 = vtanh.f32 %v1258_v19 }
 0x553   :  { %5650 = vtanh.f32 %v1269_v49 }
 0x55a   :  { %v5645_v45 = vpop.eup %5644 }
 0x55b   :  { %v5647_v4 = vpop.eup %5646  ;;  %v1262_v33 = vmul.f32 0.5, %v5645_v45 }
 0x55c   :  { %v1266_v59 = vmul.f32 0.5, %v5647_v4  ;;  %v5649_v5 = vpop.eup %5648 }
 0x55d   :  { %v1263_v22 = vadd.f32 0.5, %v1262_v33  ;;  %v5651_v23 = vpop.eup %5650 }
 0x55e   :  { %v1267_v12 = vadd.f32 0.5, %v1266_v59  ;;  %v1271_v24 = vmul.f32 0.5, %v5651_v23 }
 0x55f   :  { %v1277_v57 = vmul.f32 %v5649_v5, %v1263_v22 }
 0x560   :  { %v1276_v46 = vmul.f32 %v1274_v36, %v1267_v12  ;;  %v1272_v25 = vadd.f32 0.5, %v1271_v24 }
 0x562   :  { %v6609_v17 = vadd.f32 %v1277_v57, %v1276_v46 }
 0x564   :  { %5652 = vtanh.f32 %v6609_v17 }
 0x56e   :  { %v5653_v52 = vpop.eup %5652 }
 0x56f   :  { %v1280_v62 = vmul.f32 %v5653_v52, %v1272_v25 }
 0x571   :  { %1281 = vst [vmem:[#allocation2 + $0x8] sm:$0x3] %v1280_v62  ;;  %1347 = vmatmul.mubr.f32.vlgmr.msra.gmra.mrb[16].mxu0 %v1280_v62  ;;  %1418 = vmatmul.mubr.f32.vlgmr.msra.gmra.mrb[16].mxu1 %v1280_v62 }
 0x572   :  { %5185 = vmatpush1.bf16.msra.mxu0 %v6052_v35  ;;  %5217 = vmatpush1.bf16.msra.mxu1 %v6064_v39 }
 0x573   :  { %5187 = vmatprep.subr.bf16.mxu0 %v6066_v40  ;;  %5219 = vmatprep.subr.bf16.mxu1 %v6078_v44 }
 0x574   :  { %1529 = vmatprep.mubr.f32.mxu0 %v7081_v0  ;;  %1600 = vmatprep.mubr.f32.mxu1 %v7081_v0 }
 0x576   :  { %5189 = vmatpush1.bf16.msra.mxu0 %v6101_v51  ;;  %5221 = vmatpush1.bf16.msra.mxu1 %v6108_v53 }
 0x577   :  { %5191 = vmatprep.subr.bf16.mxu0 %v6110_v54  ;;  %5223 = vmatprep.subr.bf16.mxu1 %v6122_v58 }
 0x57a   :  { %5193 = vmatpush1.bf16.msra.mxu0 %v6142_v1  ;;  %5225 = vmatpush1.bf16.msra.mxu1 %v6146_v2 }
 0x57b   :  { %5195 = vmatprep.subr.bf16.mxu0 %v6148_v3  ;;  %5227 = vmatprep.subr.bf16.mxu1 %v6160_v7 }
 0x57e   :  { %5197 = vmatpush1.bf16.msra.mxu0 %v6178_v13  ;;  %5229 = vmatpush1.bf16.msra.mxu1 %v6185_v15 }
 0x57f   :  { %5199 = vmatprep.subr.bf16.mxu0 %v6187_v16  ;;  %5231 = vmatprep.subr.bf16.mxu1 %v6199_v20 }
 0x582   :  { %5201 = vmatpush1.bf16.msra.mxu0 %v6220_v26  ;;  %5233 = vmatpush1.bf16.msra.mxu1 %v6231_v29 }
 0x583   :  { %5203 = vmatprep.subr.bf16.mxu0 %v6233_v32  ;;  %5235 = vmatprep.subr.bf16.mxu1 %v6245_v37 }
 0x586   :  { %5205 = vmatpush1.bf16.msra.mxu0 %v6269_v47  ;;  %5237 = vmatpush1.bf16.msra.mxu1 %v6286_v55 }
 0x587   :  { %5207 = vmatprep.subr.bf16.mxu0 %v6288_v56  ;;  %5239 = vmatprep.subr.bf16.mxu1 %v6297_v60 }
 0x58a   :  { %5209 = vmatpush1.bf16.msra.mxu0 %v6306_v63  ;;  %5241 = vmatpush1.bf16.msra.mxu1 %v6316_v6 }
 0x58b   :  { %5211 = vmatprep.subr.bf16.mxu0 %v6318_v8  ;;  %5243 = vmatprep.subr.bf16.mxu1 %v6321_v9 }
 0x58e   :  { %5213 = vmatpush1.bf16.msra.mxu0 %v6324_v10  ;;  %5245 = vmatpush1.bf16.msra.mxu1 %v6328_v11 }
 0x58f   :  { %5247 = vmatprep.subr.bf16.mxu0 %v6039_v30  ;;  %5279 = vmatprep.subr.bf16.mxu1 %v6041_v31 }
 0x644   :  { %v1348_v43 = vpop.f32.mrb[16].mxu0  ;;  %v1419_v50 = vpop.f32.mrb[16].mxu1 }
 0x645   :  { %v1428_v27 = vrot.slane %v1348_v43, 6  ;;  %v1350_v41 = vpop.f32.mrb[17].mxu0  ;;  %v1421_v19 = vpop.f32.mrb[17].mxu1  ;;  %v1430_v45 = vrot.slane %v1419_v50, 6  ;;  %v1454_v43 = vrot.slane %v6609_v17, 6 }
 0x646   :  { %v1429_v18 = vrot.slane %v1350_v41, 6  ;;  %v1431_v5 = vrot.slane %v1421_v19, 6 }
 0x647   :  { %v1436_v49 = vadd.f32 %v1428_v27, %v6590_v28  ;;  %v1438_v22 = vadd.f32 %v1430_v45, %v6600_v48 }
 0x648   :  { %v1437_v4 = vadd.f32 %v1429_v18, %v6594_v14  ;;  %v1439_v12 = vadd.f32 %v1431_v5, %v6605_v21 }
 0x649   :  { %v1440_v33 = vmul.f32 0.5, %v1436_v49 }
 0x64a   :  { %v1444_v59 = vmul.f32 0.5, %v1437_v4  ;;  %v1449_v36 = vmul.f32 0.5, %v1439_v12 }
 0x64b   :  { %5654 = vtanh.f32 %v1440_v33 }
 0x64c   :  { %5656 = vtanh.f32 %v1444_v59 }
 0x64d   :  { %5658 = vtanh.f32 %v1438_v22 }
 0x64e   :  { %5660 = vtanh.f32 %v1449_v36 }
 0x655   :  { %v5655_v57 = vpop.eup %5654 }
 0x656   :  { %v5657_v46 = vpop.eup %5656  ;;  %v1442_v23 = vmul.f32 0.5, %v5655_v57 }
 0x657   :  { %v1446_v24 = vmul.f32 0.5, %v5657_v46  ;;  %v5659_v52 = vpop.eup %5658 }
 0x658   :  { %v1443_v25 = vadd.f32 0.5, %v1442_v23  ;;  %v5661_v19 = vpop.eup %5660 }
 0x659   :  { %v1447_v62 = vadd.f32 0.5, %v1446_v24  ;;  %v1451_v18 = vmul.f32 0.5, %v5661_v19 }
 0x65a   :  { %v1457_v50 = vmul.f32 %v5659_v52, %v1443_v25 }
 0x65b   :  { %v1456_v27 = vmul.f32 %v1454_v43, %v1447_v62  ;;  %v1452_v49 = vadd.f32 0.5, %v1451_v18 }
 0x65d   :  { %v6651_v41 = vadd.f32 %v1457_v50, %v1456_v27 }
 0x65f   :  { %5662 = vtanh.f32 %v6651_v41 }
 0x669   :  { %v5663_v45 = vpop.eup %5662 }
 0x66a   :  { %v1460_v4 = vmul.f32 %v5663_v45, %v1452_v49 }
 0x66c   :  { %1461 = vst [vmem:[#allocation2 + $0x8] sm:$0xc] %v1460_v4  ;;  %v1463_v33 = vrot.slane %v1460_v4, 2  ;;  %v1637_v4 = vrot.slane %v6651_v41, 6 }
 0x66e   :  { %1530 = vmatmul.mubr.f32.vlgmr.msra.gmra.mrb[18].mxu0 %v1463_v33  ;;  %1601 = vmatmul.mubr.f32.vlgmr.msra.gmra.mrb[18].mxu1 %v1463_v33 }
 0x66f   :  { %5249 = vmatpush1.bf16.msra.mxu0 %v6052_v35  ;;  %5281 = vmatpush1.bf16.msra.mxu1 %v6064_v39 }
 0x670   :  { %5251 = vmatprep.subr.bf16.mxu0 %v6066_v40  ;;  %5283 = vmatprep.subr.bf16.mxu1 %v6078_v44 }
 0x671   :  { %1712 = vmatprep.mubr.f32.mxu0 %v7081_v0  ;;  %1783 = vmatprep.mubr.f32.mxu1 %v7081_v0 }
 0x673   :  { %5253 = vmatpush1.bf16.msra.mxu0 %v6101_v51  ;;  %5285 = vmatpush1.bf16.msra.mxu1 %v6108_v53 }
 0x674   :  { %5255 = vmatprep.subr.bf16.mxu0 %v6110_v54  ;;  %5287 = vmatprep.subr.bf16.mxu1 %v6122_v58 }
 0x677   :  { %5257 = vmatpush1.bf16.msra.mxu0 %v6142_v1  ;;  %5289 = vmatpush1.bf16.msra.mxu1 %v6146_v2 }
 0x678   :  { %5259 = vmatprep.subr.bf16.mxu0 %v6148_v3  ;;  %5291 = vmatprep.subr.bf16.mxu1 %v6160_v7 }
 0x67b   :  { %5261 = vmatpush1.bf16.msra.mxu0 %v6178_v13  ;;  %5293 = vmatpush1.bf16.msra.mxu1 %v6185_v15 }
 0x67c   :  { %5263 = vmatprep.subr.bf16.mxu0 %v6187_v16  ;;  %5295 = vmatprep.subr.bf16.mxu1 %v6199_v20 }
 0x67f   :  { %5265 = vmatpush1.bf16.msra.mxu0 %v6220_v26  ;;  %5297 = vmatpush1.bf16.msra.mxu1 %v6231_v29 }
 0x680   :  { %5267 = vmatprep.subr.bf16.mxu0 %v6233_v32  ;;  %5299 = vmatprep.subr.bf16.mxu1 %v6245_v37 }
 0x683   :  { %5269 = vmatpush1.bf16.msra.mxu0 %v6269_v47  ;;  %5301 = vmatpush1.bf16.msra.mxu1 %v6286_v55 }
 0x684   :  { %5271 = vmatprep.subr.bf16.mxu0 %v6288_v56  ;;  %5303 = vmatprep.subr.bf16.mxu1 %v6297_v60 }
 0x687   :  { %5273 = vmatpush1.bf16.msra.mxu0 %v6306_v63  ;;  %5305 = vmatpush1.bf16.msra.mxu1 %v6316_v6 }
 0x688   :  { %5275 = vmatprep.subr.bf16.mxu0 %v6318_v8  ;;  %5307 = vmatprep.subr.bf16.mxu1 %v6321_v9 }
 0x68b   :  { %5277 = vmatpush1.bf16.msra.mxu0 %v6324_v10  ;;  %5309 = vmatpush1.bf16.msra.mxu1 %v6328_v11 }
 0x68c   :  { %5311 = vmatprep.subr.bf16.mxu0 %v6039_v30  ;;  %5343 = vmatprep.subr.bf16.mxu1 %v6041_v31 }
 0x741   :  { %v1531_v17 = vpop.f32.mrb[18].mxu0  ;;  %v1602_v59 = vpop.f32.mrb[18].mxu1 }
 0x742   :  { %v1611_v22 = vrot.slane %v1531_v17, 4  ;;  %v1533_v5 = vpop.f32.mrb[19].mxu0  ;;  %v1604_v12 = vpop.f32.mrb[19].mxu1  ;;  %v1613_v46 = vrot.slane %v1602_v59, 4 }
 0x743   :  { %v1612_v36 = vrot.slane %v1533_v5, 4  ;;  %v1614_v62 = vrot.slane %v1604_v12, 4 }
 0x744   :  { %v1619_v57 = vadd.f32 %v1611_v22, %v6590_v28  ;;  %v1621_v52 = vadd.f32 %v1613_v46, %v6600_v48 }
 0x745   :  { %v1620_v23 = vadd.f32 %v1612_v36, %v6594_v14  ;;  %v1622_v30 = vadd.f32 %v1614_v62, %v6605_v21  ;;  %v5418_v62 = vld [vmem:[#allocation5 + $0x60] ss:$48 sps:$4 sm:$0xff]  }
 0x746   :  { %v1623_v24 = vmul.f32 0.5, %v1619_v57 }
 0x747   :  { %v1627_v25 = vmul.f32 0.5, %v1620_v23  ;;  %v1632_v31 = vmul.f32 0.5, %v1622_v30  ;;  %v5426_v30 = vld [vmem:[#allocation5 + $0xc4] ss:$48 sps:$4 sm:$0xff]  }
 0x748   :  { %5664 = vtanh.f32 %v1623_v24  ;;  %v5412_v24 = vld [vmem:[#allocation5] ss:$48 sps:$4 sm:$0xff]  }
 0x749   :  { %5666 = vtanh.f32 %v1627_v25  ;;  %v5414_v25 = vld [vmem:[#allocation5 + $0x4] ss:$48 sps:$4 sm:$0xff]  }
 0x74a   :  { %5668 = vtanh.f32 %v1621_v52  ;;  %v5420_v52 = vld [vmem:[#allocation5 + $0x64] ss:$48 sps:$4 sm:$0xff]  }
 0x74b   :  { %5670 = vtanh.f32 %v1632_v31  ;;  %v5424_v31 = vld [vmem:[#allocation5 + $0xc0] ss:$48 sps:$4 sm:$0xff]  }
 0x752   :  { %v5665_v43 = vpop.eup %5664 }
 0x753   :  { %v5667_v50 = vpop.eup %5666  ;;  %v1625_v27 = vmul.f32 0.5, %v5665_v43  ;;  %v5432_v43 = vld [vmem:[#allocation5 + $0x124] ss:$48 sps:$4 sm:$0xff]  }
 0x754   :  { %v1629_v19 = vmul.f32 0.5, %v5667_v50  ;;  %v5669_v49 = vpop.eup %5668  ;;  %v5430_v50 = vld [vmem:[#allocation5 + $0x120] ss:$48 sps:$4 sm:$0xff]  }
 0x755   :  { %v1626_v18 = vadd.f32 0.5, %v1625_v27  ;;  %v5671_v22 = vpop.eup %5670  ;;  %v5438_v27 = vld [vmem:[#allocation5 + $0x184] ss:$48 sps:$4 sm:$0xff]  }
 0x756   :  { %v1630_v45 = vadd.f32 0.5, %v1629_v19  ;;  %v1634_v5 = vmul.f32 0.5, %v5671_v22  ;;  %v5436_v19 = vld [vmem:[#allocation5 + $0x180] ss:$48 sps:$4 sm:$0xff]  }
 0x757   :  { %v1640_v33 = vmul.f32 %v5669_v49, %v1626_v18  ;;  %v5444_v18 = vld [vmem:[#allocation5 + $0x1e4] ss:$48 sps:$4 sm:$0xff]   ;;  %v5442_v49 = vld [vmem:[#allocation5 + $0x1e0] ss:$48 sps:$4 sm:$0xff]  }
 0x758   :  { %v1639_v17 = vmul.f32 %v1637_v4, %v1630_v45  ;;  %v1635_v12 = vadd.f32 0.5, %v1634_v5  ;;  %v5450_v45 = vld [vmem:[#allocation5 + $0x244] ss:$48 sps:$4 sm:$0xff]   ;;  %v5448_v4 = vld [vmem:[#allocation5 + $0x240] ss:$48 sps:$4 sm:$0xff]  }
 0x75a   :  { %v6693_v59 = vadd.f32 %v1640_v33, %v1639_v17 }
 0x75c   :  { %5672 = vtanh.f32 %v6693_v59 }
 0x766   :  { %v5673_v36 = vpop.eup %5672 }
 0x767   :  { %v1643_v57 = vmul.f32 %v5673_v36, %v1635_v12 }
 0x769   :  { %1644 = vst [vmem:[#allocation2 + $0x8] sm:$0x30] %v1643_v57  ;;  %v1646_v46 = vrot.slane %v1643_v57, 4 }
 0x76b   :  { %1713 = vmatmul.mubr.f32.vlgmr.msra.gmra.mrb[20].mxu0 %v1646_v46  ;;  %1784 = vmatmul.mubr.f32.vlgmr.msra.gmra.mrb[20].mxu1 %v1646_v46 }
 0x76c   :  { %5313 = vmatpush1.bf16.msra.mxu0 %v6052_v35  ;;  %5345 = vmatpush1.bf16.msra.mxu1 %v6064_v39  ;;  %v5870_v35 = vmov 0.0|0.0  }
 0x76d   :  { %5315 = vmatprep.subr.bf16.mxu0 %v6066_v40  ;;  %5347 = vmatprep.subr.bf16.mxu1 %v6078_v44 }
 0x76e   :  { %1895 = vmatprep.mubr.f32.mxu0 %v7081_v0  ;;  %1966 = vmatprep.mubr.f32.mxu1 %v7081_v0 }
 0x770   :  { %5317 = vmatpush1.bf16.msra.mxu0 %v6101_v51  ;;  %5349 = vmatpush1.bf16.msra.mxu1 %v6108_v53 }
 0x771   :  { %5319 = vmatprep.subr.bf16.mxu0 %v6110_v54  ;;  %5351 = vmatprep.subr.bf16.mxu1 %v6122_v58 }
 0x774   :  { %5321 = vmatpush1.bf16.msra.mxu0 %v6142_v1  ;;  %5353 = vmatpush1.bf16.msra.mxu1 %v6146_v2 }
 0x775   :  { %5323 = vmatprep.subr.bf16.mxu0 %v6148_v3  ;;  %5355 = vmatprep.subr.bf16.mxu1 %v6160_v7 }
 0x778   :  { %5325 = vmatpush1.bf16.msra.mxu0 %v6178_v13  ;;  %5357 = vmatpush1.bf16.msra.mxu1 %v6185_v15 }
 0x779   :  { %5327 = vmatprep.subr.bf16.mxu0 %v6187_v16  ;;  %5359 = vmatprep.subr.bf16.mxu1 %v6199_v20 }
 0x77c   :  { %5329 = vmatpush1.bf16.msra.mxu0 %v6220_v26  ;;  %5361 = vmatpush1.bf16.msra.mxu1 %v6231_v29 }
 0x77d   :  { %5331 = vmatprep.subr.bf16.mxu0 %v6233_v32  ;;  %5363 = vmatprep.subr.bf16.mxu1 %v6245_v37 }
 0x780   :  { %5333 = vmatpush1.bf16.msra.mxu0 %v6269_v47  ;;  %5365 = vmatpush1.bf16.msra.mxu1 %v6286_v55 }
 0x781   :  { %5335 = vmatprep.subr.bf16.mxu0 %v6288_v56  ;;  %5367 = vmatprep.subr.bf16.mxu1 %v6297_v60  ;;  %v1820_v60 = vrot.slane %v6693_v59, 6 }
 0x784   :  { %5337 = vmatpush1.bf16.msra.mxu0 %v6306_v63  ;;  %5369 = vmatpush1.bf16.msra.mxu1 %v6316_v6 }
 0x785   :  { %5339 = vmatprep.subr.bf16.mxu0 %v6318_v8  ;;  %5371 = vmatprep.subr.bf16.mxu1 %v6321_v9 }
 0x788   :  { %5341 = vmatpush1.bf16.msra.mxu0 %v6324_v10  ;;  %5373 = vmatpush1.bf16.msra.mxu1 %v6328_v11 }
 0x789   :  { %5374 = vmatprep.subr.bf16.mxu0 %v5870_v35  ;;  %2747 = vmatprep.subr.bf16.mxu1 %v5414_v25  ;;  %v5459_v25 = vld [vmem:[#allocation5 + $0x2ac] ss:$48 sps:$4 sm:$0xff]  }
 0x83e   :  { %v1714_v39 = vpop.f32.mrb[20].mxu0  ;;  %v1785_v40 = vpop.f32.mrb[20].mxu1 }
 0x83f   :  { %v1794_v44 = vrot.slane %v1714_v39, 2  ;;  %v1716_v51 = vpop.f32.mrb[21].mxu0  ;;  %v1787_v53 = vpop.f32.mrb[21].mxu1  ;;  %v1796_v1 = vrot.slane %v1785_v40, 2 }
 0x840   :  { %v1795_v54 = vrot.slane %v1716_v51, 2  ;;  %v1797_v15 = vrot.slane %v1787_v53, 2 }
 0x841   :  { %v1802_v58 = vadd.f32 %v1794_v44, %v6590_v28  ;;  %v1804_v13 = vadd.f32 %v1796_v1, %v6600_v48 }
 0x842   :  { %v1803_v2 = vadd.f32 %v1795_v54, %v6594_v14  ;;  %v1805_v16 = vadd.f32 %v1797_v15, %v6605_v21  ;;  %v6736_v21 = vld [vmem:[#allocation2] sm:$0xff] }
 0x843   :  { %v1806_v3 = vmul.f32 0.5, %v1802_v58 }
 0x844   :  { %v1810_v7 = vmul.f32 0.5, %v1803_v2  ;;  %v1815_v20 = vmul.f32 0.5, %v1805_v16  ;;  %v5417_v16 = vld [vmem:[#allocation5 + $0xc] ss:$48 sps:$4 sm:$0xff]  }
 0x845   :  { %5674 = vtanh.f32 %v1806_v3 }
 0x846   :  { %5676 = vtanh.f32 %v1810_v7 }
 0x847   :  { %5678 = vtanh.f32 %v1804_v13 }
 0x848   :  { %5680 = vtanh.f32 %v1815_v20  ;;  %v2002_v20 = vld [vmem:[%s7060_s14] sm:$0xff] }
 0x84f   :  { %v5675_v26 = vpop.eup %5674 }
 0x850   :  { %v5677_v29 = vpop.eup %5676  ;;  %v1808_v32 = vmul.f32 0.5, %v5675_v26  ;;  %v5415_v26 = vld [vmem:[#allocation5 + $0x8] ss:$48 sps:$4 sm:$0xff]  }
 0x851   :  { %v1812_v37 = vmul.f32 0.5, %v5677_v29  ;;  %v5679_v55 = vpop.eup %5678 }
 0x852   :  { %v1809_v47 = vadd.f32 0.5, %v1808_v32  ;;  %v5681_v9 = vpop.eup %5680  ;;  %v5423_v32 = vld [vmem:[#allocation5 + $0x6c] ss:$48 sps:$4 sm:$0xff]  }
 0x853   :  { %v1813_v56 = vadd.f32 0.5, %v1812_v37  ;;  %v1817_v10 = vmul.f32 0.5, %v5681_v9  ;;  %v2003_v37 = vld [vmem:[%s7060_s14 + $0x8] sm:$0xff]  ;;  %v5439_v9 = vld [vmem:[#allocation5 + $0x188] ss:$48 sps:$4 sm:$0xff]  }
 0x854   :  { %v1823_v63 = vmul.f32 %v5679_v55, %v1809_v47  ;;  %v5421_v47 = vld [vmem:[#allocation5 + $0x68] ss:$48 sps:$4 sm:$0xff]   ;;  %v5429_v55 = vld [vmem:[#allocation5 + $0xcc] ss:$48 sps:$4 sm:$0xff]  }
 0x855   :  { %v1822_v6 = vmul.f32 %v1820_v60, %v1813_v56  ;;  %v1818_v11 = vadd.f32 0.5, %v1817_v10  ;;  %v2004_v56 = vld [vmem:[%s7060_s14 + $0x10] sm:$0x3]  ;;  %v5447_v10 = vld [vmem:[#allocation5 + $0x1ec] ss:$48 sps:$4 sm:$0xff]  }
 0x856   :  { %v5427_v60 = vld [vmem:[#allocation5 + $0xc8] ss:$48 sps:$4 sm:$0xff]  }
 0x857   :  { %v6733_v8 = vadd.f32 %v1823_v63, %v1822_v6  ;;  %v5435_v63 = vld [vmem:[#allocation5 + $0x12c] ss:$48 sps:$4 sm:$0xff]   ;;  %v5433_v6 = vld [vmem:[#allocation5 + $0x128] ss:$48 sps:$4 sm:$0xff]  }
 0x859   :  { %5682 = vtanh.f32 %v6733_v8 }
 0x863   :  { %v5683_v28 = vpop.eup %5682 }
 0x864   :  { %v1826_v14 = vmul.f32 %v5683_v28, %v1818_v11  ;;  %v5445_v11 = vld [vmem:[#allocation5 + $0x1e8] ss:$48 sps:$4 sm:$0xff]   ;;  %v5453_v28 = vld [vmem:[#allocation5 + $0x24c] ss:$48 sps:$4 sm:$0xff]  }
 0x866   :  { %1827 = vst [vmem:[#allocation2 + $0x8] sm:$0xc0] %v1826_v14  ;;  %v1829_v48 = vrot.slane %v1826_v14, 6  ;;  %v5451_v14 = vld [vmem:[#allocation5 + $0x248] ss:$48 sps:$4 sm:$0xff]  }
 0x868   :  { %1896 = vmatmul.mubr.f32.vlgmr.msra.gmra.mrb[4].mxu0 %v1829_v48  ;;  %1967 = vmatmul.mubr.f32.vlgmr.msra.gmra.mrb[4].mxu1 %v1829_v48  ;;  %v5454_v48 = vld [vmem:[#allocation5 + $0x2a0] ss:$48 sps:$4 sm:$0xff]  }
 0x869   :  { %4669 = vmatprep.mubr.msk.f32.mxu0 %vm5871_vm1, %v7081_v0  ;;  %2748 = vmatpush1.bf16.msra.mxu1 %v5412_v24  ;;  %v5457_v24 = vld [vmem:[#allocation5 + $0x2a8] ss:$48 sps:$4 sm:$0xff]  }
 0x86a   :  { %2749 = vmatprep.subr.bf16.mxu1 %v5420_v52  ;;  %v5462_v52 = vld [vmem:[#allocation5 + $0x14] ss:$48 sps:$4 sm:$0xff]  }
 0x86d   :  { %v6738_v41 = vld [vmem:[#allocation2 + $0x8] sm:$0xff]  ;;  %2750 = vmatpush1.bf16.msra.mxu1 %v5418_v62  ;;  %v5872_v62 = vmov 0  }
 0x86e   :  { %v5375_v23 = vpack.c.bf16 %v6738_v41, %v6736_v21  ;;  %2751 = vmatprep.subr.bf16.mxu1 %v5426_v30  ;;  %2779 = vmatprep.mubr.bf16.mxu1 %v5872_v62  ;;  %v5465_v30 = vld [vmem:[#allocation5 + $0x1c] ss:$48 sps:$4 sm:$0xff]  }
 0x870   :  { %5376 = vmatpush3.bf16.msra.mxu0 %v5375_v23  ;;  %v5456_v23 = vld [vmem:[#allocation5 + $0x2a4] ss:$48 sps:$4 sm:$0xff]  }
 0x871   :  { %4667 = vmatprep.subr.mxu0 %v7081_v0  ;;  %2752 = vmatpush1.bf16.msra.mxu1 %v5424_v31  ;;  %v7082_v31 = vlaneseq }
 0x872   :  { %2753 = vmatprep.subr.bf16.mxu1 %v5432_v43 }
 0x873   :  { %v2100_v43 = vand.u32 127, %v7082_v31  ;;  %v5535_v31 = vld [vmem:[#allocation5 + $0x1a8] ss:$48 sps:$4 sm:$0xff]  }
 0x875   :  { %2754 = vmatpush1.bf16.msra.mxu1 %v5430_v50  ;;  %vm2101_vm4 = vcmp.lt.s32.totalorder %v2100_v43, 64  ;;  %v5540_v43 = vld [vmem:[#allocation5 + $0x204] ss:$48 sps:$4 sm:$0xff]  }
 0x876   :  { %2755 = vmatprep.subr.bf16.mxu1 %v5438_v27 }
 0x879   :  { %2756 = vmatpush1.bf16.msra.mxu1 %v5436_v19 }
 0x87a   :  { %2757 = vmatprep.subr.bf16.mxu1 %v5444_v18 }
 0x87d   :  { %2758 = vmatpush1.bf16.msra.mxu1 %v5442_v49 }
 0x87e   :  { %2759 = vmatprep.subr.bf16.mxu1 %v5450_v45 }
 0x881   :  { %2760 = vmatpush1.bf16.msra.mxu1 %v5448_v4  ;;  %v5460_v4 = vld [vmem:[#allocation5 + $0x10] ss:$48 sps:$4 sm:$0xff]  }
 0x882   :  { %2761 = vmatprep.subr.bf16.mxu1 %v5456_v23  ;;  %v5526_v23 = vld [vmem:[#allocation5 + $0x140] ss:$48 sps:$4 sm:$0xff]  }
 0x885   :  { %2762 = vmatpush1.bf16.msra.mxu1 %v5454_v48  ;;  %v5531_v48 = vld [vmem:[#allocation5 + $0x14c] ss:$48 sps:$4 sm:$0xff]  }
 0x886   :  { %2849 = vmatprep.subr.bf16.mxu1 %v5462_v52  ;;  %v5537_v52 = vld [vmem:[#allocation5 + $0x1ac] ss:$48 sps:$4 sm:$0xff]  }
 0x93b   :  { %v1897_v33 = vpop.f32.mrb[4].mxu0  ;;  %v1968_v17 = vpop.f32.mrb[4].mxu1 }
 0x93c   :  { %v5385_v59 = vadd.f32 %v1897_v33, %v6392_v34  ;;  %v1899_v22 = vpop.f32.mrb[5].mxu0  ;;  %v1970_v5 = vpop.f32.mrb[5].mxu1  ;;  %v5387_v46 = vadd.f32 %v1968_v17, %v6404_v42  ;;  %v5463_v33 = vld [vmem:[#allocation5 + $0x18] ss:$48 sps:$4 sm:$0xff]  }
 0x93d   :  { %v5386_v12 = vadd.f32 %v1899_v22, %v6398_v38  ;;  %v5388_v35 = vadd.f32 %v1970_v5, %v6418_v61  ;;  %v1991_v38 = vrot.slane %v6733_v8, 6  ;;  %v5441_v8 = vld [vmem:[#allocation5 + $0x18c] ss:$48 sps:$4 sm:$0xff]  }
 0x93e   :  { %v1977_v36 = vmul.f32 0.5, %v5385_v59  ;;  %v5468_v59 = vld [vmem:[#allocation5 + $0x74] ss:$48 sps:$4 sm:$0xff]   ;;  %v5471_v22 = vld [vmem:[#allocation5 + $0x7c] ss:$48 sps:$4 sm:$0xff]  }
 0x93f   :  { %v1981_v57 = vmul.f32 0.5, %v5386_v12  ;;  %v1986_v39 = vmul.f32 0.5, %v5388_v35  ;;  %v5466_v12 = vld [vmem:[#allocation5 + $0x70] ss:$48 sps:$4 sm:$0xff]  }
 0x940   :  { %5684 = vtanh.f32 %v1977_v36  ;;  %v5469_v36 = vld [vmem:[#allocation5 + $0x78] ss:$48 sps:$4 sm:$0xff]   ;;  %v5472_v35 = vld [vmem:[#allocation5 + $0xd0] ss:$48 sps:$4 sm:$0xff]  }
 0x941   :  { %5686 = vtanh.f32 %v1981_v57  ;;  %v5477_v57 = vld [vmem:[#allocation5 + $0xdc] ss:$48 sps:$4 sm:$0xff]  }
 0x942   :  { %5688 = vtanh.f32 %v5387_v46 }
 0x943   :  { %5690 = vtanh.f32 %v1986_v39  ;;  %v5475_v39 = vld [vmem:[#allocation5 + $0xd8] ss:$48 sps:$4 sm:$0xff]  }
 0x94a   :  { %v5685_v40 = vpop.eup %5684 }
 0x94b   :  { %v5687_v44 = vpop.eup %5686  ;;  %v1979_v51 = vmul.f32 0.5, %v5685_v40 }
 0x94c   :  { %v1983_v53 = vmul.f32 0.5, %v5687_v44  ;;  %v5689_v54 = vpop.eup %5688  ;;  %v5480_v44 = vld [vmem:[#allocation5 + $0x134] ss:$48 sps:$4 sm:$0xff]  }
 0x94d   :  { %v1980_v34 = vadd.f32 0.5, %v1979_v51  ;;  %v5691_v42 = vpop.eup %5690  ;;  %v5483_v51 = vld [vmem:[#allocation5 + $0x13c] ss:$48 sps:$4 sm:$0xff]  }
 0x94e   :  { %v1984_v58 = vadd.f32 0.5, %v1983_v53  ;;  %v1988_v7 = vmul.f32 0.5, %v5691_v42  ;;  %v5478_v53 = vld [vmem:[#allocation5 + $0x130] ss:$48 sps:$4 sm:$0xff]  }
 0x94f   :  { %v1994_v1 = vmul.f32 %v5689_v54, %v1980_v34  ;;  %v5481_v34 = vld [vmem:[#allocation5 + $0x138] ss:$48 sps:$4 sm:$0xff]   ;;  %v5486_v54 = vld [vmem:[#allocation5 + $0x194] ss:$48 sps:$4 sm:$0xff]   ;;  %v5490_v42 = vld [vmem:[#allocation5 + $0x1f0] ss:$48 sps:$4 sm:$0xff]  }
 0x950   :  { %v1993_v2 = vmul.f32 %v1991_v38, %v1984_v58  ;;  %v1989_v13 = vadd.f32 0.5, %v1988_v7  ;;  %v5489_v58 = vld [vmem:[#allocation5 + $0x19c] ss:$48 sps:$4 sm:$0xff]   ;;  %v5484_v38 = vld [vmem:[#allocation5 + $0x190] ss:$48 sps:$4 sm:$0xff]  }
 0x951   :  { %v5493_v7 = vld [vmem:[#allocation5 + $0x1f8] ss:$48 sps:$4 sm:$0xff]  }
 0x952   :  { %v1995_v3 = vadd.f32 %v1994_v1, %v1993_v2  ;;  %v5487_v1 = vld [vmem:[#allocation5 + $0x198] ss:$48 sps:$4 sm:$0xff]   ;;  %v5492_v2 = vld [vmem:[#allocation5 + $0x1f4] ss:$48 sps:$4 sm:$0xff]  }
 0x954   :  { %5692 = vtanh.f32 %v1995_v3  ;;  %v5495_v3 = vld [vmem:[#allocation5 + $0x1fc] ss:$48 sps:$4 sm:$0xff]  }
 0x95e   :  { %v5693_v15 = vpop.eup %5692 }
 0x95f   :  { %v1997_v61 = vmul.f32 %v5693_v15, %v1989_v13  ;;  %v5498_v13 = vld [vmem:[#allocation5 + $0x254] ss:$48 sps:$4 sm:$0xff]   ;;  %v5501_v15 = vld [vmem:[#allocation5 + $0x25c] ss:$48 sps:$4 sm:$0xff]  }
 0x961   :  { %1998 = vst [vmem:[#allocation2 + $0x10] sm:$0x3] %v1997_v61  ;;  %v5496_v61 = vld [vmem:[#allocation5 + $0x250] ss:$48 sps:$4 sm:$0xff]  }
 0x968   :  { %v6753_v29 = vld [vmem:[#allocation2 + $0x10] sm:$0x3] }
 0x969   :  { %4668 = vmatpush3.msk.msra.mxu0 %vm2015_vm2, %v6753_v29 }
 0x96a   :  { %4670 = vmatmul.mubr.msk.f32.vlgmr.msra.gmra.mrb[22].mxu0 %vm2005_vm3, %v2002_v20  ;;  %2798 = vmatprep.subr.bf16.mxu0 %v5417_v16  ;;  %v5499_v16 = vld [vmem:[#allocation5 + $0x258] ss:$48 sps:$4 sm:$0xff]   ;;  %v5504_v20 = vld [vmem:[#allocation5 + $0x2b4] ss:$48 sps:$4 sm:$0xff]  }
 0x96b   :  { %4672 = vmatprep.mubr.msk.f32.mxu0 %vm5871_vm1, %v7081_v0  ;;  %2799 = vmatpush1.bf16.msra.mxu0 %v5415_v26  ;;  %v5507_v26 = vld [vmem:[#allocation5 + $0x2bc] ss:$48 sps:$4 sm:$0xff]  }
 0x96c   :  { %2800 = vmatprep.subr.bf16.mxu0 %v5423_v32  ;;  %v5505_v32 = vld [vmem:[#allocation5 + $0x2b8] ss:$48 sps:$4 sm:$0xff]  }
 0x96e   :  { %4673 = vmatmul.mubr.msk.f32.gmra.mrb[24].mxu0 %vm2005_vm3, %v2003_v37  ;;  %v5510_v37 = vld [vmem:[#allocation5 + $0x24] ss:$48 sps:$4 sm:$0xff]  }
 0x96f   :  { %4675 = vmatprep.mubr.msk.f32.mxu0 %vm5871_vm1, %v7081_v0  ;;  %2801 = vmatpush1.bf16.msra.mxu0 %v5421_v47  ;;  %v5513_v47 = vld [vmem:[#allocation5 + $0x2c] ss:$48 sps:$4 sm:$0xff]  }
 0x970   :  { %2802 = vmatprep.subr.bf16.mxu0 %v5429_v55  ;;  %v5508_v55 = vld [vmem:[#allocation5 + $0x20] ss:$48 sps:$4 sm:$0xff]  }
 0x972   :  { %4676 = vmatmul.mubr.msk.f32.gmra.mrb[26].mxu0 %vm2005_vm3, %v2004_v56  ;;  %v5511_v56 = vld [vmem:[#allocation5 + $0x28] ss:$48 sps:$4 sm:$0xff]  }
 0x973   :  { %2803 = vmatpush1.bf16.msra.mxu0 %v5427_v60  ;;  %2830 = vmatprep.mubr.bf16.mxu0 %v5872_v62  ;;  %v5516_v60 = vld [vmem:[#allocation5 + $0x84] ss:$48 sps:$4 sm:$0xff]  }
 0x974   :  { %2804 = vmatprep.subr.bf16.mxu0 %v5435_v63  ;;  %v5519_v63 = vld [vmem:[#allocation5 + $0x8c] ss:$48 sps:$4 sm:$0xff]  }
 0x977   :  { %2805 = vmatpush1.bf16.msra.mxu0 %v5433_v6  ;;  %v5514_v6 = vld [vmem:[#allocation5 + $0x80] ss:$48 sps:$4 sm:$0xff]  }
 0x978   :  { %2806 = vmatprep.subr.bf16.mxu0 %v5441_v8  ;;  %v5517_v8 = vld [vmem:[#allocation5 + $0x88] ss:$48 sps:$4 sm:$0xff]  }
 0x97b   :  { %2807 = vmatpush1.bf16.msra.mxu0 %v5439_v9  ;;  %v5522_v9 = vld [vmem:[#allocation5 + $0xe4] ss:$48 sps:$4 sm:$0xff]  }
 0x97c   :  { %2808 = vmatprep.subr.bf16.mxu0 %v5447_v10  ;;  %v5525_v10 = vld [vmem:[#allocation5 + $0xec] ss:$48 sps:$4 sm:$0xff]  }
 0x97f   :  { %2809 = vmatpush1.bf16.msra.mxu0 %v5445_v11  ;;  %v5520_v11 = vld [vmem:[#allocation5 + $0xe0] ss:$48 sps:$4 sm:$0xff]  }
 0x980   :  { %2810 = vmatprep.subr.bf16.mxu0 %v5453_v28  ;;  %v5523_v28 = vld [vmem:[#allocation5 + $0xe8] ss:$48 sps:$4 sm:$0xff]  }
 0x983   :  { %2811 = vmatpush1.bf16.msra.mxu0 %v5451_v14  ;;  %v5528_v14 = vld [vmem:[#allocation5 + $0x144] ss:$48 sps:$4 sm:$0xff]  }
 0x984   :  { %2812 = vmatprep.subr.bf16.mxu0 %v5459_v25  ;;  %v5534_v25 = vld [vmem:[#allocation5 + $0x1a4] ss:$48 sps:$4 sm:$0xff]  }
 0x987   :  { %2813 = vmatpush1.bf16.msra.mxu0 %v5457_v24  ;;  %v5529_v24 = vld [vmem:[#allocation5 + $0x148] ss:$48 sps:$4 sm:$0xff]  }
 0x988   :  { %2900 = vmatprep.subr.bf16.mxu0 %v5465_v30  ;;  %v5532_v30 = vld [vmem:[#allocation5 + $0x1a0] ss:$48 sps:$4 sm:$0xff]  }
 0xa3d   :  { %v2085_v50 = vpop.f32.mrb[22].mxu0 }
 0xa3e   :  { %v4671_v27 = vpop.f32.mrb[23].mxu0  ;;  %v2102_v18 = vsel %vm2101_vm4, %v6736_v21, %v2085_v50  ;;  %v5543_v50 = vld [vmem:[#allocation5 + $0x20c] ss:$48 sps:$4 sm:$0xff]  }
 0xa3f   :  { %v5538_v27 = vld [vmem:[#allocation5 + $0x200] ss:$48 sps:$4 sm:$0xff]  }
 0xa41   :  { %v2090_v19 = vpop.f32.mrb[24].mxu0 }
 0xa42   :  { %v2103_v49 = vsel %vm2101_vm4, %v6738_v41, %v2090_v19  ;;  %v4674_v45 = vpop.f32.mrb[25].mxu0  ;;  %v5474_v41 = vld [vmem:[#allocation5 + $0xd4] ss:$48 sps:$4 sm:$0xff]   ;;  %v5541_v19 = vld [vmem:[#allocation5 + $0x208] ss:$48 sps:$4 sm:$0xff]  }
 0xa43   :  { %v6777_v17 = vpack.c.bf16 %v2103_v49, %v2102_v18  ;;  %v5546_v18 = vld [vmem:[#allocation5 + $0x264] ss:$48 sps:$4 sm:$0xff]   ;;  %v5549_v49 = vld [vmem:[#allocation5 + $0x26c] ss:$48 sps:$4 sm:$0xff]   ;;  %v5544_v45 = vld [vmem:[#allocation5 + $0x260] ss:$48 sps:$4 sm:$0xff]  }
 0xa45   :  { %v2095_v5 = vpop.f32.mrb[26].mxu0  ;;  %2780 = vmatmul.mubr.bf16.vlgmr.msra.gmra.mrb[24].mxu1 %v6777_v17  ;;  %2831 = vmatmul.mubr.bf16.vlgmr.msra.gmra.mrb[28].mxu0 %v6777_v17 }
 0xa46   :  { %2850 = vmatpush1.bf16.msra.mxu1 %v5460_v4  ;;  %2901 = vmatpush1.bf16.msra.mxu0 %v5463_v33  ;;  %v4677_v21 = vpop.f32.mrb[27].mxu0  ;;  %v2104_v46 = vsel %vm2101_vm4, %v6753_v29, %v2095_v5  ;;  %v5502_v29 = vld [vmem:[#allocation5 + $0x2b0] ss:$48 sps:$4 sm:$0xff]   ;;  %v5547_v4 = vld [vmem:[#allocation5 + $0x268] ss:$48 sps:$4 sm:$0xff]  }
 0xa47   :  { %2851 = vmatprep.subr.bf16.mxu1 %v5468_v59  ;;  %2902 = vmatprep.subr.bf16.mxu0 %v5471_v22  ;;  %v6785_v40 = vpack.c.bf16 %v2104_v46, %v2104_v46  ;;  %v5552_v33 = vld [vmem:[#allocation5 + $0x2c4] ss:$48 sps:$4 sm:$0xff]   ;;  %v5555_v59 = vld [vmem:[#allocation5 + $0x2cc] ss:$48 sps:$4 sm:$0xff]   ;;  %v5550_v22 = vld [vmem:[#allocation5 + $0x2c0] ss:$48 sps:$4 sm:$0xff]  }
 0xa48   :  { %2789 = vmatprep.mubr.bf16.mxu1 %v5872_v62  ;;  %2840 = vmatprep.mubr.bf16.mxu0 %v5872_v62  ;;  %v5553_v5 = vld [vmem:[#allocation5 + $0x2c8] ss:$48 sps:$4 sm:$0xff]   ;;  %v7085_v46 = vld [vmem:[#allocation16_spill] sm:$0xff] }
 0xa4a   :  { %2852 = vmatpush1.bf16.msra.mxu1 %v5466_v12  ;;  %2903 = vmatpush1.bf16.msra.mxu0 %v5469_v36  ;;  %v2203_v12 = vld [vmem:[%s7051_s5] sm:$0xff] }
 0xa4b   :  { %2853 = vmatprep.subr.bf16.mxu1 %v5474_v41  ;;  %2904 = vmatprep.subr.bf16.mxu0 %v5477_v57  ;;  %v7083_v36 = vld [vmem:[#allocation15_spill] sm:$0xff]  ;;  %v7084_v41 = vld [vmem:[#allocation17_spill] sm:$0xff] }
 0xa4c   :  { %v6809_v21 = vrot.slane %v2203_v12, %v7083_v36  ;;  %v6812_v57 = vrot.slane %v2203_v12, %v7084_v41 }
 0xa4d   :  { %2790 = vmatmul.mubr.bf16.gmra.mrb[28].mxu1 %v6785_v40  ;;  %2841 = vmatmul.mubr.bf16.gmra.mrb[32].mxu0 %v6785_v40 }
 0xa4e   :  { %2854 = vmatpush1.bf16.msra.mxu1 %v5472_v35  ;;  %2905 = vmatpush1.bf16.msra.mxu0 %v5475_v39  ;;  %v7086_v35 = vld [vmem:[#allocation18_spill] sm:$0xff] }
 0xa4f   :  { %2855 = vmatprep.subr.bf16.mxu1 %v5480_v44  ;;  %2906 = vmatprep.subr.bf16.mxu0 %v5483_v51  ;;  %v6818_v39 = vrot.slane %v2203_v12, %v7086_v35 }
 0xa50   :  { %2881 = vmatprep.mubr.bf16.mxu1 %v5872_v62  ;;  %2932 = vmatprep.mubr.bf16.mxu0 %v5872_v62 }
 0xa52   :  { %2856 = vmatpush1.bf16.msra.mxu1 %v5478_v53  ;;  %2907 = vmatpush1.bf16.msra.mxu0 %v5481_v34 }
 0xa53   :  { %2857 = vmatprep.subr.bf16.mxu1 %v5486_v54  ;;  %2908 = vmatprep.subr.bf16.mxu0 %v5489_v58 }
 0xa56   :  { %2858 = vmatpush1.bf16.msra.mxu1 %v5484_v38  ;;  %2909 = vmatpush1.bf16.msra.mxu0 %v5487_v1 }
 0xa57   :  { %2859 = vmatprep.subr.bf16.mxu1 %v5492_v2  ;;  %2910 = vmatprep.subr.bf16.mxu0 %v5495_v3 }
 0xa5a   :  { %2860 = vmatpush1.bf16.msra.mxu1 %v5490_v42  ;;  %2911 = vmatpush1.bf16.msra.mxu0 %v5493_v7 }
 0xa5b   :  { %2861 = vmatprep.subr.bf16.mxu1 %v5498_v13  ;;  %2912 = vmatprep.subr.bf16.mxu0 %v5501_v15 }
 0xa5e   :  { %2862 = vmatpush1.bf16.msra.mxu1 %v5496_v61  ;;  %2913 = vmatpush1.bf16.msra.mxu0 %v5499_v16 }
 0xa5f   :  { %2863 = vmatprep.subr.bf16.mxu1 %v5504_v20  ;;  %2914 = vmatprep.subr.bf16.mxu0 %v5507_v26 }
 0xa62   :  { %2864 = vmatpush1.bf16.msra.mxu1 %v5502_v29  ;;  %2915 = vmatpush1.bf16.msra.mxu0 %v5505_v32 }
 0xa63   :  { %2951 = vmatprep.subr.bf16.mxu1 %v5510_v37  ;;  %3002 = vmatprep.subr.bf16.mxu0 %v5513_v47 }
 0xa65   :  { %2882 = vmatmul.mubr.bf16.vlgmr.msra.gmra.mrb[32].mxu1 %v6777_v17  ;;  %2933 = vmatmul.mubr.bf16.vlgmr.msra.gmra.mrb[36].mxu0 %v6777_v17 }
 0xa66   :  { %2952 = vmatpush1.bf16.msra.mxu1 %v5508_v55  ;;  %3003 = vmatpush1.bf16.msra.mxu0 %v5511_v56 }
 0xa67   :  { %2953 = vmatprep.subr.bf16.mxu1 %v5516_v60  ;;  %3004 = vmatprep.subr.bf16.mxu0 %v5519_v63 }
 0xa68   :  { %2891 = vmatprep.mubr.bf16.mxu1 %v5872_v62  ;;  %2942 = vmatprep.mubr.bf16.mxu0 %v5872_v62 }
 0xa6a   :  { %2954 = vmatpush1.bf16.msra.mxu1 %v5514_v6  ;;  %3005 = vmatpush1.bf16.msra.mxu0 %v5517_v8 }
 0xa6b   :  { %2955 = vmatprep.subr.bf16.mxu1 %v5522_v9  ;;  %3006 = vmatprep.subr.bf16.mxu0 %v5525_v10 }
 0xa6d   :  { %2892 = vmatmul.mubr.bf16.gmra.mrb[36].mxu1 %v6785_v40  ;;  %2943 = vmatmul.mubr.bf16.gmra.mrb[40].mxu0 %v6785_v40 }
 0xa6e   :  { %2956 = vmatpush1.bf16.msra.mxu1 %v5520_v11  ;;  %3007 = vmatpush1.bf16.msra.mxu0 %v5523_v28 }
 0xa6f   :  { %2957 = vmatprep.subr.bf16.mxu1 %v5528_v14  ;;  %3008 = vmatprep.subr.bf16.mxu0 %v5531_v48 }
 0xa70   :  { %2983 = vmatprep.mubr.bf16.mxu1 %v5872_v62  ;;  %3034 = vmatprep.mubr.bf16.mxu0 %v5872_v62 }
 0xa72   :  { %2958 = vmatpush1.bf16.msra.mxu1 %v5526_v23  ;;  %3009 = vmatpush1.bf16.msra.mxu0 %v5529_v24  ;;  %v7087_v23 = vld [vmem:[#allocation14_spill] sm:$0xff] }
 0xa73   :  { %2959 = vmatprep.subr.bf16.mxu1 %v5534_v25  ;;  %3010 = vmatprep.subr.bf16.mxu0 %v5537_v52  ;;  %v2225_v24 = vsub.s32 4, %v7087_v23  ;;  %v2233_v25 = vsub.s32 6, %v7087_v23  ;;  %v2229_v52 = vsub.s32 5, %v7087_v23 }
 0xa76   :  { %2960 = vmatpush1.bf16.msra.mxu1 %v5532_v30  ;;  %3011 = vmatpush1.bf16.msra.mxu0 %v5535_v31  ;;  %v2237_v30 = vsub.s32 7, %v7087_v23  ;;  %v2226_v31 = vrot.slane %v2203_v12, %v2225_v24  ;;  %v2204_v24 = vld [vmem:[%s7051_s5 + $0x8] sm:$0xf] }
 0xa77   :  { %2961 = vmatprep.subr.bf16.mxu1 %v5540_v43  ;;  %3012 = vmatprep.subr.bf16.mxu0 %v5543_v50  ;;  %v6854_v43 = vrot.slane %v2203_v12, %v2233_v25 }
 0xa7a   :  { %2962 = vmatpush1.bf16.msra.mxu1 %v5538_v27  ;;  %3013 = vmatpush1.bf16.msra.mxu0 %v5541_v19  ;;  %v2230_v19 = vrot.slane %v2203_v12, %v2229_v52  ;;  %v2254_v52 = vrot.slane %v2204_v24, %v7086_v35 }
 0xa7b   :  { %2963 = vmatprep.subr.bf16.mxu1 %v5546_v18  ;;  %3014 = vmatprep.subr.bf16.mxu0 %v5549_v49  ;;  %v2238_v18 = vrot.slane %v2203_v12, %v2237_v30 }
 0xa7e   :  { %2964 = vmatpush1.bf16.msra.mxu1 %v5544_v45  ;;  %3015 = vmatpush1.bf16.msra.mxu0 %v5547_v4 }
 0xa7f   :  { %2965 = vmatprep.subr.bf16.mxu1 %v5552_v33  ;;  %3016 = vmatprep.subr.bf16.mxu0 %v5555_v59 }
 0xa82   :  { %2966 = vmatpush1.bf16.msra.mxu1 %v5550_v22  ;;  %3017 = vmatpush1.bf16.msra.mxu0 %v5553_v5 }
 0xa85   :  { %2984 = vmatmul.mubr.bf16.vlgmr.msra.gmra.mrb[40].mxu1 %v6777_v17  ;;  %3035 = vmatmul.mubr.bf16.vlgmr.msra.gmra.mrb[44].mxu0 %v6777_v17  ;;  %v6815_v17 = vrot.slane %v2203_v12, %v7085_v46 }
 0xa86   :  { %2993 = vmatprep.mubr.bf16.mxu1 %v5872_v62  ;;  %3044 = vmatprep.mubr.bf16.mxu0 %v5872_v62 }
 0xa8d   :  { %2994 = vmatmul.mubr.bf16.gmra.mrb[44].mxu1 %v6785_v40  ;;  %3045 = vmatmul.mubr.bf16.gmra.mrb[48].mxu0 %v6785_v40 }
 0xb18   :  { %v2781_v62 = vpop.f32.mrb[24].mxu1  ;;  %v2832_v44 = vpop.f32.mrb[28].mxu0 }
 0xb19   :  { %v2782_v40 = vadd.f32 %v2781_v62, %v6809_v21  ;;  %v2833_v51 = vadd.f32 %v2832_v44, %v6812_v57  ;;  %v2783_v53 = vpop.f32.mrb[25].mxu1  ;;  %v2834_v34 = vpop.f32.mrb[29].mxu0 }
 0xb1a   :  { %v2784_v54 = vadd.f32 %v2783_v53, %v6815_v17  ;;  %v2835_v58 = vadd.f32 %v2834_v34, %v6818_v39  ;;  %v2785_v38 = vpop.f32.mrb[26].mxu1  ;;  %v2836_v1 = vpop.f32.mrb[30].mxu0 }
 0xb1b   :  { %v2786_v2 = vadd.f32 %v2785_v38, %v6809_v21  ;;  %v2837_v3 = vadd.f32 %v2836_v1, %v6812_v57  ;;  %v2787_v42 = vpop.f32.mrb[27].mxu1  ;;  %v2838_v7 = vpop.f32.mrb[31].mxu0  ;;  %v3056_v61 = vmul.f32 0.25, %v2782_v40  ;;  %v6828_v16 = vmul.f32 0.25, %v2833_v51 }
 0xb1c   :  { %v2788_v13 = vadd.f32 %v2787_v42, %v6815_v17  ;;  %v2839_v15 = vadd.f32 %v2838_v7, %v6818_v39  ;;  %v6832_v29 = vmul.f32 0.25, %v2784_v54  ;;  %v6834_v32 = vmul.f32 0.25, %v2835_v58 }
 0xb1d   :  { %v3057_v20 = vmul.f32 0.25, %v2786_v2  ;;  %v6830_v26 = vmul.f32 0.25, %v2837_v3 }
 0xb1e   :  { %v6836_v37 = vmul.f32 0.25, %v2788_v13  ;;  %v6838_v47 = vmul.f32 0.25, %v2839_v15 }
 0xb1f   :  { %v3059_v55 = vpack.c.bf16 %v3057_v20, %v3056_v61  ;;  %v3359_v56 = vpack.c.bf16 %v6830_v26, %v6828_v16 }
 0xb20   :  { %v3210_v60 = vpack.c.bf16 %v6836_v37, %v6832_v29  ;;  %v3508_v63 = vpack.c.bf16 %v6838_v47, %v6834_v32  ;;  %v2791_v6 = vpop.f32.mrb[28].mxu1  ;;  %v6846_v8 = vpop.f32.mrb[32].mxu0 }
 0xb21   :  { %v2793_v9 = vpop.f32.mrb[29].mxu1  ;;  %v6848_v10 = vpop.f32.mrb[33].mxu0  ;;  %4682 = vmatprep.mubr.bf16.mxu1 %v3059_v55 }
 0xb22   :  { %v2795_v11 = vpop.f32.mrb[30].mxu1  ;;  %v2846_v28 = vpop.f32.mrb[34].mxu0  ;;  %v2794_v25 = vadd.f32 %v2793_v9, %v6815_v17 }
 0xb23   :  { %v2796_v14 = vpop.f32.mrb[31].mxu1  ;;  %v2847_v48 = vpop.f32.mrb[35].mxu0  ;;  %v2792_v11 = vadd.f32 %v2791_v6, %v6809_v21  ;;  %v2242_v21 = vrot.slane %v2204_v24, %v7083_v36  ;;  %v2250_v6 = vrot.slane %v2204_v24, %v7084_v41 }
 0xb25   :  { %v3058_v28 = vmul.f32 0.25, %v2792_v11 }
 0xb27   :  { %v3060_v48 = vpack.c.bf16 %v3058_v28, %v3058_v28  ;;  %v6892_v28 = vld [vmem:[%s7058_s12 + $0x10] sm:$0x3] }
 0xb38   :  { %v2883_v50 = vpop.f32.mrb[32].mxu1  ;;  %v2934_v27 = vpop.f32.mrb[36].mxu0 }
 0xb39   :  { %v2885_v49 = vpop.f32.mrb[33].mxu1  ;;  %v2936_v45 = vpop.f32.mrb[37].mxu0  ;;  %v2884_v59 = vadd.f32 %v2883_v50, %v2226_v31  ;;  %v2935_v22 = vadd.f32 %v2934_v27, %v6854_v43  ;;  %v2246_v50 = vrot.slane %v2204_v24, %v7085_v46  ;;  %v3209_v27 = vmul.f32 0.25, %v2794_v25  ;;  %v6903_v25 = vld [vmem:[%s7058_s12 + $0x8] sm:$0xff] }
 0xb3a   :  { %v2887_v4 = vpop.f32.mrb[34].mxu1  ;;  %v2938_v33 = vpop.f32.mrb[38].mxu0  ;;  %v2886_v51 = vadd.f32 %v2885_v49, %v2230_v19  ;;  %v2937_v53 = vadd.f32 %v2936_v45, %v2238_v18 }
 0xb3b   :  { %v2888_v5 = vadd.f32 %v2887_v4, %v2226_v31  ;;  %v2939_v62 = vadd.f32 %v2938_v33, %v6854_v43  ;;  %v2889_v44 = vpop.f32.mrb[35].mxu1  ;;  %v2940_v40 = vpop.f32.mrb[39].mxu0 }
 0xb3c   :  { %v2890_v34 = vadd.f32 %v2889_v44, %v2230_v19  ;;  %v2941_v54 = vadd.f32 %v2940_v40, %v2238_v18 }
 0xb3d   :  { %v3061_v58 = vpack.c.bf16 %v2888_v5, %v2884_v59  ;;  %v6858_v38 = vpack.c.bf16 %v2939_v62, %v2935_v22  ;;  %v3211_v5 = vpack.c.bf16 %v3209_v27, %v3209_v27 }
 0xb3e   :  { %v3212_v12 = vpack.c.bf16 %v2890_v34, %v2886_v51  ;;  %v6860_v1 = vpack.c.bf16 %v2941_v54, %v2937_v53 }
 0xb3f   :  { %4678 = vmatprep.subr.bf16.mxu1 %v3061_v58 }
 0xb40   :  { %v2893_v2 = vpop.f32.mrb[36].mxu1  ;;  %v6862_v3 = vpop.f32.mrb[40].mxu0  ;;  %4679 = vmatpush3.bf16.xpose.msra.mxu1 %v3061_v58 }
 0xb41   :  { %v2894_v42 = vadd.f32 %v2893_v2, %v2226_v31  ;;  %v2895_v7 = vpop.f32.mrb[37].mxu1  ;;  %v2946_v13 = vpop.f32.mrb[41].mxu0 }
 0xb42   :  { %v6864_v15 = vadd.f32 %v2946_v13, %v2238_v18  ;;  %v2897_v61 = vpop.f32.mrb[38].mxu1  ;;  %v2948_v20 = vpop.f32.mrb[42].mxu0  ;;  %v2896_v14 = vadd.f32 %v2895_v7, %v2230_v19 }
 0xb43   :  { %v3062_v29 = vpack.c.bf16 %v2894_v42, %v2894_v42  ;;  %v2898_v37 = vpop.f32.mrb[39].mxu1  ;;  %v2949_v55 = vpop.f32.mrb[43].mxu0 }
 0xb44   :  { %v3213_v23 = vpack.c.bf16 %v2896_v14, %v2896_v14  ;;  %v6897_v14 = vld [vmem:[%s7058_s12] sm:$0xff] }
 0xb45   :  { %4680 = vmatprep.subr.bf16.mxu1 %v3062_v29 }
 0xb48   :  { %4681 = vmatpush3.bf16.xpose.msra.mxu1 %v3062_v29 }
 0xb49   :  { %4694 = vmatprep.subr.bf16.mxu1 %v3212_v12 }
 0xb4f   :  { %4683 = vmatmul.mubr.bf16.vlgmr.msra.gmra.mrb[48].mxu1 %v3060_v48 }
 0xb50   :  { %4695 = vmatpush3.bf16.xpose.msra.mxu1 %v3212_v12  ;;  %4698 = vmatprep.mubr.bf16.mxu1 %v3210_v60 }
 0xb51   :  { %4696 = vmatprep.subr.bf16.mxu1 %v3213_v23 }
 0xb58   :  { %v2985_v30 = vpop.f32.mrb[40].mxu1  ;;  %v3036_v31 = vpop.f32.mrb[44].mxu0  ;;  %4697 = vmatpush3.bf16.xpose.msra.mxu1 %v3213_v23 }
 0xb59   :  { %v2987_v60 = vpop.f32.mrb[41].mxu1  ;;  %v3038_v19 = vpop.f32.mrb[45].mxu0  ;;  %v2986_v4 = vadd.f32 %v2985_v30, %v2242_v21  ;;  %v3037_v33 = vadd.f32 %v3036_v31, %v2250_v6 }
 0xb5a   :  { %v3039_v18 = vadd.f32 %v3038_v19, %v2254_v52  ;;  %v2989_v49 = vpop.f32.mrb[42].mxu1  ;;  %v3040_v45 = vpop.f32.mrb[46].mxu0  ;;  %v2988_v36 = vadd.f32 %v2987_v60, %v2246_v50 }
 0xb5b   :  { %v2990_v17 = vadd.f32 %v2989_v49, %v2242_v21  ;;  %v3041_v9 = vadd.f32 %v3040_v45, %v2250_v6  ;;  %v2991_v35 = vpop.f32.mrb[43].mxu1  ;;  %v3042_v59 = vpop.f32.mrb[47].mxu0 }
 0xb5c   :  { %v2992_v22 = vadd.f32 %v2991_v35, %v2246_v50  ;;  %v3043_v41 = vadd.f32 %v3042_v59, %v2254_v52 }
 0xb5d   :  { %v3063_v62 = vpack.c.bf16 %v2990_v17, %v2986_v4  ;;  %v3363_v44 = vpack.c.bf16 %v3041_v9, %v3037_v33 }
 0xb5e   :  { %v6875_v40 = vpack.c.bf16 %v2992_v22, %v2988_v36  ;;  %v6877_v46 = vpack.c.bf16 %v3043_v41, %v3039_v18 }
 0xb5f   :  { %4686 = vmatprep.subr.bf16.mxu0 %v3063_v62  ;;  %4699 = vmatmul.mubr.bf16.vlgmr.msra.gmra.mrb[52].mxu1 %v3211_v5 }
 0xb60   :  { %4718 = vmatprep.subr.bf16.mxu1 %v3363_v44  ;;  %v2995_v51 = vpop.f32.mrb[44].mxu1  ;;  %v3046_v53 = vpop.f32.mrb[48].mxu0  ;;  %4687 = vmatpush3.bf16.msra.mxu0 %v3063_v62 }
 0xb61   :  { %v2996_v34 = vadd.f32 %v2995_v51, %v2242_v21  ;;  %v3047_v54 = vadd.f32 %v3046_v53, %v2250_v6  ;;  %4719 = vmatpush3.bf16.msra.mxu1 %v3363_v44  ;;  %v2997_v58 = vpop.f32.mrb[45].mxu1  ;;  %v3048_v12 = vpop.f32.mrb[49].mxu0 }
 0xb62   :  { %v6879_v2 = vadd.f32 %v2997_v58, %v2246_v50  ;;  %v6881_v42 = vadd.f32 %v3048_v12, %v2254_v52  ;;  %v2999_v7 = vpop.f32.mrb[46].mxu1  ;;  %v3050_v13 = vpop.f32.mrb[50].mxu0 }
 0xb63   :  { %v3064_v61 = vpack.c.bf16 %v2996_v34, %v2996_v34  ;;  %v3364_v20 = vpack.c.bf16 %v3047_v54, %v3047_v54  ;;  %v3000_v29 = vpop.f32.mrb[47].mxu1  ;;  %v3051_v37 = vpop.f32.mrb[51].mxu0 }
 0xb65   :  { %v3157_v55 = vsel %vm3155_vm5, %v3064_v61, 0  ;;  %v3455_v11 = vsel %vm3155_vm5, %v3364_v20, 0  ;;  %5393 = vmatprep.subr.msk.bf16.mxu0 %vm3155_vm5, %v3064_v61  ;;  %5395 = vmatprep.subr.msk.bf16.mxu1 %vm3155_vm5, %v3364_v20 }
 0xb66   :  { %4689 = vmatpush3.bf16.msra.mxu0 %v3157_v55  ;;  %4721 = vmatpush3.bf16.msra.mxu1 %v3455_v11 }
 0xb67   :  { %4702 = vmatprep.subr.bf16.mxu0 %v6875_v40  ;;  %4726 = vmatprep.subr.bf16.mxu1 %v6860_v1 }
 0xc22   :  { %v4684_v48 = vpop.f32.mrb[48].mxu1 }
 0xc23   :  { %v3108_v23 = vadd.f32 %v4684_v48, %v6892_v28  ;;  %v3099_v24 = vpop.f32.mrb[49].mxu1 }
 0xc24   :  { %v3100_v52 = vadd.f32 %v3099_v24, %v6897_v14  ;;  %v4685_v21 = vpop.f32.mrb[50].mxu1 }
 0xc25   :  { %v3102_v6 = vpop.f32.mrb[51].mxu1  ;;  %v3120_v30 = vsel %vm3119_vm6, %v3108_v23, -inf }
 0xc26   :  { %v3103_v31 = vadd.f32 %v3102_v6, %v6903_v25  ;;  %3121 = vmax.xlane.f32.xlu1 %v3120_v30  ;;  %v3113_v50 = vsel %vm2005_vm3, %v3100_v52, -inf }
 0xc27   :  { %3114 = vmax.xlane.f32.xlu0 %v3113_v50 }
 0xc28   :  { %v3116_v27 = vsel %vm2005_vm3, %v3103_v31, -inf }
 0xc2b   :  { %3117 = vmax.xlane.f32.xlu0 %v3116_v27 }
 0xc32   :  { %v4700_v60 = vpop.f32.mrb[52].mxu1 }
 0xc33   :  { %v3250_v19 = vpop.f32.mrb[53].mxu1  ;;  %v3259_v4 = vadd.f32 %v4700_v60, %v6892_v28 }
 0xc34   :  { %v3251_v18 = vadd.f32 %v3250_v19, %v6897_v14  ;;  %v4701_v49 = vpop.f32.mrb[54].mxu1 }
 0xc35   :  { %v3253_v45 = vpop.f32.mrb[55].mxu1  ;;  %v3270_v35 = vsel %vm3119_vm6, %v3259_v4, -inf }
 0xc36   :  { %v3254_v33 = vadd.f32 %v3253_v45, %v6903_v25  ;;  %v3264_v17 = vsel %vm2005_vm3, %v3251_v18, -inf }
 0xc37   :  { %3265 = vmax.xlane.f32.xlu1 %v3264_v17 }
 0xc38   :  { %v3267_v9 = vsel %vm2005_vm3, %v3254_v33, -inf }
 0xc39   :  { %3268 = vmax.xlane.f32.xlu0 %v3267_v9 }
 0xc3b   :  { %3271 = vmax.xlane.f32.xlu1 %v3270_v35 }
 0xcb3   :  { %v3122_v59 = vpop.xlane.xlu1 %3121 }
 0xcb4   :  { %v3125_v36 = vsub.f32 %v3108_v23, %v3122_v59  ;;  %v3115_v22 = vpop.xlane.xlu0 %3114 }
 0xcb5   :  { %v3123_v41 = vsub.f32 %v3100_v52, %v3115_v22 }
 0xcb6   :  { %v3130_v5 = vmul.f32 1.442695, %v3125_v36 }
 0xcb7   :  { %v3126_v62 = vmul.f32 1.442695, %v3123_v41  ;;  %v3215_v41 = vpack.c.bf16 %v6879_v2, %v6879_v2  ;;  %v2945_v2 = vadd.f32 %v6862_v3, %v6854_v43 }
 0xcb8   :  { %v3118_v44 = vpop.xlane.xlu0 %3117 }
 0xcb9   :  { %5694 = vpow2.f32 %v3126_v62  ;;  %v3124_v51 = vsub.f32 %v3103_v31, %v3118_v44 }
 0xcba   :  { %5696 = vpow2.f32 %v3130_v5  ;;  %v3306_v5 = vsel %vm3155_vm5, %v3215_v41, 0 }
 0xcbb   :  { %v3128_v53 = vmul.f32 1.442695, %v3124_v51 }
 0xcbd   :  { %5698 = vpow2.f32 %v3128_v53 }
 0xcc3   :  { %v5695_v34 = vpop.eup %5694 }
 0xcc4   :  { %v3266_v54 = vpop.xlane.xlu1 %3265  ;;  %v3132_v58 = vsel %vm2005_vm3, %v5695_v34, 0.0  ;;  %v5697_v12 = vpop.eup %5696 }
 0xcc5   :  { %v3273_v7 = vsub.f32 %v3251_v18, %v3266_v54  ;;  %3133 = vadd.xlane.f32.xlu0 %v3132_v58  ;;  %v3138_v55 = vsel %vm3119_vm6, %v5697_v12, 0.0 }
 0xcc6   :  { %v3269_v13 = vpop.xlane.xlu0 %3268 }
 0xcc7   :  { %v5699_v61 = vpop.eup %5698  ;;  %v3276_v20 = vmul.f32 1.442695, %v3273_v7  ;;  %v3274_v29 = vsub.f32 %v3254_v33, %v3269_v13  ;;  %v2843_v7 = vadd.f32 %v6846_v8, %v6812_v57  ;;  %v3513_v13 = vpack.c.bf16 %v6881_v42, %v6881_v42 }
 0xcc8   :  { %v3272_v37 = vpop.xlane.xlu1 %3271  ;;  %v3135_v11 = vsel %vm2005_vm3, %v5699_v61, 0.0 }
 0xcc9   :  { %5700 = vpow2.f32 %v3276_v20  ;;  %v3278_v48 = vmul.f32 1.442695, %v3274_v29  ;;  %v3275_v23 = vsub.f32 %v3259_v4, %v3272_v37  ;;  %3139 = vadd.xlane.f32.xlu0 %v3138_v55  ;;  %3136 = vadd.xlane.f32.xlu1 %v3135_v11  ;;  %v3358_v43 = vmul.f32 0.25, %v2843_v7 }
 0xcca   :  { %v3604_v16 = vsel %vm3155_vm5, %v3513_v13, 0 }
 0xccb   :  { %5702 = vpow2.f32 %v3278_v48  ;;  %v3280_v24 = vmul.f32 1.442695, %v3275_v23  ;;  %v3360_v3 = vpack.c.bf16 %v3358_v43, %v3358_v43 }
 0xccd   :  { %5704 = vpow2.f32 %v3280_v24 }
 0xcd3   :  { %v5701_v52 = vpop.eup %5700 }
 0xcd4   :  { %v3282_v21 = vsel %vm2005_vm3, %v5701_v52, 0.0 }
 0xcd5   :  { %v5703_v6 = vpop.eup %5702  ;;  %3283 = vadd.xlane.f32.xlu1 %v3282_v21 }
 0xcd6   :  { %v3285_v30 = vsel %vm2005_vm3, %v5703_v6, 0.0 }
 0xcd7   :  { %v5705_v31 = vpop.eup %5704  ;;  %3286 = vadd.xlane.f32.xlu0 %v3285_v30 }
 0xcd8   :  { %v3288_v50 = vsel %vm3119_vm6, %v5705_v31, 0.0 }
 0xcd9   :  { %3289 = vadd.xlane.f32.xlu1 %v3288_v50 }
 0xd52   :  { %v3134_v27 = vpop.xlane.xlu0 %3133 }
 0xd53   :  { %5706 = vrcp.f32 %v3134_v27 }
 0xd56   :  { %v3137_v60 = vpop.xlane.xlu1 %3136  ;;  %v3140_v19 = vpop.xlane.xlu0 %3139 }
 0xd57   :  { %5708 = vrcp.f32 %v3137_v60 }
 0xd58   :  { %5710 = vrcp.f32 %v3140_v19 }
 0xd5d   :  { %v5707_v18 = vpop.eup %5706 }
 0xd5e   :  { %v3144_v33 = vmul.f32 %v5707_v18, %v5695_v34 }
 0xd61   :  { %v5709_v49 = vpop.eup %5708 }
 0xd62   :  { %v5711_v45 = vpop.eup %5710  ;;  %v3284_v4 = vpop.xlane.xlu1 %3283  ;;  %v3145_v17 = vmul.f32 %v5709_v49, %v5699_v61 }
 0xd63   :  { %v3146_v9 = vmul.f32 %v5711_v45, %v5697_v12  ;;  %5712 = vrcp.f32 %v3284_v4  ;;  %v3362_v12 = vpack.c.bf16 %v2945_v2, %v2945_v2 }
 0xd64   :  { %v3287_v35 = vpop.xlane.xlu0 %3286  ;;  %v3147_v59 = vpack.c.bf16 %v3145_v17, %v3144_v33 }
 0xd65   :  { %v3148_v36 = vpack.c.bf16 %v3146_v9, %v3146_v9  ;;  %5714 = vrcp.f32 %v3287_v35 }
 0xd66   :  { %v3290_v22 = vpop.xlane.xlu1 %3289  ;;  %4690 = vmatprep.mubr.msk.bf16.mxu0 %vm2005_vm3, %v3147_v59 }
 0xd67   :  { %5716 = vrcp.f32 %v3290_v22  ;;  %4691 = vmatmul.mubr.msk.bf16.vlgmr.msra.gmra.mrb[52].mxu0 %vm2005_vm3, %v3148_v36 }
 0xd68   :  { %4703 = vmatpush3.bf16.msra.mxu0 %v6875_v40 }
 0xd69   :  { %5394 = vmatprep.subr.msk.bf16.mxu0 %vm3155_vm5, %v3215_v41 }
 0xd6c   :  { %4705 = vmatpush3.bf16.msra.mxu0 %v3306_v5 }
 0xd6d   :  { %v5713_v62 = vpop.eup %5712  ;;  %4710 = vmatprep.subr.bf16.mxu0 %v6858_v38 }
 0xd6e   :  { %v3294_v51 = vmul.f32 %v5713_v62, %v5701_v52 }
 0xd6f   :  { %v5715_v44 = vpop.eup %5714 }
 0xd70   :  { %v3295_v53 = vmul.f32 %v5715_v44, %v5703_v6 }
 0xd71   :  { %v5717_v34 = vpop.eup %5716 }
 0xd72   :  { %v3296_v54 = vmul.f32 %v5717_v34, %v5705_v31  ;;  %v3297_v58 = vpack.c.bf16 %v3295_v53, %v3294_v51 }
 0xd74   :  { %4706 = vmatprep.mubr.msk.bf16.mxu0 %vm2005_vm3, %v3297_v58  ;;  %v3298_v40 = vpack.c.bf16 %v3296_v54, %v3296_v54 }
 0xd76   :  { %4707 = vmatmul.mubr.msk.bf16.vlgmr.msra.gmra.mrb[56].mxu0 %vm2005_vm3, %v3298_v40  ;;  %v3511_v40 = vpack.c.bf16 %v6864_v15, %v6864_v15 }
 0xd77   :  { %4711 = vmatpush3.bf16.xpose.msra.mxu0 %v6858_v38  ;;  %4714 = vmatprep.mubr.bf16.mxu0 %v3359_v56 }
 0xd78   :  { %4712 = vmatprep.subr.bf16.mxu0 %v3362_v12 }
 0xd7f   :  { %4713 = vmatpush3.bf16.xpose.msra.mxu0 %v3362_v12  ;;  %v2845_v12 = vadd.f32 %v6848_v10, %v6818_v39 }
 0xd80   :  { %4734 = vmatprep.subr.bf16.mxu0 %v6877_v46 }
 0xd81   :  { %v3507_v7 = vmul.f32 0.25, %v2845_v12 }
 0xd83   :  { %v3509_v43 = vpack.c.bf16 %v3507_v7, %v3507_v7 }
 0xd86   :  { %4715 = vmatmul.mubr.bf16.vlgmr.msra.gmra.mrb[60].mxu0 %v3360_v3 }
 0xd87   :  { %4735 = vmatpush3.bf16.msra.mxu0 %v6877_v46 }
 0xd88   :  { %5396 = vmatprep.subr.msk.bf16.mxu0 %vm3155_vm5, %v3513_v13 }
 0xd8b   :  { %4737 = vmatpush3.bf16.msra.mxu0 %v3604_v16 }
 0xe3a   :  { %v6946_v26 = vpop.f32.mrb[52].mxu0 }
 0xe3b   :  { %v6948_v56 = vpop.f32.mrb[53].mxu0 }
 0xe3c   :  { %v4693_v57 = vpop.f32.mrb[54].mxu0 }
 0xe3d   :  { %v6950_v8 = vpop.f32.mrb[55].mxu0 }
 0xe3e   :  { %v5379_v38 = vpack.c.bf16 %v6950_v8, %v6948_v56  ;;  %v5560_v56 = vld [vmem:[#allocation7 + $0x8] sm:$0xff]   ;;  %v5562_v8 = vld [vmem:[#allocation7 + $0x50] sm:$0xff]  }
 0xe49   :  { %v6954_v61 = vpop.f32.mrb[56].mxu0 }
 0xe4a   :  { %v3342_v42 = vpop.f32.mrb[57].mxu0 }
 0xe4b   :  { %v4709_v20 = vpop.f32.mrb[58].mxu0 }
 0xe4c   :  { %v3345_v46 = vpop.f32.mrb[59].mxu0 }
 0xe4d   :  { %v5377_v29 = vpack.c.bf16 %v3345_v46, %v3342_v42 }
 0xe4f   :  { %5378 = vmatprep.subr.bf16.mxu0 %v5377_v29 }
 0xe59   :  { %v4716_v37 = vpop.f32.mrb[60].mxu0 }
 0xe5a   :  { %v3399_v55 = vpop.f32.mrb[61].mxu0  ;;  %v3408_v24 = vadd.f32 %v4716_v37, %v6892_v28 }
 0xe5b   :  { %v3400_v11 = vadd.f32 %v3399_v55, %v6897_v14  ;;  %v4717_v48 = vpop.f32.mrb[62].mxu0 }
 0xe5c   :  { %v3402_v23 = vpop.f32.mrb[63].mxu0  ;;  %v3419_v30 = vsel %vm3119_vm6, %v3408_v24, -inf }
 0xe5d   :  { %v3403_v52 = vadd.f32 %v3402_v23, %v6903_v25  ;;  %v3413_v21 = vsel %vm2005_vm3, %v3400_v11, -inf }
 0xe5e   :  { %3414 = vmax.xlane.f32.xlu0 %v3413_v21 }
 0xe5f   :  { %v3416_v6 = vsel %vm2005_vm3, %v3403_v52, -inf }
 0xe60   :  { %3417 = vmax.xlane.f32.xlu1 %v3416_v6 }
 0xe62   :  { %3420 = vmax.xlane.f32.xlu0 %v3419_v30 }
 0xeeb   :  { %v3415_v31 = vpop.xlane.xlu0 %3414 }
 0xeec   :  { %v3422_v50 = vsub.f32 %v3400_v11, %v3415_v31 }
 0xeed   :  { %v3418_v27 = vpop.xlane.xlu1 %3417 }
 0xeee   :  { %v3425_v60 = vmul.f32 1.442695, %v3422_v50  ;;  %v3423_v19 = vsub.f32 %v3403_v52, %v3418_v27 }
 0xeef   :  { %v3421_v18 = vpop.xlane.xlu0 %3420 }
 0xef0   :  { %5718 = vpow2.f32 %v3425_v60  ;;  %v3427_v49 = vmul.f32 1.442695, %v3423_v19  ;;  %v3424_v45 = vsub.f32 %v3408_v24, %v3421_v18 }
 0xef2   :  { %5720 = vpow2.f32 %v3427_v49  ;;  %v3429_v4 = vmul.f32 1.442695, %v3424_v45 }
 0xef4   :  { %5722 = vpow2.f32 %v3429_v4 }
 0xefa   :  { %v5719_v33 = vpop.eup %5718 }
 0xefb   :  { %v3431_v17 = vsel %vm2005_vm3, %v5719_v33, 0.0 }
 0xefc   :  { %v5721_v9 = vpop.eup %5720  ;;  %3432 = vadd.xlane.f32.xlu1 %v3431_v17 }
 0xefd   :  { %v3434_v35 = vsel %vm2005_vm3, %v5721_v9, 0.0 }
 0xefe   :  { %v5723_v59 = vpop.eup %5722  ;;  %3435 = vadd.xlane.f32.xlu0 %v3434_v35 }
 0xeff   :  { %v3437_v36 = vsel %vm3119_vm6, %v5723_v59, 0.0 }
 0xf00   :  { %3438 = vadd.xlane.f32.xlu1 %v3437_v36  ;;  %v5556_v36 = vld [vmem:[#allocation7 + $0x40] sm:$0xff]  }
 0xf89   :  { %v3433_v22 = vpop.xlane.xlu1 %3432 }
 0xf8a   :  { %5724 = vrcp.f32 %v3433_v22  ;;  %v5557_v22 = vld [vmem:[#allocation7] sm:$0xff]  }
 0xf8b   :  { %v3436_v41 = vpop.xlane.xlu0 %3435 }
 0xf8c   :  { %5726 = vrcp.f32 %v3436_v41  ;;  %v5558_v41 = vld [vmem:[#allocation7 + $0x48] sm:$0xff]  }
 0xf8d   :  { %v3439_v5 = vpop.xlane.xlu1 %3438 }
 0xf8e   :  { %5728 = vrcp.f32 %v3439_v5  ;;  %v5570_v5 = vld [vmem:[#allocation7 + $0x60] sm:$0xff]  }
 0xf94   :  { %v5725_v62 = vpop.eup %5724 }
 0xf95   :  { %v3443_v51 = vmul.f32 %v5725_v62, %v5719_v33  ;;  %v5572_v62 = vld [vmem:[#allocation7 + $0x20] sm:$0xff]  }
 0xf96   :  { %v5727_v44 = vpop.eup %5726 }
 0xf97   :  { %v3444_v53 = vmul.f32 %v5727_v44, %v5721_v9  ;;  %v5574_v44 = vld [vmem:[#allocation7 + $0x68] sm:$0xff]  }
 0xf98   :  { %v5729_v34 = vpop.eup %5728 }
 0xf99   :  { %v3445_v2 = vmul.f32 %v5729_v34, %v5723_v59  ;;  %v3446_v54 = vpack.c.bf16 %v3444_v53, %v3443_v51  ;;  %v3654_v59 = vld [vmem:[%s7059_s13] sm:$0x3]  ;;  %v5578_v53 = vld [vmem:[#allocation7 + $0x70] sm:$0xff]  }
 0xf9a   :  { %v5576_v51 = vld [vmem:[#allocation7 + $0x28] sm:$0xff]   ;;  %v5580_v34 = vld [vmem:[#allocation7 + $0x30] sm:$0xff]  }
 0xf9b   :  { %4722 = vmatprep.mubr.msk.bf16.mxu1 %vm2005_vm3, %v3446_v54  ;;  %v3447_v58 = vpack.c.bf16 %v3445_v2, %v3445_v2  ;;  %v5582_v2 = vld [vmem:[#allocation7 + $0x78] sm:$0xff]  }
 0xf9c   :  { %v5584_v54 = vld [vmem:[#allocation7 + $0x38] sm:$0xff]  }
 0xf9d   :  { %4723 = vmatmul.mubr.msk.bf16.vlgmr.msra.gmra.mrb[56].mxu1 %vm2005_vm3, %v3447_v58 }
 0xf9e   :  { %4727 = vmatpush3.bf16.xpose.msra.mxu1 %v6860_v1  ;;  %4730 = vmatprep.mubr.bf16.mxu1 %v3508_v63 }
 0xf9f   :  { %4728 = vmatprep.subr.bf16.mxu1 %v3511_v40 }
 0xfa6   :  { %4729 = vmatpush3.bf16.xpose.msra.mxu1 %v3511_v40 }
 0xfad   :  { %4731 = vmatmul.mubr.bf16.vlgmr.msra.gmra.mrb[60].mxu1 %v3509_v43 }
 0xfae   :  { %3805 = vmatprep.mubr.f32.mxu1 %v7081_v0 }
0x1070   :  { %v6976_v3 = vpop.f32.mrb[56].mxu1 }
0x1071   :  { %v6978_v15 = vpop.f32.mrb[57].mxu1 }
0x1072   :  { %v4725_v13 = vpop.f32.mrb[58].mxu1 }
0x1073   :  { %v6980_v1 = vpop.f32.mrb[59].mxu1  ;;  %v5559_v13 = vld [vmem:[#allocation7 + $0xc0] sm:$0xff]  }
0x1074   :  { %v5383_v32 = vpack.c.bf16 %v6980_v1, %v6978_v15  ;;  %v5571_v15 = vld [vmem:[#allocation7 + $0xd8] sm:$0xff]  }
0x1075   :  { %v5573_v1 = vld [vmem:[#allocation7 + $0x98] sm:$0xff]  }
0x1080   :  { %v4732_v47 = vpop.f32.mrb[60].mxu1 }
0x1081   :  { %v3548_v63 = vpop.f32.mrb[61].mxu1  ;;  %v3557_v57 = vadd.f32 %v4732_v47, %v6892_v28  ;;  %v5561_v47 = vld [vmem:[#allocation7 + $0x80] sm:$0xff]  }
0x1082   :  { %v3549_v39 = vadd.f32 %v3548_v63, %v6897_v14  ;;  %v4733_v10 = vpop.f32.mrb[62].mxu1  ;;  %v5563_v63 = vld [vmem:[#allocation7 + $0xc8] sm:$0xff]  }
0x1083   :  { %v3551_v16 = vpop.f32.mrb[63].mxu1  ;;  %v3568_v29 = vsel %vm3119_vm6, %v3557_v57, -inf  ;;  %v5567_v10 = vld [vmem:[#allocation7 + $0xd0] sm:$0xff]  }
0x1084   :  { %v3552_v42 = vadd.f32 %v3551_v16, %v6903_v25  ;;  %v3562_v20 = vsel %vm2005_vm3, %v3549_v39, -inf  ;;  %v5569_v16 = vld [vmem:[#allocation7 + $0x90] sm:$0xff]  }
0x1085   :  { %3563 = vmax.xlane.f32.xlu0 %v3562_v20  ;;  %v5583_v20 = vld [vmem:[#allocation7 + $0xf0] sm:$0xff]  }
0x1086   :  { %v3565_v46 = vsel %vm2005_vm3, %v3552_v42, -inf }
0x1087   :  { %3566 = vmax.xlane.f32.xlu1 %v3565_v46  ;;  %v5585_v46 = vld [vmem:[#allocation7 + $0xb0] sm:$0xff]  }
0x1089   :  { %3569 = vmax.xlane.f32.xlu0 %v3568_v29 }
0x1112   :  { %v3564_v37 = vpop.xlane.xlu0 %3563 }
0x1113   :  { %v3571_v55 = vsub.f32 %v3549_v39, %v3564_v37  ;;  %v5565_v39 = vld [vmem:[#allocation7 + $0x88] sm:$0xff]  }
0x1114   :  { %v3567_v11 = vpop.xlane.xlu1 %3566 }
0x1115   :  { %v3574_v48 = vmul.f32 1.442695, %v3571_v55  ;;  %v3572_v14 = vsub.f32 %v3552_v42, %v3567_v11  ;;  %v5579_v42 = vld [vmem:[#allocation7 + $0xe8] sm:$0xff]  }
0x1116   :  { %v3570_v23 = vpop.xlane.xlu0 %3569 }
0x1117   :  { %5730 = vpow2.f32 %v3574_v48  ;;  %v3576_v24 = vmul.f32 1.442695, %v3572_v14  ;;  %v3573_v28 = vsub.f32 %v3557_v57, %v3570_v23  ;;  %v5577_v57 = vld [vmem:[#allocation7 + $0xa0] sm:$0xff]   ;;  %v5586_v48 = vld [vmem:[#allocation7 + $0xf8] sm:$0xff]  }
0x1118   :  { %v5587_v14 = vld [vmem:[#allocation7 + $0xb8] sm:$0xff]   ;;  %v5588_v23 = vld [vmem:[#allocation8] sm:$0xff]  }
0x1119   :  { %5732 = vpow2.f32 %v3576_v24  ;;  %v3578_v25 = vmul.f32 1.442695, %v3573_v28  ;;  %v5589_v24 = vld [vmem:[#allocation8 + $0x8] sm:$0xff]   ;;  %v5590_v28 = vld [vmem:[#allocation8 + $0x10] sm:$0xff]  }
0x111b   :  { %5734 = vpow2.f32 %v3578_v25  ;;  %v5591_v25 = vld [vmem:[#allocation8 + $0x18] sm:$0xff]  }
0x1121   :  { %v5731_v52 = vpop.eup %5730 }
0x1122   :  { %v3580_v21 = vsel %vm2005_vm3, %v5731_v52, 0.0 }
0x1123   :  { %v5733_v6 = vpop.eup %5732  ;;  %3581 = vadd.xlane.f32.xlu1 %v3580_v21  ;;  %v5593_v21 = vld [vmem:[#allocation8 + $0x28] sm:$0xff]  }
0x1124   :  { %v3583_v30 = vsel %vm2005_vm3, %v5733_v6, 0.0 }
0x1125   :  { %v5735_v31 = vpop.eup %5734  ;;  %3584 = vadd.xlane.f32.xlu0 %v3583_v30 }
0x1126   :  { %v3586_v50 = vsel %vm3119_vm6, %v5735_v31, 0.0 }
0x1127   :  { %3587 = vadd.xlane.f32.xlu1 %v3586_v50 }
0x11b0   :  { %v3582_v27 = vpop.xlane.xlu1 %3581 }
0x11b1   :  { %5736 = vrcp.f32 %v3582_v27 }
0x11b2   :  { %v3585_v60 = vpop.xlane.xlu0 %3584 }
0x11b3   :  { %5738 = vrcp.f32 %v3585_v60 }
0x11b4   :  { %v3588_v19 = vpop.xlane.xlu1 %3587 }
0x11b5   :  { %5740 = vrcp.f32 %v3588_v19 }
0x11bb   :  { %v5737_v18 = vpop.eup %5736 }
0x11bc   :  { %v3592_v45 = vmul.f32 %v5737_v18, %v5731_v52  ;;  %v5592_v52 = vld [vmem:[#allocation8 + $0x20] sm:$0xff]  }
0x11bd   :  { %v5739_v49 = vpop.eup %5738 }
0x11be   :  { %v3593_v4 = vmul.f32 %v5739_v49, %v5733_v6 }
0x11bf   :  { %v5741_v33 = vpop.eup %5740 }
0x11c0   :  { %v3594_v17 = vmul.f32 %v5741_v33, %v5735_v31  ;;  %v3595_v9 = vpack.c.bf16 %v3593_v4, %v3592_v45  ;;  %v5594_v45 = vld [vmem:[#allocation8 + $0x30] sm:$0xff]   ;;  %v5595_v4 = vld [vmem:[#allocation8 + $0x38] sm:$0xff]   ;;  %v5596_v33 = vld [vmem:[#allocation10] sm:$0xff]  }
0x11c2   :  { %v3596_v35 = vpack.c.bf16 %v3594_v17, %v3594_v17  ;;  %4738 = vmatprep.mubr.msk.bf16.mxu0 %vm2005_vm3, %v3595_v9  ;;  %v5597_v17 = vld [vmem:[#allocation10 + $0x8] sm:$0xff]   ;;  %v5598_v9 = vld [vmem:[#allocation10 + $0x10] sm:$0xff]  }
0x11c4   :  { %4739 = vmatmul.mubr.msk.bf16.vlgmr.msra.gmra.mrb[64].mxu0 %vm2005_vm3, %v3596_v35  ;;  %v5599_v35 = vld [vmem:[#allocation10 + $0x18] sm:$0xff]  }
0x11c5   :  { %5380 = vmatpush1.bf16.msra.mxu0 %v5379_v38  ;;  %3734 = vmatprep.mubr.f32.mxu0 %v7081_v0  ;;  %v5564_v38 = vld [vmem:[#allocation7 + $0x10] sm:$0xff]  }
0x11c6   :  { %4506 = vmatprep.subr.msk.mxu0 %vm2015_vm2, %v6954_v61  ;;  %v5566_v61 = vld [vmem:[#allocation7 + $0x58] sm:$0xff]  }
0x11c9   :  { %4507 = vmatpush1.msk.msra.mxu0 %vm2015_vm2, %v6946_v26  ;;  %v5568_v26 = vld [vmem:[#allocation7 + $0x18] sm:$0xff]  }
0x11ca   :  { %4601 = vmatprep.subr.bf16.mxu0 %v5556_v36  ;;  %v5601_v36 = vld [vmem:[#allocation10 + $0x28] sm:$0xff]  }
0x11cc   :  { %4508 = vmatmul.mubr.msk.f32.vlgmr.msra.gmra.mrb[68].mxu0 %vm2005_vm3, %v3654_v59 }
0x11cd   :  { %4602 = vmatpush3.bf16.msra.mxu0 %v5557_v22  ;;  %v4512_v22 = vld [vmem:[%s7053_s7] ss:$0 sm:$0xff] }
0x11ce   :  { %4603 = vmatprep.subr.bf16.mxu0 %v5558_v41 }
0x11d1   :  { %4604 = vmatpush3.bf16.msra.mxu0 %v5560_v56 }
0x11d2   :  { %4605 = vmatprep.subr.bf16.mxu0 %v5562_v8 }
0x11d5   :  { %4606 = vmatpush3.bf16.msra.mxu0 %v5564_v38 }
0x11d6   :  { %4607 = vmatprep.subr.bf16.mxu0 %v5566_v61 }
0x11d9   :  { %4608 = vmatpush3.bf16.msra.mxu0 %v5568_v26 }
0x11da   :  { %4609 = vmatprep.subr.bf16.mxu0 %v5570_v5 }
0x11dd   :  { %4610 = vmatpush3.bf16.msra.mxu0 %v5572_v62 }
0x11de   :  { %4611 = vmatprep.subr.bf16.mxu0 %v5574_v44  ;;  %v5602_v44 = vld [vmem:[#allocation10 + $0x30] sm:$0xff]  }
0x11e1   :  { %4612 = vmatpush3.bf16.msra.mxu0 %v5576_v51  ;;  %v5603_v51 = vld [vmem:[#allocation10 + $0x38] sm:$0xff]  }
0x11e2   :  { %4613 = vmatprep.subr.bf16.mxu0 %v5578_v53  ;;  %v4545_v53 = vld [vmem:[%s7055_s9] ss:$0 sm:$0xff] }
0x11e5   :  { %4614 = vmatpush3.bf16.msra.mxu0 %v5580_v34 }
0x11e6   :  { %4615 = vmatprep.subr.bf16.mxu0 %v5582_v2 }
0x11e9   :  { %4616 = vmatpush3.bf16.msra.mxu0 %v5584_v54 }
0x11ea   :  { %4742 = vmatprep.subr.bf16.mxu0 %v7081_v0 }
0x1297   :  { %v4740_v58 = vpop.f32.mrb[64].mxu0 }
0x1298   :  { %v3640_v40 = vpop.f32.mrb[65].mxu0 }
0x1299   :  { %v4741_v12 = vpop.f32.mrb[66].mxu0 }
0x129a   :  { %v3643_v7 = vpop.f32.mrb[67].mxu0 }
0x129b   :  { %v5381_v43 = vpack.c.bf16 %v3643_v7, %v3640_v40 }
0x129d   :  { %5382 = vmatprep.subr.bf16.mxu1 %v5381_v43  ;;  %v4554_v43 = vld [vmem:[%s7057_s11] ss:$0 sm:$0xff] }
0x129e   :  { %5384 = vmatpush1.bf16.msra.mxu1 %v5383_v32  ;;  %v5575_v32 = vld [vmem:[#allocation7 + $0xe0] sm:$0xff]  }
0x129f   :  { %4509 = vmatprep.subr.msk.mxu1 %vm2015_vm2, %v4740_v58  ;;  %v3736_v29 = vpop.f32.mrb[68].mxu0 }
0x12a0   :  { %v3812_v37 = vpack.c.bf16 %v3736_v29, %v3736_v29  ;;  %v3738_v55 = vpop.f32.mrb[69].mxu0 }
0x12a1   :  { %v3813_v11 = vpack.c.bf16 %v3738_v55, %v3738_v55 }
0x12a2   :  { %4510 = vmatpush1.msk.msra.mxu1 %vm2015_vm2, %v6976_v3  ;;  %v5581_v3 = vld [vmem:[#allocation7 + $0xa8] sm:$0xff]  }
0x12a3   :  { %4511 = vmatmul.mubr.msk.f32.vlgmr.msra.gmra.mrb[22].mxu1 %vm2005_vm3, %v3654_v59  ;;  %4623 = vmatprep.subr.bf16.mxu1 %v5559_v13  ;;  %v5600_v59 = vld [vmem:[#allocation10 + $0x20] sm:$0xff]  }
0x12a4   :  { %4624 = vmatpush3.bf16.msra.mxu1 %v5561_v47  ;;  %4111 = vmatprep.mubr.bf16.mxu0 %v3813_v11 }
0x12a5   :  { %4625 = vmatprep.subr.bf16.mxu1 %v5563_v63  ;;  %4112 = vmatmul.mubr.bf16.vlgmr.msra.gmra.mrb[72].mxu0 %v3812_v37 }
0x12a6   :  { %4758 = vmatprep.mubr.msk.bf16.mxu0 %vm5871_vm1, %v7081_v0  ;;  %4743 = vmatpush3.bf16.msra.mxu0 %v5588_v23 }
0x12a7   :  { %4744 = vmatprep.subr.bf16.mxu0 %v7081_v0 }
0x12a8   :  { %4626 = vmatpush3.bf16.msra.mxu1 %v5565_v39 }
0x12a9   :  { %4627 = vmatprep.subr.bf16.mxu1 %v5567_v10 }
0x12aa   :  { %4745 = vmatpush3.bf16.msra.mxu0 %v5589_v24 }
0x12ab   :  { %4746 = vmatprep.subr.bf16.mxu0 %v7081_v0 }
0x12ac   :  { %4628 = vmatpush3.bf16.msra.mxu1 %v5569_v16 }
0x12ad   :  { %4629 = vmatprep.subr.bf16.mxu1 %v5571_v15 }
0x12ae   :  { %4747 = vmatpush3.bf16.msra.mxu0 %v5590_v28 }
0x12af   :  { %4748 = vmatprep.subr.bf16.mxu0 %v7081_v0 }
0x12b0   :  { %4630 = vmatpush3.bf16.msra.mxu1 %v5573_v1 }
0x12b1   :  { %4631 = vmatprep.subr.bf16.mxu1 %v5575_v32 }
0x12b2   :  { %4749 = vmatpush3.bf16.msra.mxu0 %v5591_v25 }
0x12b3   :  { %4750 = vmatprep.subr.bf16.mxu0 %v7081_v0 }
0x12b4   :  { %4632 = vmatpush3.bf16.msra.mxu1 %v5577_v57 }
0x12b5   :  { %4633 = vmatprep.subr.bf16.mxu1 %v5579_v42 }
0x12b6   :  { %4751 = vmatpush3.bf16.msra.mxu0 %v5592_v52 }
0x12b7   :  { %4752 = vmatprep.subr.bf16.mxu0 %v7081_v0 }
0x12b8   :  { %4634 = vmatpush3.bf16.msra.mxu1 %v5581_v3 }
0x12b9   :  { %4635 = vmatprep.subr.bf16.mxu1 %v5583_v20 }
0x12ba   :  { %4753 = vmatpush3.bf16.msra.mxu0 %v5593_v21 }
0x12bb   :  { %4754 = vmatprep.subr.bf16.mxu0 %v7081_v0 }
0x12bc   :  { %4636 = vmatpush3.bf16.msra.mxu1 %v5585_v46 }
0x12bd   :  { %4637 = vmatprep.subr.bf16.mxu1 %v5586_v48 }
0x12be   :  { %4755 = vmatpush3.bf16.msra.mxu0 %v5594_v45 }
0x12bf   :  { %4756 = vmatprep.subr.bf16.mxu0 %v7081_v0 }
0x12c0   :  { %4638 = vmatpush3.bf16.msra.mxu1 %v5587_v14 }
0x12c1   :  { %4762 = vmatprep.subr.bf16.mxu1 %v7081_v0 }
0x12c2   :  { %4757 = vmatpush3.bf16.msra.mxu0 %v5595_v4 }
0x1376   :  { %v3807_v6 = vpop.f32.mrb[22].mxu1 }
0x1377   :  { %v3809_v30 = vpop.f32.mrb[23].mxu1  ;;  %v3814_v50 = vpack.c.bf16 %v3807_v6, %v3807_v6 }
0x1378   :  { %v3815_v31 = vpack.c.bf16 %v3809_v30, %v3809_v30  ;;  %v4617_v27 = vpop.f32.mrb[72].mxu0 }
0x1379   :  { %v4618_v60 = vpop.f32.mrb[73].mxu0 }
0x137a   :  { %4151 = vmatprep.mubr.bf16.mxu1 %v3815_v31  ;;  %v4619_v19 = vadd.f32 %v4618_v60, %v4617_v27  ;;  %v4620_v18 = vpop.f32.mrb[74].mxu0 }
0x137b   :  { %4152 = vmatmul.mubr.bf16.vlgmr.msra.gmra.mrb[64].mxu1 %v3814_v50  ;;  %v4621_v49 = vpop.f32.mrb[75].mxu0 }
0x137c   :  { %4778 = vmatprep.mubr.msk.bf16.mxu1 %vm5871_vm1, %v7081_v0  ;;  %4763 = vmatpush3.bf16.msra.mxu1 %v5596_v33  ;;  %v4114_v8 = vadd.f32 %v4619_v19, %v4512_v22 }
0x137d   :  { %4764 = vmatprep.subr.bf16.mxu1 %v7081_v0 }
0x1380   :  { %4765 = vmatpush3.bf16.msra.mxu1 %v5597_v17 }
0x1381   :  { %4766 = vmatprep.subr.bf16.mxu1 %v7081_v0 }
0x1384   :  { %4767 = vmatpush3.bf16.msra.mxu1 %v5598_v9 }
0x1385   :  { %4768 = vmatprep.subr.bf16.mxu1 %v7081_v0 }
0x1388   :  { %4769 = vmatpush3.bf16.msra.mxu1 %v5599_v35 }
0x1389   :  { %4770 = vmatprep.subr.bf16.mxu1 %v7081_v0 }
0x138c   :  { %4771 = vmatpush3.bf16.msra.mxu1 %v5600_v59 }
0x138d   :  { %4772 = vmatprep.subr.bf16.mxu1 %v7081_v0 }
0x1390   :  { %4773 = vmatpush3.bf16.msra.mxu1 %v5601_v36 }
0x1391   :  { %4774 = vmatprep.subr.bf16.mxu1 %v7081_v0 }
0x1394   :  { %4775 = vmatpush3.bf16.msra.mxu1 %v5602_v44 }
0x1395   :  { %4776 = vmatprep.subr.bf16.mxu1 %v7081_v0 }
0x1398   :  { %4777 = vmatpush3.bf16.msra.mxu1 %v5603_v51 }
0x144e   :  { %v4639_v41 = vpop.f32.mrb[64].mxu1 }
0x144f   :  { %v4640_v56 = vpop.f32.mrb[65].mxu1 }
0x1450   :  { %v4641_v38 = vadd.f32 %v4640_v56, %v4639_v41  ;;  %v4642_v61 = vpop.f32.mrb[66].mxu1 }
0x1451   :  { %v4643_v26 = vpop.f32.mrb[67].mxu1 }
0x1452   :  { %v4154_v5 = vadd.f32 %v4641_v38, %v4114_v8 }
0x1454   :  { %v4159_v62 = vpack.c.bf16 %v4154_v5, %v4154_v5 }
0x1456   :  { %4759 = vmatmul.mubr.bf16.vlgmr.msra.gmra.mrb[76].mxu0 %v4159_v62 }
0x1529   :  { %v4265_v34 = vpop.f32.mrb[76].mxu0 }
0x152a   :  { %v4266_v2 = vadd.f32 %v4545_v53, %v4265_v34  ;;  %v4760_v54 = vpop.f32.mrb[77].mxu0 }
0x152b   :  { %v4268_v58 = vpop.f32.mrb[78].mxu0 }
0x152c   :  { %v4271_v40 = vmax.f32 %v4266_v2, 0.0  ;;  %v4761_v12 = vpop.f32.mrb[79].mxu0 }
0x152e   :  { %v4272_v7 = vpack.c.bf16 %v4271_v40, %v4271_v40 }
0x1530   :  { %4779 = vmatmul.mubr.bf16.vlgmr.msra.gmra.mrb[68].mxu1 %v4272_v7 }
0x1603   :  { %v4378_v13 = vpop.f32.mrb[68].mxu1 }
0x1604   :  { %v4379_v0 = vadd.f32 %v4554_v43, %v4378_v13  ;;  %v4780_v47 = vpop.f32.mrb[69].mxu1 }
0x1605   :  { %v4381_v63 = vpop.f32.mrb[70].mxu1 }
0x1606   :  { %4384 = vst [vmem:[%s7088_s23] sm:$0x3] %v4379_v0  ;;  %v4781_v39 = vpop.f32.mrb[71].mxu1 }
0x1607   :  { %4389 = vsyncpa [#allocation4], 1 }
0x1608   :  { %4390 = vsyncpa [#allocation6], 1 }
0x1609   :  { %4391 = vsyncpa [#allocation9], 1 }

</bundles_post_ra>
